<compile_context>
chip_gen: v5e
topology: v5e:2x2
jax: 0.10.0
libtpu: 0.0.40
codegen_flags: <defaults>
</compile_context>

<pallas_src>
import functools

import jax
import jax.numpy as jnp
from jax import lax
from jax.experimental import pallas as pl
from jax.experimental.pallas import tpu as pltpu

LEAKY_SLOPE = 0.1
BN_EPS = 1e-5


def _pick_vmem_limit_bytes():
    """Per-generation scoped-VMEM limit (review item): ~96 MiB on 128-MiB
    parts (v5e/v6e/v4/v5p), ~48 MiB on 64-MiB v7x, conservative fallback."""
    MiB = 1024 * 1024
    try:
        cap = int(pltpu.get_tpu_info().vmem_capacity_bytes)
    except Exception:
        cap = None
    if cap is None:
        return 48 * MiB
    if cap >= 100 * MiB:
        return 96 * MiB
    return min(48 * MiB, (cap * 3) // 4)


def _fused_residual_kernel(x_ref, w1_ref, b1_ref, w2_ref, b2_ref, o_ref,
                           act_ref, act_bf_ref, ypad_ref, *,
                           H, W, use_residual, weights_resident):
    HW, C = act_ref.shape
    Cmid = ypad_ref.shape[-1]
    r = pl.program_id(1)
    num_rep = pl.num_programs(1)
    # Resident weights hold all R repeats (index by r); streamed weights
    # present a single repeat's block (index 0).
    widx = r if weights_resident else 0

    @pl.when(r == 0)
    def _load_and_init():
        # New sample: pull the activation into the resident scratches (f32
        # residual chain + bf16 matmul-operand mirror) and zero the padded
        # conv buffer once per sample (only its 1-wide border needs the
        # zeros; the interior is fully overwritten every repeat).
        x0 = x_ref[...].reshape(HW, C)
        act_ref[...] = x0
        act_bf_ref[...] = x0.astype(jnp.bfloat16)
        ypad_ref[...] = jnp.zeros_like(ypad_ref)

    x_f32 = act_ref[...]        # (HW, C) f32 residual chain
    x_bf = act_bf_ref[...]      # (HW, C) bf16 mirror (matmul operand)

    # ---- CNNBlock 1: 1x1 conv == channel matmul.  BN scale is pre-folded
    #      into the bf16 weight; bias add + LeakyReLU stay in f32. ----
    y = jnp.dot(x_bf, w1_ref[widx], preferred_element_type=jnp.float32)
    y = y + b1_ref[widx]
    y = jnp.where(y > 0, y, LEAKY_SLOPE * y)

    # Stage conv1's output into the zero-padded scratch (pad=1) for the 3x3.
    # TODO(synk): halo store/loads are sublane-offset by 1 (masked vst plus
    #             sublane shifts); a roll/mask based W-halo would remove them.
    ypad_ref[1:H + 1, 1:W + 1, :] = y.reshape(H, W, Cmid).astype(jnp.bfloat16)

    # ---- CNNBlock 2: 3x3 conv (padding=1), folded BN scale, bias, leaky ----
    if Cmid >= 128:
        # Nine accumulating matmuls with K = Cmid (already fills the MXU K).
        # No (HW, 9*Cmid) im2col buffer is materialized; on v7x the MXU's MRB
        # accumulates the nine taps in place before a single f32 drain.
        z = jnp.zeros((HW, C), jnp.float32)
        for k in range(9):
            ky, kx = divmod(k, 3)
            tap = ypad_ref[ky:ky + H, kx:kx + W, :].reshape(HW, Cmid)
            z = z + jnp.dot(tap, w2_ref[widx, k * Cmid:(k + 1) * Cmid, :],
                            preferred_element_type=jnp.float32)
    else:
        # Small Cmid: concatenate the 9 taps on the lane axis so one
        # K = 9*Cmid matmul fills the MXU contraction dimension.
        taps = [ypad_ref[ky:ky + H, kx:kx + W, :]
                for ky in range(3) for kx in range(3)]
        col = jnp.concatenate(taps, axis=-1).reshape(HW, 9 * Cmid)
        z = jnp.dot(col, w2_ref[widx], preferred_element_type=jnp.float32)
    z = z + b2_ref[widx]
    z = jnp.where(z > 0, z, LEAKY_SLOPE * z)

    # ---- residual add (f32); keep both residents current for repeat r+1.
    #      The bf16 cast is folded into this store (one sweep, not two). ----
    new_act = x_f32 + z if use_residual else z
    act_ref[...] = new_act
    act_bf_ref[...] = new_act.astype(jnp.bfloat16)

    @pl.when(r == num_rep - 1)
    def _store():
        o_ref[...] = new_act.reshape(1, HW, C).astype(o_ref.dtype)


def residual_block_forward(x_nchw, params, use_residual=True):
    """ResidualBlock.forward. Input/output in NCHW (PyTorch convention)."""
    N, C, H, W = x_nchw.shape
    Cmid = C // 2
    R = len(params)

    x = jnp.transpose(x_nchw, (0, 2, 3, 1)).reshape(N, H * W, C)

    # Fold the BN scale into the conv weights (exact in f32), then cast the
    # matmul operands to bf16.  Only the bias adds remain in the kernel.
    w1_all = jnp.stack([p["w1"] * p["s1"] for p in params]).astype(jnp.bfloat16)                      # (R, C, Cmid)
    w2_all = jnp.stack([p["w2_flat"] * p["s2"] for p in params]).astype(jnp.bfloat16)                 # (R, 9*Cmid, C)
    b1_all = jnp.stack([p["b1"] for p in params])                                                     # (R, 1, Cmid)
    b2_all = jnp.stack([p["b2"] for p in params])                                                     # (R, 1, C)

    vmem_limit = _pick_vmem_limit_bytes()

    weight_bytes = 2 * (w1_all.size + w2_all.size) + 4 * (b1_all.size + b2_all.size)
    weights_resident = weight_bytes <= vmem_limit // 4

    if weights_resident:
        # All repeats' weights DMA'd once per call (constant block index),
        # killing the N-fold per-sample weight re-fetch.
        w_specs = [
            pl.BlockSpec((R, C, Cmid), lambda n, r: (0, 0, 0)),
            pl.BlockSpec((R, 1, Cmid), lambda n, r: (0, 0, 0)),
            pl.BlockSpec((R, 9 * Cmid, C), lambda n, r: (0, 0, 0)),
            pl.BlockSpec((R, 1, C), lambda n, r: (0, 0, 0)),
        ]
    else:
        # Large-C fallback: stream per repeat; deeper buffering on the large
        # w2 operand so its DMA hides behind the previous repeat's matmuls.
        w_specs = [
            pl.BlockSpec((1, C, Cmid), lambda n, r: (r, 0, 0)),
            pl.BlockSpec((1, 1, Cmid), lambda n, r: (r, 0, 0)),
            pl.BlockSpec((1, 9 * Cmid, C), lambda n, r: (r, 0, 0),
                         pipeline_mode=pl.Buffered(3)),
            pl.BlockSpec((1, 1, C), lambda n, r: (r, 0, 0)),
        ]

    kernel = functools.partial(_fused_residual_kernel, H=H, W=W,
                               use_residual=use_residual,
                               weights_resident=weights_resident)

    out = pl.pallas_call(
        kernel,
        out_shape=jax.ShapeDtypeStruct((N, H * W, C), x.dtype),
        grid_spec=pltpu.PrefetchScalarGridSpec(
            num_scalar_prefetch=0,
            grid=(N, R),   # repeats innermost so the activation stays in VMEM
            in_specs=[pl.BlockSpec((1, H * W, C), lambda n, r: (n, 0, 0))] + w_specs,
            out_specs=pl.BlockSpec((1, H * W, C), lambda n, r: (n, 0, 0)),
            scratch_shapes=[
                pltpu.VMEM((H * W, C), jnp.float32),             # resident f32 residual chain
                pltpu.VMEM((H * W, C), jnp.bfloat16),            # bf16 mirror (matmul operand)
                pltpu.VMEM((H + 2, W + 2, Cmid), jnp.bfloat16),  # zero-padded conv1 output
            ],
        ),
        compiler_params=pltpu.CompilerParams(
            dimension_semantics=("parallel", "arbitrary"),
            vmem_limit_bytes=vmem_limit,
        ),
    )(x, w1_all, b1_all, w2_all, b2_all)

    return jnp.transpose(out.reshape(N, H, W, C), (0, 3, 1, 2))


def _fold_bn(key, c):
    kg, kb, km, kv = jax.random.split(key, 4)
    gamma = jax.random.uniform(kg, (c,), jnp.float32, 0.5, 1.5)
    beta = jax.random.normal(kb, (c,), jnp.float32) * 0.1
    mean = jax.random.normal(km, (c,), jnp.float32) * 0.1
    var = jax.random.uniform(kv, (c,), jnp.float32, 0.5, 1.5)
    scale = gamma / jnp.sqrt(var + BN_EPS)
    bias = beta - mean * scale
    return scale, bias


def init_params(key, channels, num_repeats):
    cmid = channels // 2
    params = []
    for r in range(num_repeats):
        k = jax.random.fold_in(key, r)
        k1, k2, kbn1, kbn2 = jax.random.split(k, 4)
        # PyTorch conv weights: conv1 (Cmid, C, 1, 1); conv2 (C, Cmid, 3, 3)
        w1_t = jax.random.normal(k1, (cmid, channels, 1, 1), jnp.float32) / jnp.sqrt(channels)
        w2_t = jax.random.normal(k2, (channels, cmid, 3, 3), jnp.float32) / jnp.sqrt(9.0 * cmid)
        s1, b1 = _fold_bn(kbn1, cmid)
        s2, b2 = _fold_bn(kbn2, channels)
        w1 = jnp.transpose(w1_t[:, :, 0, 0], (1, 0))               # (C, Cmid)
        w2_hwio = jnp.transpose(w2_t, (2, 3, 1, 0))                # (3, 3, Cmid, C)
        params.append(dict(
            w1=w1,
            w2_hwio=w2_hwio,
            w2_flat=w2_hwio.reshape(9 * cmid, channels),           # row k*Cmid+ci, k = ky*3+kx
            s1=s1.reshape(1, cmid), b1=b1.reshape(1, cmid),
            s2=s2.reshape(1, channels), b2=b2.reshape(1, channels),
        ))
    return params


def reference_forward(x_nchw, params, use_residual=True, *, matmul_dtype=jnp.float32):
    """Pure-JAX reference (lax conv).  BN scale is folded into the weights
    before the matmul-dtype cast (exact in f32, matches the kernel's bf16
    rounding when matmul_dtype=bf16); accumulation / elementwise stay f32."""
    x = jnp.transpose(x_nchw, (0, 2, 3, 1))
    dn = ("NHWC", "HWIO", "NHWC")
    for p in params:
        w1_eff = (p["w1"] * p["s1"]).reshape(1, 1, *p["w1"].shape)     # (1,1,C,Cmid)
        y = lax.conv_general_dilated(
            x.astype(matmul_dtype), w1_eff.astype(matmul_dtype), (1, 1), "VALID",
            dimension_numbers=dn, preferred_element_type=jnp.float32)
        y = y + p["b1"].reshape(1, 1, 1, -1)
        y = jnp.where(y > 0, y, LEAKY_SLOPE * y)
        w2_eff = p["w2_hwio"] * p["s2"].reshape(1, 1, 1, -1)           # (3,3,Cmid,C)
        z = lax.conv_general_dilated(
            y.astype(matmul_dtype), w2_eff.astype(matmul_dtype), (1, 1), "SAME",
            dimension_numbers=dn, preferred_element_type=jnp.float32)
        z = z + p["b2"].reshape(1, 1, 1, -1)
        z = jnp.where(z > 0, z, LEAKY_SLOPE * z)
        x = x + z if use_residual else z
    return jnp.transpose(x, (0, 3, 1, 2))


def _check(out, x, params, use_residual, tag):
    ref_mixed = reference_forward(x, params, use_residual, matmul_dtype=jnp.bfloat16)
    err = float(jnp.max(jnp.abs(out - ref_mixed)))
    assert err < 2e-2, f"[{tag}] max abs error vs bf16-matmul reference: {err}"
    ref_f32 = reference_forward(x, params, use_residual, matmul_dtype=jnp.float32)
    scale = float(jnp.max(jnp.abs(ref_f32)))
    err_f32 = float(jnp.max(jnp.abs(out - ref_f32)))
    assert err_f32 < 5e-2 * scale + 5e-2, (
        f"[{tag}] max abs error vs f32 reference: {err_f32} (scale {scale})")


if __name__ == "__main__":
    key = jax.random.PRNGKey(0)

    # --- Test 1: small channels (Cmid < 128 -> im2col path, resident weights)
    N, C, H, W = 2, 16, 16, 16
    num_repeats = 2
    kx_, kp = jax.random.split(key)
    x = jax.random.normal(kx_, (N, C, H, W), jnp.float32)
    params = init_params(kp, C, num_repeats)
    out = jax.block_until_ready(residual_block_forward(x, params, use_residual=True))
    assert out.shape == (N, C, H, W) and out.dtype == jnp.float32
    _check(out, x, params, True, "C=16")

    # --- Test 2: Cmid >= 128 -> 9-accumulating-matmul path (no im2col buffer)
    N2, C2, H2, W2 = 1, 256, 8, 8
    kx2, kp2 = jax.random.split(jax.random.fold_in(key, 1))
    x2 = jax.random.normal(kx2, (N2, C2, H2, W2), jnp.float32)
    params2 = init_params(kp2, C2, 2)
    out2 = jax.block_until_ready(residual_block_forward(x2, params2, use_residual=True))
    assert out2.shape == (N2, C2, H2, W2) and out2.dtype == jnp.float32
    _check(out2, x2, params2, True, "C=256")

    print("KERNEL_OK")
</pallas_src>

<mosaic_0001>
module attributes {stable_mosaic.version = 11 : i64} {
  func.func @_fused_residual_kernel(%arg0: i32, %arg1: i32, %arg2: memref<1x256x16xf32, #tpu.memory_space<vmem>>, %arg3: memref<2x16x8xbf16, #tpu.memory_space<vmem>>, %arg4: memref<2x1x8xf32, #tpu.memory_space<vmem>>, %arg5: memref<2x72x16xbf16, #tpu.memory_space<vmem>>, %arg6: memref<2x1x16xf32, #tpu.memory_space<vmem>>, %arg7: memref<1x256x16xf32, #tpu.memory_space<vmem>>, %arg8: memref<256x16xf32, #tpu.memory_space<vmem>>, %arg9: memref<256x16xbf16, #tpu.memory_space<vmem>>, %arg10: memref<18x18x8xbf16, #tpu.memory_space<vmem>>) attributes {dimension_semantics = [#tpu.dimension_semantics<parallel>, #tpu.dimension_semantics<arbitrary>], iteration_bounds = array<i64: 2, 2>, scalar_prefetch = 0 : i64, scratch_operands = 3 : i64, tpu.core_type = #tpu.core_type<tc>, window_params = [{transform_indices = @transform_0, window_bounds = array<i64: 1, 256, 16>}, {pipeline_mode = #tpu.pipeline_mode<synchronous>, transform_indices = @transform_1, window_bounds = array<i64: 2, 16, 8>}, {pipeline_mode = #tpu.pipeline_mode<synchronous>, transform_indices = @transform_2, window_bounds = array<i64: 2, 1, 8>}, {pipeline_mode = #tpu.pipeline_mode<synchronous>, transform_indices = @transform_3, window_bounds = array<i64: 2, 72, 16>}, {pipeline_mode = #tpu.pipeline_mode<synchronous>, transform_indices = @transform_4, window_bounds = array<i64: 2, 1, 16>}, {transform_indices = @transform_5, window_bounds = array<i64: 1, 256, 16>}]} {
    %c0_i32 = arith.constant 0 : i32
    %0 = arith.cmpi eq, %arg1, %c0_i32 : i32
    %1 = arith.extui %0 : i1 to i32
    %c0_i32_0 = arith.constant 0 : i32
    %2 = arith.cmpi ne, %1, %c0_i32_0 : i32
    scf.if %2 {
      %c0_50 = arith.constant 0 : index
      %c0_51 = arith.constant 0 : index
      %c0_52 = arith.constant 0 : index
      %54 = vector.load %arg2[%c0_50, %c0_51, %c0_52] : memref<1x256x16xf32, #tpu.memory_space<vmem>>, vector<1x256x16xf32>
      %55 = vector.shape_cast %54 : vector<1x256x16xf32> to vector<256x16xf32>
      %c0_53 = arith.constant 0 : index
      %c0_54 = arith.constant 0 : index
      %56 = vector.load %arg8[%c0_53, %c0_54] : memref<256x16xf32, #tpu.memory_space<vmem>>, vector<256x16xf32>
      tpu.vector_store %arg8[%c0_53, %c0_54], %55 {strides = array<i32>} : memref<256x16xf32, #tpu.memory_space<vmem>>, vector<256x16xf32>,
      %57 = arith.truncf %55 : vector<256x16xf32> to vector<256x16xbf16>
      %c0_55 = arith.constant 0 : index
      %c0_56 = arith.constant 0 : index
      %58 = vector.load %arg9[%c0_55, %c0_56] : memref<256x16xbf16, #tpu.memory_space<vmem>>, vector<256x16xbf16>
      tpu.vector_store %arg9[%c0_55, %c0_56], %57 {strides = array<i32>} : memref<256x16xbf16, #tpu.memory_space<vmem>>, vector<256x16xbf16>,
      %cst_57 = arith.constant 0.000000e+00 : bf16
      %59 = vector.broadcast %cst_57 : bf16 to vector<18x18x8xbf16>
      %c0_58 = arith.constant 0 : index
      %c0_59 = arith.constant 0 : index
      %c0_60 = arith.constant 0 : index
      %60 = vector.load %arg10[%c0_58, %c0_59, %c0_60] : memref<18x18x8xbf16, #tpu.memory_space<vmem>>, vector<18x18x8xbf16>
      tpu.vector_store %arg10[%c0_58, %c0_59, %c0_60], %59 {strides = array<i32>} : memref<18x18x8xbf16, #tpu.memory_space<vmem>>, vector<18x18x8xbf16>,
    } else {
    }
    %c0 = arith.constant 0 : index
    %c0_1 = arith.constant 0 : index
    %3 = vector.load %arg8[%c0, %c0_1] : memref<256x16xf32, #tpu.memory_space<vmem>>, vector<256x16xf32>
    %c0_2 = arith.constant 0 : index
    %c0_3 = arith.constant 0 : index
    %4 = vector.load %arg9[%c0_2, %c0_3] : memref<256x16xbf16, #tpu.memory_space<vmem>>, vector<256x16xbf16>
    %5 = arith.index_cast %arg1 : i32 to index
    %c0_4 = arith.constant 0 : index
    %c0_5 = arith.constant 0 : index
    %6 = vector.load %arg3[%5, %c0_4, %c0_5] : memref<2x16x8xbf16, #tpu.memory_space<vmem>>, vector<1x16x8xbf16>
    %7 = vector.shape_cast %6 : vector<1x16x8xbf16> to vector<16x8xbf16>
    %cst = arith.constant dense<0.000000e+00> : vector<256x8xf32>
    %8 = tpu.matmul %4, %7, %cst {dimension_numbers = #tpu.dot_dimension_numbers<[1], [0], [0], [1], [0, 0, 1, 1], [], []>} : vector<256x16xbf16>, vector<16x8xbf16>, vector<256x8xf32> -> vector<256x8xf32>
    %9 = arith.index_cast %arg1 : i32 to index
    %c0_6 = arith.constant 0 : index
    %c0_7 = arith.constant 0 : index
    %10 = vector.load %arg4[%9, %c0_6, %c0_7] : memref<2x1x8xf32, #tpu.memory_space<vmem>>, vector<1x1x8xf32>
    %11 = vector.shape_cast %10 : vector<1x1x8xf32> to vector<1x8xf32>
    %12 = vector.broadcast %11 : vector<1x8xf32> to vector<256x8xf32>
    %13 = arith.addf %8, %12 : vector<256x8xf32>
    %cst_8 = arith.constant 0.000000e+00 : f32
    %14 = vector.broadcast %cst_8 : f32 to vector<256x8xf32>
    %15 = arith.cmpf ogt, %13, %14 : vector<256x8xf32>
    %cst_9 = arith.constant 1.000000e-01 : f32
    %16 = vector.broadcast %cst_9 : f32 to vector<256x8xf32>
    %17 = arith.mulf %16, %13 : vector<256x8xf32>
    %18 = arith.select %15, %13, %17 : vector<256x8xi1>, vector<256x8xf32>
    %19 = vector.shape_cast %18 : vector<256x8xf32> to vector<16x16x8xf32>
    %20 = arith.truncf %19 : vector<16x16x8xf32> to vector<16x16x8xbf16>
    %c1 = arith.constant 1 : index
    %c1_10 = arith.constant 1 : index
    %c0_11 = arith.constant 0 : index
    %21 = vector.load %arg10[%c1, %c1_10, %c0_11] : memref<18x18x8xbf16, #tpu.memory_space<vmem>>, vector<16x16x8xbf16>
    tpu.vector_store %arg10[%c1, %c1_10, %c0_11], %20 {strides = array<i32>} : memref<18x18x8xbf16, #tpu.memory_space<vmem>>, vector<16x16x8xbf16>,
    %c0_12 = arith.constant 0 : index
    %c0_13 = arith.constant 0 : index
    %c0_14 = arith.constant 0 : index
    %22 = vector.load %arg10[%c0_12, %c0_13, %c0_14] : memref<18x18x8xbf16, #tpu.memory_space<vmem>>, vector<16x16x8xbf16>
    %c0_15 = arith.constant 0 : index
    %c1_16 = arith.constant 1 : index
    %c0_17 = arith.constant 0 : index
    %23 = vector.load %arg10[%c0_15, %c1_16, %c0_17] : memref<18x18x8xbf16, #tpu.memory_space<vmem>>, vector<16x16x8xbf16>
    %c0_18 = arith.constant 0 : index
    %c2 = arith.constant 2 : index
    %c0_19 = arith.constant 0 : index
    %24 = vector.load %arg10[%c0_18, %c2, %c0_19] : memref<18x18x8xbf16, #tpu.memory_space<vmem>>, vector<16x16x8xbf16>
    %c1_20 = arith.constant 1 : index
    %c0_21 = arith.constant 0 : index
    %c0_22 = arith.constant 0 : index
    %25 = vector.load %arg10[%c1_20, %c0_21, %c0_22] : memref<18x18x8xbf16, #tpu.memory_space<vmem>>, vector<16x16x8xbf16>
    %c1_23 = arith.constant 1 : index
    %c1_24 = arith.constant 1 : index
    %c0_25 = arith.constant 0 : index
    %26 = vector.load %arg10[%c1_23, %c1_24, %c0_25] : memref<18x18x8xbf16, #tpu.memory_space<vmem>>, vector<16x16x8xbf16>
    %c1_26 = arith.constant 1 : index
    %c2_27 = arith.constant 2 : index
    %c0_28 = arith.constant 0 : index
    %27 = vector.load %arg10[%c1_26, %c2_27, %c0_28] : memref<18x18x8xbf16, #tpu.memory_space<vmem>>, vector<16x16x8xbf16>
    %c2_29 = arith.constant 2 : index
    %c0_30 = arith.constant 0 : index
    %c0_31 = arith.constant 0 : index
    %28 = vector.load %arg10[%c2_29, %c0_30, %c0_31] : memref<18x18x8xbf16, #tpu.memory_space<vmem>>, vector<16x16x8xbf16>
    %c2_32 = arith.constant 2 : index
    %c1_33 = arith.constant 1 : index
    %c0_34 = arith.constant 0 : index
    %29 = vector.load %arg10[%c2_32, %c1_33, %c0_34] : memref<18x18x8xbf16, #tpu.memory_space<vmem>>, vector<16x16x8xbf16>
    %c2_35 = arith.constant 2 : index
    %c2_36 = arith.constant 2 : index
    %c0_37 = arith.constant 0 : index
    %30 = vector.load %arg10[%c2_35, %c2_36, %c0_37] : memref<18x18x8xbf16, #tpu.memory_space<vmem>>, vector<16x16x8xbf16>
    %31 = tpu.concatenate %22, %23, %24, %25, %26, %27, %28, %29, %30 in 2 : vector<16x16x8xbf16>, vector<16x16x8xbf16>, vector<16x16x8xbf16>, vector<16x16x8xbf16>, vector<16x16x8xbf16>, vector<16x16x8xbf16>, vector<16x16x8xbf16>, vector<16x16x8xbf16>, vector<16x16x8xbf16> -> vector<16x16x72xbf16>
    %32 = vector.shape_cast %31 : vector<16x16x72xbf16> to vector<256x72xbf16>
    %33 = arith.index_cast %arg1 : i32 to index
    %c0_38 = arith.constant 0 : index
    %c0_39 = arith.constant 0 : index
    %34 = vector.load %arg5[%33, %c0_38, %c0_39] : memref<2x72x16xbf16, #tpu.memory_space<vmem>>, vector<1x72x16xbf16>
    %35 = vector.shape_cast %34 : vector<1x72x16xbf16> to vector<72x16xbf16>
    %cst_40 = arith.constant dense<0.000000e+00> : vector<256x16xf32>
    %36 = tpu.matmul %32, %35, %cst_40 {dimension_numbers = #tpu.dot_dimension_numbers<[1], [0], [0], [1], [0, 0, 1, 1], [], []>} : vector<256x72xbf16>, vector<72x16xbf16>, vector<256x16xf32> -> vector<256x16xf32>
    %37 = arith.index_cast %arg1 : i32 to index
    %c0_41 = arith.constant 0 : index
    %c0_42 = arith.constant 0 : index
    %38 = vector.load %arg6[%37, %c0_41, %c0_42] : memref<2x1x16xf32, #tpu.memory_space<vmem>>, vector<1x1x16xf32>
    %39 = vector.shape_cast %38 : vector<1x1x16xf32> to vector<1x16xf32>
    %40 = vector.broadcast %39 : vector<1x16xf32> to vector<256x16xf32>
    %41 = arith.addf %36, %40 : vector<256x16xf32>
    %cst_43 = arith.constant 0.000000e+00 : f32
    %42 = vector.broadcast %cst_43 : f32 to vector<256x16xf32>
    %43 = arith.cmpf ogt, %41, %42 : vector<256x16xf32>
    %cst_44 = arith.constant 1.000000e-01 : f32
    %44 = vector.broadcast %cst_44 : f32 to vector<256x16xf32>
    %45 = arith.mulf %44, %41 : vector<256x16xf32>
    %46 = arith.select %43, %41, %45 : vector<256x16xi1>, vector<256x16xf32>
    %47 = arith.addf %3, %46 : vector<256x16xf32>
    %c0_45 = arith.constant 0 : index
    %c0_46 = arith.constant 0 : index
    %48 = vector.load %arg8[%c0_45, %c0_46] : memref<256x16xf32, #tpu.memory_space<vmem>>, vector<256x16xf32>
    tpu.vector_store %arg8[%c0_45, %c0_46], %47 {strides = array<i32>} : memref<256x16xf32, #tpu.memory_space<vmem>>, vector<256x16xf32>,
    %49 = arith.truncf %47 : vector<256x16xf32> to vector<256x16xbf16>
    %c0_47 = arith.constant 0 : index
    %c0_48 = arith.constant 0 : index
    %50 = vector.load %arg9[%c0_47, %c0_48] : memref<256x16xbf16, #tpu.memory_space<vmem>>, vector<256x16xbf16>
    tpu.vector_store %arg9[%c0_47, %c0_48], %49 {strides = array<i32>} : memref<256x16xbf16, #tpu.memory_space<vmem>>, vector<256x16xbf16>,
    %c1_i32 = arith.constant 1 : i32
    %51 = arith.cmpi eq, %arg1, %c1_i32 : i32
    %52 = arith.extui %51 : i1 to i32
    %c0_i32_49 = arith.constant 0 : i32
    %53 = arith.cmpi ne, %52, %c0_i32_49 : i32
    scf.if %53 {
      %54 = vector.shape_cast %47 : vector<256x16xf32> to vector<1x256x16xf32>
      %c0_50 = arith.constant 0 : index
      %c0_51 = arith.constant 0 : index
      %c0_52 = arith.constant 0 : index
      %55 = vector.load %arg7[%c0_50, %c0_51, %c0_52] : memref<1x256x16xf32, #tpu.memory_space<vmem>>, vector<1x256x16xf32>
      tpu.vector_store %arg7[%c0_50, %c0_51, %c0_52], %54 {strides = array<i32>} : memref<1x256x16xf32, #tpu.memory_space<vmem>>, vector<1x256x16xf32>,
    } else {
    }
    return
  }
  func.func @transform_0(%arg0: i32, %arg1: i32) -> (i32, i32, i32) {
    %c0_i32 = arith.constant 0 : i32
    %c0_i32_0 = arith.constant 0 : i32
    %c0_i32_1 = arith.constant 0 : i32
    return %arg0, %c0_i32, %c0_i32_0 : i32, i32, i32
  }
  func.func @transform_1(%arg0: i32, %arg1: i32) -> (i32, i32, i32) {
    %c0_i32 = arith.constant 0 : i32
    %c0_i32_0 = arith.constant 0 : i32
    %c0_i32_1 = arith.constant 0 : i32
    %c0_i32_2 = arith.constant 0 : i32
    return %c0_i32, %c0_i32_0, %c0_i32_1 : i32, i32, i32
  }
  func.func @transform_2(%arg0: i32, %arg1: i32) -> (i32, i32, i32) {
    %c0_i32 = arith.constant 0 : i32
    %c0_i32_0 = arith.constant 0 : i32
    %c0_i32_1 = arith.constant 0 : i32
    %c0_i32_2 = arith.constant 0 : i32
    return %c0_i32, %c0_i32_0, %c0_i32_1 : i32, i32, i32
  }
  func.func @transform_3(%arg0: i32, %arg1: i32) -> (i32, i32, i32) {
    %c0_i32 = arith.constant 0 : i32
    %c0_i32_0 = arith.constant 0 : i32
    %c0_i32_1 = arith.constant 0 : i32
    %c0_i32_2 = arith.constant 0 : i32
    return %c0_i32, %c0_i32_0, %c0_i32_1 : i32, i32, i32
  }
  func.func @transform_4(%arg0: i32, %arg1: i32) -> (i32, i32, i32) {
    %c0_i32 = arith.constant 0 : i32
    %c0_i32_0 = arith.constant 0 : i32
    %c0_i32_1 = arith.constant 0 : i32
    %c0_i32_2 = arith.constant 0 : i32
    return %c0_i32, %c0_i32_0, %c0_i32_1 : i32, i32, i32
  }
  func.func @transform_5(%arg0: i32, %arg1: i32) -> (i32, i32, i32) {
    %c0_i32 = arith.constant 0 : i32
    %c0_i32_0 = arith.constant 0 : i32
    %c0_i32_1 = arith.constant 0 : i32
    return %arg0, %c0_i32, %c0_i32_0 : i32, i32, i32
  }
}

</mosaic_0001>

<bundles_post_ra>
// kernel: tpu_custom_call.1
= control target key start
LH: loop header
LB: loop body
LE: loop exit
PB: predicated region body
PF: predicated region fallthrough
CT: control target
= control target key end

     0   :  { %s4320_s18 = smov 0   ;;  %s4322_s19 = smov 0   ;;  %s6216_s0 = inlined_call_operand.vmem [shape: f32[2,256,16], index: 0, kind: input, shape index: {}]   ;;  %s6217_s1 = inlined_call_operand.vmem [shape: bf16[2,16,8], index: 1, kind: input, shape index: {}]   ;;  %s6218_s2 = inlined_call_operand.vmem [shape: f32[2,1,8], index: 2, kind: input, shape index: {}]   ;;  %s6219_s3 = inlined_call_operand.vmem [shape: bf16[2,72,16], index: 3, kind: input, shape index: {}]   ;;  %s6220_s4 = inlined_call_operand.vmem [shape: f32[2,1,16], index: 4, kind: input, shape index: {}]   ;;  %s6221_s5 = inlined_call_operand.vmem [shape: f32[2,256,16], index: 5, kind: output, shape index: {}]  }
   0x1   :  { %s4324_s20 = smov 0   ;;  %s4326_s21 = smov 0  }
   0x2   :  { %s4328_s22 = smov 0  }
   0x3 LB: > { %s24_s23 = sadd.s32 1, %s4271_s20  ;;  %s27_s24 = sadd.s32 1, %s4275_s21  ;;  %s4279_s22 = sphi %s4328_s22, %s15_s22   ;;  %s4275_s21 = sphi %s4326_s21, %s6242_s21   ;;  %s4271_s20 = sphi %s4324_s20, %s6241_s20   ;;  %s4267_s19 = sphi %s4322_s19, %s6240_s19   ;;  %s4263_s18 = sphi %s4320_s18, %s6239_s18  }
   0x4   : > { %p25_p0 = scmp.ge.s32.totalorder %s24_s23, 2  ;;  %p3765_p1 = scmp.ge.s32.totalorder %s4279_s22, 1 }
   0x5   : > { %p199_p2 = scmp.lt.s32.totalorder %s4279_s22, 5 }
   0x6   : > { %s6244_s23 = smov (%p25_p0, %s24_s23), 0  ;;  %s6246_s24 = smov (!%p25_p0, %s27_s24), %s4275_s21 }
   0x7   : > { %p200_p3 = pnand %p3765_p1, %p199_p2  ;;  %p29_p4 = scmp.ge.s32.totalorder %s6246_s24, 2 }
   0x9   : > { %s6248_s24 = smov (%p29_p4, %s6246_s24), 0  ;;  %203 = sbr.rel (%p200_p3) target bundleno = 934 (0x3a6), region = 40 }
   0xe   : > { %p227_p5 = scmp.lt.s32.totalorder %s4267_s19, 1  ;;  %p3770_p6 = scmp.ne.s32.totalorder %s4263_s18, 0 }
  0x10   : > { %s6250_s19 = smov (!%p227_p5, %s4267_s19), 1  ;;  %241 = sbr.rel (%p3770_p6) target bundleno = 140 (0x8c), region = 44 }
  0x11   : > { %s3893_s25 = sshll.u32 %s6250_s19, 8 }
  0x12   : > { %s4355_s28 = scalar_lea.vmem %s6216_s0, %s3893_s25  ;;  %s4360_s6 = scalar_lea.vmem %s6221_s5, %s3893_s25 }
  0x15   : > { %v4364_v0 = vld [vmem:[%s4355_s28] sm:$0xff]  ;;  %vm274_vm0 = vcmask 130048   ;;  %v4369_v1 = vld [vmem:[%s4355_s28 + $0x8] sm:$0xff]  ;;  %v4374_v2 = vld [vmem:[%s4355_s28 + $0x10] sm:$0xff]  ;;  %vm339_vm1 = vcmask 125952   ;;  %vm372_vm2 = vcmask 60416  }
  0x16   : > { %275 = vst.msk [vmem:[#allocation2] sm:$0xff] %vm274_vm0, %v4364_v0  ;;  %v4379_v3 = vld [vmem:[%s4355_s28 + $0x18] sm:$0xff]  ;;  %v4384_v4 = vld [vmem:[%s4355_s28 + $0x20] sm:$0xff]  ;;  %v4389_v5 = vld [vmem:[%s4355_s28 + $0x28] sm:$0xff]  ;;  %v307_v30 = vpack.c.bf16 %v4364_v0, %v4364_v0  ;;  %v308_v32 = vpack.c.bf16 %v4369_v1, %v4369_v1  ;;  %v309_v34 = vpack.c.bf16 %v4374_v2, %v4374_v2  ;;  %v4281_v0 = vmov 0  }
  0x17   : > { %276 = vst.msk [vmem:[#allocation2 + $0x8] sm:$0xff] %vm274_vm0, %v4369_v1  ;;  %v4394_v6 = vld [vmem:[%s4355_s28 + $0x30] sm:$0xff]  ;;  %v4399_v7 = vld [vmem:[%s4355_s28 + $0x38] sm:$0xff]  ;;  %v4404_v8 = vld [vmem:[%s4355_s28 + $0x40] sm:$0xff]  ;;  %v310_v35 = vpack.c.bf16 %v4379_v3, %v4379_v3  ;;  %v311_v36 = vpack.c.bf16 %v4384_v4, %v4384_v4  ;;  %v312_v37 = vpack.c.bf16 %v4389_v5, %v4389_v5  ;;  %vm375_vm3 = vcmask 57344  }
  0x18   : > { %277 = vst.msk [vmem:[#allocation2 + $0x10] sm:$0xff] %vm274_vm0, %v4374_v2  ;;  %v4409_v9 = vld [vmem:[%s4355_s28 + $0x48] sm:$0xff]  ;;  %v4414_v10 = vld [vmem:[%s4355_s28 + $0x50] sm:$0xff]  ;;  %v4419_v11 = vld [vmem:[%s4355_s28 + $0x58] sm:$0xff]  ;;  %v313_v38 = vpack.c.bf16 %v4394_v6, %v4394_v6  ;;  %v314_v39 = vpack.c.bf16 %v4399_v7, %v4399_v7  ;;  %v315_v40 = vpack.c.bf16 %v4404_v8, %v4404_v8 }
  0x19   : > { %278 = vst.msk [vmem:[#allocation2 + $0x18] sm:$0xff] %vm274_vm0, %v4379_v3  ;;  %v4424_v12 = vld [vmem:[%s4355_s28 + $0x60] sm:$0xff]  ;;  %v4429_v13 = vld [vmem:[%s4355_s28 + $0x68] sm:$0xff]  ;;  %v4434_v14 = vld [vmem:[%s4355_s28 + $0x70] sm:$0xff]  ;;  %v316_v41 = vpack.c.bf16 %v4409_v9, %v4409_v9  ;;  %v317_v42 = vpack.c.bf16 %v4414_v10, %v4414_v10  ;;  %v318_v43 = vpack.c.bf16 %v4419_v11, %v4419_v11 }
  0x1a   : > { %279 = vst.msk [vmem:[#allocation2 + $0x20] sm:$0xff] %vm274_vm0, %v4384_v4  ;;  %v4439_v15 = vld [vmem:[%s4355_s28 + $0x78] sm:$0xff]  ;;  %v4444_v16 = vld [vmem:[%s4355_s28 + $0x80] sm:$0xff]  ;;  %v4449_v17 = vld [vmem:[%s4355_s28 + $0x88] sm:$0xff]  ;;  %v319_v44 = vpack.c.bf16 %v4424_v12, %v4424_v12  ;;  %v320_v45 = vpack.c.bf16 %v4429_v13, %v4429_v13  ;;  %v321_v46 = vpack.c.bf16 %v4434_v14, %v4434_v14 }
  0x1b   : > { %280 = vst.msk [vmem:[#allocation2 + $0x28] sm:$0xff] %vm274_vm0, %v4389_v5  ;;  %v4454_v18 = vld [vmem:[%s4355_s28 + $0x90] sm:$0xff]  ;;  %v4459_v19 = vld [vmem:[%s4355_s28 + $0x98] sm:$0xff]  ;;  %v4464_v20 = vld [vmem:[%s4355_s28 + $0xa0] sm:$0xff]  ;;  %v322_v47 = vpack.c.bf16 %v4439_v15, %v4439_v15  ;;  %v323_v48 = vpack.c.bf16 %v4444_v16, %v4444_v16  ;;  %v324_v49 = vpack.c.bf16 %v4449_v17, %v4449_v17 }
  0x1c   : > { %281 = vst.msk [vmem:[#allocation2 + $0x30] sm:$0xff] %vm274_vm0, %v4394_v6  ;;  %v4469_v21 = vld [vmem:[%s4355_s28 + $0xa8] sm:$0xff]  ;;  %v4474_v22 = vld [vmem:[%s4355_s28 + $0xb0] sm:$0xff]  ;;  %v4479_v23 = vld [vmem:[%s4355_s28 + $0xb8] sm:$0xff]  ;;  %v325_v50 = vpack.c.bf16 %v4454_v18, %v4454_v18  ;;  %v326_v51 = vpack.c.bf16 %v4459_v19, %v4459_v19  ;;  %v327_v52 = vpack.c.bf16 %v4464_v20, %v4464_v20 }
  0x1d   : > { %282 = vst.msk [vmem:[#allocation2 + $0x38] sm:$0xff] %vm274_vm0, %v4399_v7  ;;  %v4484_v24 = vld [vmem:[%s4355_s28 + $0xc0] sm:$0xff]  ;;  %v4489_v25 = vld [vmem:[%s4355_s28 + $0xc8] sm:$0xff]  ;;  %v4494_v26 = vld [vmem:[%s4355_s28 + $0xd0] sm:$0xff]  ;;  %v328_v53 = vpack.c.bf16 %v4469_v21, %v4469_v21  ;;  %v329_v54 = vpack.c.bf16 %v4474_v22, %v4474_v22  ;;  %v330_v55 = vpack.c.bf16 %v4479_v23, %v4479_v23 }
  0x1e   : > { %283 = vst.msk [vmem:[#allocation2 + $0x40] sm:$0xff] %vm274_vm0, %v4404_v8  ;;  %v4499_v27 = vld [vmem:[%s4355_s28 + $0xd8] sm:$0xff]  ;;  %v4504_v28 = vld [vmem:[%s4355_s28 + $0xe0] sm:$0xff]  ;;  %v4509_v29 = vld [vmem:[%s4355_s28 + $0xe8] sm:$0xff]  ;;  %v331_v56 = vpack.c.bf16 %v4484_v24, %v4484_v24  ;;  %v332_v57 = vpack.c.bf16 %v4489_v25, %v4489_v25  ;;  %v333_v58 = vpack.c.bf16 %v4494_v26, %v4494_v26 }
  0x1f   : > { %284 = vst.msk [vmem:[#allocation2 + $0x48] sm:$0xff] %vm274_vm0, %v4409_v9  ;;  %v4516_v31 = vld [vmem:[%s4355_s28 + $0xf0] sm:$0xff]  ;;  %v4523_v33 = vld [vmem:[%s4355_s28 + $0xf8] sm:$0xff]  ;;  %v334_v59 = vpack.c.bf16 %v4499_v27, %v4499_v27  ;;  %v335_v60 = vpack.c.bf16 %v4504_v28, %v4504_v28  ;;  %v336_v61 = vpack.c.bf16 %v4509_v29, %v4509_v29 }
  0x20   : > { %285 = vst.msk [vmem:[#allocation2 + $0x50] sm:$0xff] %vm274_vm0, %v4414_v10  ;;  %v337_v62 = vpack.c.bf16 %v4516_v31, %v4516_v31  ;;  %v338_v63 = vpack.c.bf16 %v4523_v33, %v4523_v33 }
  0x21   : > { %286 = vst.msk [vmem:[#allocation2 + $0x58] sm:$0xff] %vm274_vm0, %v4419_v11 }
  0x22   : > { %287 = vst.msk [vmem:[#allocation2 + $0x60] sm:$0xff] %vm274_vm0, %v4424_v12 }
  0x23   : > { %288 = vst.msk [vmem:[#allocation2 + $0x68] sm:$0xff] %vm274_vm0, %v4429_v13 }
  0x24   : > { %289 = vst.msk [vmem:[#allocation2 + $0x70] sm:$0xff] %vm274_vm0, %v4434_v14 }
  0x25   : > { %290 = vst.msk [vmem:[#allocation2 + $0x78] sm:$0xff] %vm274_vm0, %v4439_v15 }
  0x26   : > { %291 = vst.msk [vmem:[#allocation2 + $0x80] sm:$0xff] %vm274_vm0, %v4444_v16 }
  0x27   : > { %292 = vst.msk [vmem:[#allocation2 + $0x88] sm:$0xff] %vm274_vm0, %v4449_v17 }
  0x28   : > { %293 = vst.msk [vmem:[#allocation2 + $0x90] sm:$0xff] %vm274_vm0, %v4454_v18 }
  0x29   : > { %294 = vst.msk [vmem:[#allocation2 + $0x98] sm:$0xff] %vm274_vm0, %v4459_v19 }
  0x2a   : > { %295 = vst.msk [vmem:[#allocation2 + $0xa0] sm:$0xff] %vm274_vm0, %v4464_v20 }
  0x2b   : > { %296 = vst.msk [vmem:[#allocation2 + $0xa8] sm:$0xff] %vm274_vm0, %v4469_v21 }
  0x2c   : > { %297 = vst.msk [vmem:[#allocation2 + $0xb0] sm:$0xff] %vm274_vm0, %v4474_v22 }
  0x2d   : > { %298 = vst.msk [vmem:[#allocation2 + $0xb8] sm:$0xff] %vm274_vm0, %v4479_v23 }
  0x2e   : > { %299 = vst.msk [vmem:[#allocation2 + $0xc0] sm:$0xff] %vm274_vm0, %v4484_v24 }
  0x2f   : > { %300 = vst.msk [vmem:[#allocation2 + $0xc8] sm:$0xff] %vm274_vm0, %v4489_v25 }
  0x30   : > { %301 = vst.msk [vmem:[#allocation2 + $0xd0] sm:$0xff] %vm274_vm0, %v4494_v26 }
  0x31   : > { %302 = vst.msk [vmem:[#allocation2 + $0xd8] sm:$0xff] %vm274_vm0, %v4499_v27 }
  0x32   : > { %303 = vst.msk [vmem:[#allocation2 + $0xe0] sm:$0xff] %vm274_vm0, %v4504_v28 }
  0x33   : > { %304 = vst.msk [vmem:[#allocation2 + $0xe8] sm:$0xff] %vm274_vm0, %v4509_v29 }
  0x34   : > { %305 = vst.msk [vmem:[#allocation2 + $0xf0] sm:$0xff] %vm274_vm0, %v4516_v31 }
  0x35   : > { %306 = vst.msk [vmem:[#allocation2 + $0xf8] sm:$0xff] %vm274_vm0, %v4523_v33 }
  0x36   : > { %340 = vst.msk [vmem:[#allocation3] sm:$0xf] %vm339_vm1, %v307_v30 }
  0x37   : > { %341 = vst.msk [vmem:[#allocation3 + $0x4] sm:$0xf] %vm339_vm1, %v308_v32 }
  0x38   : > { %342 = vst.msk [vmem:[#allocation3 + $0x8] sm:$0xf] %vm339_vm1, %v309_v34 }
  0x39   : > { %343 = vst.msk [vmem:[#allocation3 + $0xc] sm:$0xf] %vm339_vm1, %v310_v35 }
  0x3a   : > { %344 = vst.msk [vmem:[#allocation3 + $0x10] sm:$0xf] %vm339_vm1, %v311_v36 }
  0x3b   : > { %345 = vst.msk [vmem:[#allocation3 + $0x14] sm:$0xf] %vm339_vm1, %v312_v37 }
  0x3c   : > { %346 = vst.msk [vmem:[#allocation3 + $0x18] sm:$0xf] %vm339_vm1, %v313_v38 }
  0x3d   : > { %347 = vst.msk [vmem:[#allocation3 + $0x1c] sm:$0xf] %vm339_vm1, %v314_v39 }
  0x3e   : > { %348 = vst.msk [vmem:[#allocation3 + $0x20] sm:$0xf] %vm339_vm1, %v315_v40 }
  0x3f   : > { %349 = vst.msk [vmem:[#allocation3 + $0x24] sm:$0xf] %vm339_vm1, %v316_v41 }
  0x40   : > { %350 = vst.msk [vmem:[#allocation3 + $0x28] sm:$0xf] %vm339_vm1, %v317_v42 }
  0x41   : > { %351 = vst.msk [vmem:[#allocation3 + $0x2c] sm:$0xf] %vm339_vm1, %v318_v43 }
  0x42   : > { %352 = vst.msk [vmem:[#allocation3 + $0x30] sm:$0xf] %vm339_vm1, %v319_v44 }
  0x43   : > { %353 = vst.msk [vmem:[#allocation3 + $0x34] sm:$0xf] %vm339_vm1, %v320_v45 }
  0x44   : > { %354 = vst.msk [vmem:[#allocation3 + $0x38] sm:$0xf] %vm339_vm1, %v321_v46 }
  0x45   : > { %355 = vst.msk [vmem:[#allocation3 + $0x3c] sm:$0xf] %vm339_vm1, %v322_v47 }
  0x46   : > { %356 = vst.msk [vmem:[#allocation3 + $0x40] sm:$0xf] %vm339_vm1, %v323_v48 }
  0x47   : > { %357 = vst.msk [vmem:[#allocation3 + $0x44] sm:$0xf] %vm339_vm1, %v324_v49 }
  0x48   : > { %358 = vst.msk [vmem:[#allocation3 + $0x48] sm:$0xf] %vm339_vm1, %v325_v50 }
  0x49   : > { %359 = vst.msk [vmem:[#allocation3 + $0x4c] sm:$0xf] %vm339_vm1, %v326_v51 }
  0x4a   : > { %360 = vst.msk [vmem:[#allocation3 + $0x50] sm:$0xf] %vm339_vm1, %v327_v52 }
  0x4b   : > { %361 = vst.msk [vmem:[#allocation3 + $0x54] sm:$0xf] %vm339_vm1, %v328_v53 }
  0x4c   : > { %362 = vst.msk [vmem:[#allocation3 + $0x58] sm:$0xf] %vm339_vm1, %v329_v54 }
  0x4d   : > { %363 = vst.msk [vmem:[#allocation3 + $0x5c] sm:$0xf] %vm339_vm1, %v330_v55 }
  0x4e   : > { %364 = vst.msk [vmem:[#allocation3 + $0x60] sm:$0xf] %vm339_vm1, %v331_v56 }
  0x4f   : > { %365 = vst.msk [vmem:[#allocation3 + $0x64] sm:$0xf] %vm339_vm1, %v332_v57 }
  0x50   : > { %366 = vst.msk [vmem:[#allocation3 + $0x68] sm:$0xf] %vm339_vm1, %v333_v58 }
  0x51   : > { %367 = vst.msk [vmem:[#allocation3 + $0x6c] sm:$0xf] %vm339_vm1, %v334_v59 }
  0x52   : > { %368 = vst.msk [vmem:[#allocation3 + $0x70] sm:$0xf] %vm339_vm1, %v335_v60 }
  0x53   : > { %369 = vst.msk [vmem:[#allocation3 + $0x74] sm:$0xf] %vm339_vm1, %v336_v61 }
  0x54   : > { %370 = vst.msk [vmem:[#allocation3 + $0x78] sm:$0xf] %vm339_vm1, %v337_v62 }
  0x55   : > { %371 = vst.msk [vmem:[#allocation3 + $0x7c] sm:$0xf] %vm339_vm1, %v338_v63 }
  0x56   : > { %373 = vst.msk [vmem:[#allocation4] sm:$0xf] %vm372_vm2, %v4281_v0 }
  0x57   : > { %374 = vst.msk [vmem:[#allocation4 + $0x4] sm:$0xf] %vm372_vm2, %v4281_v0 }
  0x58   : > { %377 = vst.msk [vmem:[#allocation4 + $0xc] sm:$0xf] %vm372_vm2, %v4281_v0 }
  0x59   : > { %378 = vst.msk [vmem:[#allocation4 + $0x10] sm:$0xf] %vm372_vm2, %v4281_v0 }
  0x5a   : > { %380 = vst.msk [vmem:[#allocation4 + $0x18] sm:$0xf] %vm372_vm2, %v4281_v0 }
  0x5b   : > { %381 = vst.msk [vmem:[#allocation4 + $0x1c] sm:$0xf] %vm372_vm2, %v4281_v0 }
  0x5c   : > { %383 = vst.msk [vmem:[#allocation4 + $0x24] sm:$0xf] %vm372_vm2, %v4281_v0 }
  0x5d   : > { %384 = vst.msk [vmem:[#allocation4 + $0x28] sm:$0xf] %vm372_vm2, %v4281_v0 }
  0x5e   : > { %386 = vst.msk [vmem:[#allocation4 + $0x30] sm:$0xf] %vm372_vm2, %v4281_v0 }
  0x5f   : > { %387 = vst.msk [vmem:[#allocation4 + $0x34] sm:$0xf] %vm372_vm2, %v4281_v0 }
  0x60   : > { %389 = vst.msk [vmem:[#allocation4 + $0x3c] sm:$0xf] %vm372_vm2, %v4281_v0 }
  0x61   : > { %390 = vst.msk [vmem:[#allocation4 + $0x40] sm:$0xf] %vm372_vm2, %v4281_v0 }
  0x62   : > { %392 = vst.msk [vmem:[#allocation4 + $0x48] sm:$0xf] %vm372_vm2, %v4281_v0 }
  0x63   : > { %393 = vst.msk [vmem:[#allocation4 + $0x4c] sm:$0xf] %vm372_vm2, %v4281_v0 }
  0x64   : > { %395 = vst.msk [vmem:[#allocation4 + $0x54] sm:$0xf] %vm372_vm2, %v4281_v0 }
  0x65   : > { %396 = vst.msk [vmem:[#allocation4 + $0x58] sm:$0xf] %vm372_vm2, %v4281_v0 }
  0x66   : > { %398 = vst.msk [vmem:[#allocation4 + $0x60] sm:$0xf] %vm372_vm2, %v4281_v0 }
  0x67   : > { %399 = vst.msk [vmem:[#allocation4 + $0x64] sm:$0xf] %vm372_vm2, %v4281_v0 }
  0x68   : > { %401 = vst.msk [vmem:[#allocation4 + $0x6c] sm:$0xf] %vm372_vm2, %v4281_v0 }
  0x69   : > { %402 = vst.msk [vmem:[#allocation4 + $0x70] sm:$0xf] %vm372_vm2, %v4281_v0 }
  0x6a   : > { %404 = vst.msk [vmem:[#allocation4 + $0x78] sm:$0xf] %vm372_vm2, %v4281_v0 }
  0x6b   : > { %405 = vst.msk [vmem:[#allocation4 + $0x7c] sm:$0xf] %vm372_vm2, %v4281_v0 }
  0x6c   : > { %407 = vst.msk [vmem:[#allocation4 + $0x84] sm:$0xf] %vm372_vm2, %v4281_v0 }
  0x6d   : > { %408 = vst.msk [vmem:[#allocation4 + $0x88] sm:$0xf] %vm372_vm2, %v4281_v0 }
  0x6e   : > { %410 = vst.msk [vmem:[#allocation4 + $0x90] sm:$0xf] %vm372_vm2, %v4281_v0 }
  0x6f   : > { %411 = vst.msk [vmem:[#allocation4 + $0x94] sm:$0xf] %vm372_vm2, %v4281_v0 }
  0x70   : > { %413 = vst.msk [vmem:[#allocation4 + $0x9c] sm:$0xf] %vm372_vm2, %v4281_v0 }
  0x71   : > { %414 = vst.msk [vmem:[#allocation4 + $0xa0] sm:$0xf] %vm372_vm2, %v4281_v0 }
  0x72   : > { %416 = vst.msk [vmem:[#allocation4 + $0xa8] sm:$0xf] %vm372_vm2, %v4281_v0 }
  0x73   : > { %417 = vst.msk [vmem:[#allocation4 + $0xac] sm:$0xf] %vm372_vm2, %v4281_v0 }
  0x74   : > { %419 = vst.msk [vmem:[#allocation4 + $0xb4] sm:$0xf] %vm372_vm2, %v4281_v0 }
  0x75   : > { %420 = vst.msk [vmem:[#allocation4 + $0xb8] sm:$0xf] %vm372_vm2, %v4281_v0 }
  0x76   : > { %422 = vst.msk [vmem:[#allocation4 + $0xc0] sm:$0xf] %vm372_vm2, %v4281_v0 }
  0x77   : > { %423 = vst.msk [vmem:[#allocation4 + $0xc4] sm:$0xf] %vm372_vm2, %v4281_v0 }
  0x78   : > { %425 = vst.msk [vmem:[#allocation4 + $0xcc] sm:$0xf] %vm372_vm2, %v4281_v0 }
  0x79   : > { %426 = vst.msk [vmem:[#allocation4 + $0xd0] sm:$0xf] %vm372_vm2, %v4281_v0 }
  0x7a   : > { %376 = vst.msk [vmem:[#allocation4 + $0x8] sm:$0x1] %vm375_vm3, %v4281_v0 }
  0x7b   : > { %379 = vst.msk [vmem:[#allocation4 + $0x14] sm:$0x1] %vm375_vm3, %v4281_v0 }
  0x7c   : > { %382 = vst.msk [vmem:[#allocation4 + $0x20] sm:$0x1] %vm375_vm3, %v4281_v0 }
  0x7d   : > { %385 = vst.msk [vmem:[#allocation4 + $0x2c] sm:$0x1] %vm375_vm3, %v4281_v0 }
  0x7e   : > { %388 = vst.msk [vmem:[#allocation4 + $0x38] sm:$0x1] %vm375_vm3, %v4281_v0 }
  0x7f   : > { %391 = vst.msk [vmem:[#allocation4 + $0x44] sm:$0x1] %vm375_vm3, %v4281_v0 }
  0x80   : > { %394 = vst.msk [vmem:[#allocation4 + $0x50] sm:$0x1] %vm375_vm3, %v4281_v0 }
  0x81   : > { %397 = vst.msk [vmem:[#allocation4 + $0x5c] sm:$0x1] %vm375_vm3, %v4281_v0 }
  0x82   : > { %400 = vst.msk [vmem:[#allocation4 + $0x68] sm:$0x1] %vm375_vm3, %v4281_v0 }
  0x83   : > { %403 = vst.msk [vmem:[#allocation4 + $0x74] sm:$0x1] %vm375_vm3, %v4281_v0 }
  0x84   : > { %406 = vst.msk [vmem:[#allocation4 + $0x80] sm:$0x1] %vm375_vm3, %v4281_v0 }
  0x85   : > { %409 = vst.msk [vmem:[#allocation4 + $0x8c] sm:$0x1] %vm375_vm3, %v4281_v0 }
  0x86   : > { %412 = vst.msk [vmem:[#allocation4 + $0x98] sm:$0x1] %vm375_vm3, %v4281_v0 }
  0x87   : > { %415 = vst.msk [vmem:[#allocation4 + $0xa4] sm:$0x1] %vm375_vm3, %v4281_v0 }
  0x88   : > { %418 = vst.msk [vmem:[#allocation4 + $0xb0] sm:$0x1] %vm375_vm3, %v4281_v0 }
  0x89   : > { %421 = vst.msk [vmem:[#allocation4 + $0xbc] sm:$0x1] %vm375_vm3, %v4281_v0 }
  0x8a   : > { %424 = vst.msk [vmem:[#allocation4 + $0xc8] sm:$0x1] %vm375_vm3, %v4281_v0 }
  0x8b   : > { %427 = vst.msk [vmem:[#allocation4 + $0xd4] sm:$0x1] %vm375_vm3, %v4281_v0 }
  0x8c PF: > { %s3911_s7 = sshll.u32 %s4263_s18, 3  ;;  %s4678_s10 = scalar_lea.vmem %s6218_s2, %s4263_s18  ;;  %v3895_v2 = vld [vmem:[#allocation3] sm:$0xff]  ;;  %v3904_v3 = vld [vmem:[#allocation3 + $0x48] sm:$0xff]  ;;  %vm588_vm4 = vcmask 130048   ;;  %v3905_v5 = vld [vmem:[#allocation3 + $0x50] sm:$0xff]  ;;  %vm1890_vm6 = vcmask 1046528  }
  0x8d   : > { %s494_s13 = scalar_lea.vmem %s6217_s1, %s3911_s7  ;;  %v3896_v4 = vld [vmem:[#allocation3 + $0x8] sm:$0xff]  ;;  %v3906_v6 = vld [vmem:[#allocation3 + $0x58] sm:$0xff]  ;;  %v3897_v7 = vld [vmem:[#allocation3 + $0x10] sm:$0xff]  ;;  %vm1617_vm5 = vsmask.f32 7424  ;;  %s4282_s14 = smov 8  }
  0x8e   : > { %v3912_v1 = vld [vmem:[%s494_s13] sm:$0xff]  ;;  %v3898_v8 = vld [vmem:[#allocation3 + $0x18] sm:$0xff]  ;;  %v1328_v11 = vld [vmem:[#allocation4 + $0x8] sm:$0x1]  ;;  %s4283_s15 = smov 16   ;;  %vm1178_vm8 = vcmask 60416   ;;  %s5314_s11 = scalar_lea.vmem %s6220_s4, %s4263_s18 }
  0x8f   : > { %644 = vmatpush.bf16.msra.mxu0 %v3912_v1  ;;  %4108 = vmatpush.bf16.msra.mxu3 %v3912_v1  ;;  %v3907_v9 = vld [vmem:[#allocation3 + $0x60] sm:$0xff]  ;;  %v3900_v12 = vld [vmem:[#allocation3 + $0x28] sm:$0xff]  ;;  %v1585_v13 = vunpack.c.l.b16 %v1328_v11  ;;  %v3901_v30 = vld [vmem:[#allocation3 + $0x30] sm:$0xff]  ;;  %vm1179_vm9 = vsmask.f32 7938  ;;  %vm1186_vm15 = vcmask 57344  }
  0x90   : > { %v3899_v10 = vld [vmem:[#allocation3 + $0x20] sm:$0xff]  ;;  %v3908_v29 = vld [vmem:[#allocation3 + $0x68] sm:$0xff]  ;;  %v3909_v32 = vld [vmem:[#allocation3 + $0x70] sm:$0xff]  ;;  %vm854_vm13 = vsmask.f32 256  ;;  %s4284_s16 = smov 24  }
  0x91   : > { %v3919_v14 = vld [vmem:[#allocation4] sm:$0xff]   ;;  %v1601_v15 = vpack.c.b16 %v1585_v13, %v1585_v13  ;;  %v3902_v35 = vld [vmem:[#allocation3 + $0x38] sm:$0xff]  ;;  %vm4708_vm11 = vmand %vm1178_vm8, %vm1179_vm9  ;;  %vm855_vm14 = vsmask.f32 4368  ;;  %s4285_s17 = smov 40   ;;  %s4286_s19 = smov 48  }
  0x92   : > { %3841 = vmatmul.msk.bf16.vlgmr.msra.gmra.mxu0 %vm588_vm4, %v3895_v2  ;;  %3850 = vmatmul.msk.bf16.vlgmr.msra.gmra.mxu3 %vm588_vm4, %v3904_v3  ;;  %v1621_v16 = vshll.u32 %v3919_v14, 16  ;;  %v1619_v17 = vshrl.u32 %v3919_v14, 16  ;;  %v4036_v20 = vld [vmem:[#allocation4] sm:$0xf0]  ;;  %v4037_v21 = vld [vmem:[#allocation4] sm:$0xe]  ;;  %vm4717_vm1 = vmor %vm854_vm13, %vm855_vm14 }
  0x93   : > { %v1626_v19 = vshll.u32 %v1601_v15, 16  ;;  %v4038_v24 = vor.u32 %v4037_v21, %v4036_v20  ;;  %v1892_v25 = vrot.slane %v1601_v15, 1  ;;  %v4700_v31 = vld [vmem:[%s4678_s10] ss:$0 sm:$0xff]  ;;  %v1181_v48 = vld [vmem:[#allocation4 + $0xc] sm:$0xf]  ;;  %vm4722_vm2 = vmand %vm1186_vm15, %vm854_vm13 }
  0x94   : > { %v1623_v18 = vrot.slane %v1621_v16, 1  ;;  %v1247_v63 = vld [vmem:[#allocation4 + $0x78] sm:$0xf]  ;;  %v3903_v15 = vld [vmem:[#allocation3 + $0x40] sm:$0xff]  ;;  %s4287_s25 = smov 64   ;;  %s4288_s26 = smov 32  }
  0x95   : > { %v1628_v23 = vrot.slane %v1626_v19, 1  ;;  %v1891_v27 = vrot.slane %v4038_v24, 1  ;;  %s4289_s27 = smov 56   ;;  %s3913_s28 = smul.u32 36, %s4263_s18 }
  0x96   : > { %v1624_v22 = vor.u32 %v1623_v18, %v1619_v17  ;;  %p3890_p7 = scmp.ne.s32.totalorder %s4263_s18, 1 }
  0x97   : > { %v1893_v28 = vsel %vm1890_vm6, %v1891_v27, %v1892_v25  ;;  %s5146_s7 = scalar_lea.vmem %s6219_s3, %s3913_s28 }
  0x98   : > { %v1629_v26 = vsel %vm1617_vm5, %v1624_v22, %v1628_v23  ;;  %1939 = vrot.lane.b32.xlu1 %v1893_v28, %s4283_s15 }
  0x99   : > { %1810 = vrot.lane.b32.xlu0 %v1629_v26, %s4282_s14  ;;  %v1251_v26 = vld [vmem:[#allocation4 + $0x80] sm:$0x1] }
  0xa2   : > { %3842 = vmatmul.msk.bf16.gmra.mxu0 %vm588_vm4, %v3896_v4  ;;  %3851 = vmatmul.msk.bf16.gmra.mxu3 %vm588_vm4, %v3905_v5 }
  0xb2   : > { %3852 = vmatmul.msk.bf16.gmra.mxu3 %vm588_vm4, %v3906_v6  ;;  %3843 = vmatmul.msk.bf16.gmra.mxu0 %vm588_vm4, %v3897_v7 }
  0xc2   : > { %3844 = vmatmul.msk.bf16.gmra.mxu0 %vm588_vm4, %v3898_v8  ;;  %3853 = vmatmul.msk.bf16.gmra.mxu3 %vm588_vm4, %v3907_v9  ;;  %v1188_v8 = vld [vmem:[#allocation4 + $0x14] sm:$0x1] }
  0xd2   : > { %3845 = vmatmul.msk.bf16.gmra.mxu0 %vm588_vm4, %v3899_v10  ;;  %3854 = vmatmul.msk.bf16.gmra.mxu3 %vm588_vm4, %v3908_v29 }
  0xe2   : > { %3846 = vmatmul.msk.bf16.gmra.mxu0 %vm588_vm4, %v3900_v12  ;;  %3855 = vmatmul.msk.bf16.gmra.mxu3 %vm588_vm4, %v3909_v32 }
  0xf2   : > { %3847 = vmatmul.msk.bf16.gmra.mxu0 %vm588_vm4, %v3901_v30 }
 0x102   : > { %3848 = vmatmul.msk.bf16.gmra.mxu0 %vm588_vm4, %v3902_v35 }
 0x10f   : > { %v646_v33 = vpop.f32.mrf.mxu0 }
 0x110   : > { %v647_v34 = vadd.f32 %v4700_v31, %v646_v33 }
 0x112   : > { %vm726_vm7 = vcmp.gt.f32.partialorder %v647_v34, 0.0  ;;  %v758_v36 = vmul.f32 0.1, %v647_v34  ;;  %3849 = vmatmul.msk.bf16.gmra.mxu0 %vm588_vm4, %v3903_v15 }
 0x114   : > { %v790_v37 = vsel %vm726_vm7, %v647_v34, %v758_v36 }
 0x115   : > { %v822_v38 = vpack.c.bf16 %v790_v37, %v790_v37  ;;  %v691_v39 = vpop.f32.mrf.mxu3 }
 0x116   : > { %v692_v40 = vadd.f32 %v4700_v31, %v691_v39 }
 0x117   : > { %v858_v41 = vshrl.u32 %v822_v38, 16  ;;  %v648_v42 = vpop.f32.mrf.mxu0  ;;  %v861_v46 = vshll.u32 %v822_v38, 16 }
 0x118   : > { %vm744_vm10 = vcmp.gt.f32.partialorder %v692_v40, 0.0  ;;  %v776_v43 = vmul.f32 0.1, %v692_v40  ;;  %v649_v44 = vadd.f32 %v4700_v31, %v648_v42 }
 0x119   : > { %v860_v45 = vrot.slane %v858_v41, 7 }
 0x11a   : > { %v808_v49 = vsel %vm744_vm10, %v692_v40, %v776_v43  ;;  %vm727_vm12 = vcmp.gt.f32.partialorder %v649_v44, 0.0  ;;  %v759_v50 = vmul.f32 0.1, %v649_v44  ;;  %v1191_v40 = vld [vmem:[#allocation4 + $0x18] sm:$0xf] }
 0x11b   : > { %v863_v51 = vor.u32 %v861_v46, %v860_v45  ;;  %v840_v52 = vpack.c.bf16 %v808_v49, %v808_v49  ;;  %v864_v6 = vrot.slane %v860_v45, 4 }
 0x11c   : > { %v791_v53 = vsel %vm727_vm12, %v649_v44, %v759_v50 }
 0x11d   : > { %v1182_v54 = vsel %vm4708_vm11, %v863_v51, %v1181_v48  ;;  %v1011_v55 = vshrl.u32 %v840_v52, 16  ;;  %v1014_v56 = vshll.u32 %v840_v52, 16  ;;  %v823_v57 = vpack.c.bf16 %v791_v53, %v791_v53  ;;  %v693_v58 = vpop.f32.mrf.mxu3 }
 0x11e   : > { %1183 = vst [vmem:[#allocation4 + $0xc] sm:$0xf] %v1182_v54  ;;  %v694_v59 = vadd.f32 %v4700_v31, %v693_v58 }
 0x11f   : > { %v1013_v60 = vrot.slane %v1011_v55, 7  ;;  %v866_v61 = vshrl.u32 %v823_v57, 16  ;;  %v651_v62 = vpop.f32.mrf.mxu0  ;;  %v869_v5 = vshll.u32 %v823_v57, 16 }
 0x120   : > { %vm745_vm0 = vcmp.gt.f32.partialorder %v694_v59, 0.0  ;;  %v777_v0 = vmul.f32 0.1, %v694_v59  ;;  %v652_v1 = vadd.f32 %v4700_v31, %v651_v62 }
 0x121   : > { %v1016_v2 = vor.u32 %v1014_v56, %v1013_v60  ;;  %v868_v4 = vrot.slane %v866_v61, 7  ;;  %v1017_v30 = vrot.slane %v1013_v60, 4 }
 0x122   : > { %v809_v9 = vsel %vm745_vm0, %v694_v59, %v777_v0  ;;  %vm728_vm3 = vcmp.gt.f32.partialorder %v652_v1, 0.0  ;;  %v760_v10 = vmul.f32 0.1, %v652_v1 }
 0x123   : > { %v1248_v11 = vsel %vm4708_vm11, %v1016_v2, %v1247_v63  ;;  %v871_v12 = vor.u32 %v869_v5, %v868_v4  ;;  %v873_v13 = vrot.slane %v868_v4, 4  ;;  %v841_v14 = vpack.c.bf16 %v809_v9, %v809_v9  ;;  %v1195_v63 = vld [vmem:[#allocation4 + $0x20] sm:$0x1] }
 0x124   : > { %1249 = vst [vmem:[#allocation4 + $0x78] sm:$0xf] %v1248_v11  ;;  %v792_v16 = vsel %vm728_vm3, %v652_v1, %v760_v10 }
 0x125   : > { %v872_v17 = vsel %vm4717_vm1, %v864_v6, %v871_v12  ;;  %v1189_v18 = vsel %vm4722_vm2, %v873_v13, %v1188_v8  ;;  %v1019_v19 = vshrl.u32 %v841_v14, 16  ;;  %v696_v20 = vpop.f32.mrf.mxu3  ;;  %v824_v21 = vpack.c.bf16 %v792_v16, %v792_v16  ;;  %v4176_v37 = vld [vmem:[#allocation4 + $0xc] sm:$0xe] }
 0x126   : > { %1185 = vst.msk [vmem:[#allocation4 + $0x10] sm:$0xf] %vm1178_vm8, %v872_v17  ;;  %v697_v22 = vadd.f32 %v4700_v31, %v696_v20  ;;  %v1022_v24 = vshll.u32 %v841_v14, 16 }
 0x127   : > { %1190 = vst [vmem:[#allocation4 + $0x14] sm:$0x1] %v1189_v18  ;;  %v1021_v23 = vrot.slane %v1019_v19, 7  ;;  %v653_v25 = vpop.f32.mrf.mxu0  ;;  %v875_v27 = vshrl.u32 %v824_v21, 16  ;;  %v878_v28 = vshll.u32 %v824_v21, 16 }
 0x128   : > { %v654_v29 = vadd.f32 %v4700_v31, %v653_v25  ;;  %vm746_vm7 = vcmp.gt.f32.partialorder %v697_v22, 0.0  ;;  %v778_v34 = vmul.f32 0.1, %v697_v22  ;;  %v1254_v19 = vld [vmem:[#allocation4 + $0x84] sm:$0xf] }
 0x129   : > { %v1024_v32 = vor.u32 %v1022_v24, %v1021_v23  ;;  %v1026_v33 = vrot.slane %v1021_v23, 4  ;;  %v877_v35 = vrot.slane %v875_v27, 7 }
 0x12a   : > { %vm729_vm9 = vcmp.gt.f32.partialorder %v654_v29, 0.0  ;;  %v761_v36 = vmul.f32 0.1, %v654_v29  ;;  %v810_v41 = vsel %vm746_vm7, %v697_v22, %v778_v34 }
 0x12b   : > { %v1025_v38 = vsel %vm4717_vm1, %v1017_v30, %v1024_v32  ;;  %v1252_v39 = vsel %vm4722_vm2, %v1026_v33, %v1251_v26  ;;  %v880_v42 = vor.u32 %v878_v28, %v877_v35  ;;  %v842_v44 = vpack.c.bf16 %v810_v41, %v810_v41  ;;  %v4097_v17 = vld [vmem:[#allocation4 + $0x78] sm:$0xe] }
 0x12c   : > { %1250 = vst.msk [vmem:[#allocation4 + $0x7c] sm:$0xf] %vm1178_vm8, %v1025_v38  ;;  %v793_v43 = vsel %vm729_vm9, %v654_v29, %v761_v36  ;;  %v881_v60 = vrot.slane %v877_v35, 4 }
 0x12d   : > { %1253 = vst [vmem:[#allocation4 + $0x80] sm:$0x1] %v1252_v39  ;;  %v825_v45 = vpack.c.bf16 %v793_v43, %v793_v43  ;;  %v4741_v46 = vld [vmem:[#allocation4 + $0xc] sm:$0xff]   ;;  %v1192_v51 = vsel %vm4708_vm11, %v880_v42, %v1191_v40  ;;  %v1028_v59 = vshrl.u32 %v842_v44, 16  ;;  %v1031_v4 = vshll.u32 %v842_v44, 16  ;;  %v698_v23 = vpop.f32.mrf.mxu3 }
 0x12e   : > { %v4175_v48 = vld [vmem:[#allocation4 + $0xc] sm:$0xf0]  ;;  %v1392_v52 = vld [vmem:[#allocation4 + $0x14] sm:$0x1]  ;;  %1193 = vst [vmem:[#allocation4 + $0x18] sm:$0xf] %v1192_v51  ;;  %2051 = vrot.lane.b32.xlu2 %v4741_v46, %s4284_s16  ;;  %v699_v38 = vadd.f32 %v4700_v31, %v698_v23 }
 0x12f   : > { %v4743_v49 = vld [vmem:[#allocation4 + $0xc] sm:$0xff]   ;;  %v1329_v53 = vld [vmem:[#allocation4 + $0x14] sm:$0x1]  ;;  %v883_v54 = vshrl.u32 %v825_v45, 16  ;;  %v886_v55 = vshll.u32 %v825_v45, 16  ;;  %v2099_v56 = vunpack.c.l.b16 %v1392_v52  ;;  %v4177_v57 = vor.u32 %v4176_v37, %v4175_v48  ;;  %v656_v44 = vpop.f32.mrf.mxu0 }
 0x130   : > { %v4745_v50 = vld [vmem:[#allocation4 + $0xc] sm:$0xf0]  ;;  %v1586_v58 = vunpack.c.l.b16 %v1329_v53  ;;  %v2134_v0 = vshll.u32 %v4741_v46, 16  ;;  %v4757_v9 = vrot.slane %v1028_v59, 7  ;;  %v1633_v10 = vshll.u32 %v4743_v49, 16 }
 0x131   : > { %v885_v61 = vrot.slane %v883_v54, 7  ;;  %v4749_v62 = vpack.c.b16 %v2099_v56, %v2099_v56  ;;  %v2403_v1 = vrot.slane %v4177_v57, 1  ;;  %v1631_v20 = vshrl.u32 %v4743_v49, 16  ;;  %v4179_v39 = vld [vmem:[#allocation4 + $0xc] sm:$0xe] }
 0x132   : > { %v4754_v2 = vpack.c.b16 %v1586_v58, %v1586_v58  ;;  %v1635_v21 = vrot.slane %v1633_v10, 1  ;;  %v1033_v27 = vor.u32 %v1031_v4, %v4757_v9  ;;  %v2136_v36 = vrot.slane %v2134_v0, 1  ;;  %v4073_v54 = vld [vmem:[#allocation4 + $0x78] sm:$0xe] }
 0x133   : > { %v888_v5 = vor.u32 %v886_v55, %v885_v61  ;;  %v890_v6 = vrot.slane %v885_v61, 4  ;;  %v2404_v8 = vrot.slane %v4749_v62, 1  ;;  %v4096_v12 = vld [vmem:[#allocation4 + $0x78] sm:$0xf0]  ;;  %v2132_v41 = vshrl.u32 %v4741_v46, 16 }
 0x134   : > { %v1638_v11 = vshll.u32 %v4754_v2, 16  ;;  %v1465_v13 = vld [vmem:[#allocation4 + $0x80] sm:$0x1]  ;;  %v4032_v24 = vld [vmem:[#allocation4 + $0x78] sm:$0xff]   ;;  %v4098_v26 = vor.u32 %v4097_v17, %v4096_v12  ;;  %v1636_v28 = vor.u32 %v1635_v21, %v1631_v20  ;;  %v1255_v32 = vsel %vm4708_vm11, %v1033_v27, %v1254_v19 }
 0x135   : > { %v889_v14 = vsel %vm4717_vm1, %v881_v60, %v888_v5  ;;  %v1196_v15 = vsel %vm4722_vm2, %v890_v6, %v1195_v63  ;;  %v2405_v16 = vsel %vm1890_vm6, %v2403_v1, %v2404_v8  ;;  %v2619_v18 = vunpack.c.l.b16 %v1465_v13  ;;  %v1401_v22 = vld [vmem:[#allocation4 + $0x80] sm:$0x1]  ;;  %1256 = vst [vmem:[#allocation4 + $0x84] sm:$0xf] %v1255_v32  ;;  %v4072_v43 = vld [vmem:[#allocation4 + $0x78] sm:$0xf0]  ;;  %v701_v56 = vpop.f32.mrf.mxu3 }
 0x136   : > { %1194 = vst.msk [vmem:[#allocation4 + $0x1c] sm:$0xf] %vm1178_vm8, %v889_v14  ;;  %2451 = vrot.lane.b32.xlu1 %v2405_v16, %s4285_s17  ;;  %v1640_v29 = vrot.slane %v1638_v11, 1  ;;  %v2108_v33 = vunpack.c.l.b16 %v1401_v22  ;;  %v2742_v35 = vshll.u32 %v4032_v24, 16  ;;  %2579 = vrot.lane.b32.xlu2 %v4032_v24, %s4286_s19  ;;  %v2939_v37 = vrot.slane %v4098_v26, 1 }
 0x137   : > { %1197 = vst [vmem:[#allocation4 + $0x20] sm:$0x1] %v1196_v15  ;;  %v2635_v25 = vpack.c.b16 %v2619_v18, %v2619_v18  ;;  %v1338_v40 = vld [vmem:[#allocation4 + $0x80] sm:$0x1]  ;;  %v2139_v42 = vshll.u32 %v4749_v62, 16  ;;  %vm747_vm10 = vcmp.gt.f32.partialorder %v699_v38, 0.0  ;;  %v2137_v53 = vor.u32 %v2136_v36, %v2132_v41 }
 0x138   : > { %v1641_v34 = vsel %vm1617_vm5, %v1636_v28, %v1640_v29  ;;  %v4779_v48 = vpack.c.b16 %v2108_v33, %v2108_v33  ;;  %v779_v51 = vmul.f32 0.1, %v699_v38  ;;  %v2744_v52 = vrot.slane %v2742_v35, 1  ;;  %v4051_v13 = vld [vmem:[#allocation4 + $0x78] sm:$0xf0] }
 0x139   : > { %v2940_v30 = vrot.slane %v2635_v25, 1  ;;  %1812 = vrot.lane.b32.xlu0 %v1641_v34, %s4282_s14  ;;  %v1595_v55 = vunpack.c.l.b16 %v1338_v40  ;;  %v4074_v57 = vor.u32 %v4073_v54, %v4072_v43  ;;  %v2747_v58 = vshll.u32 %v2635_v25, 16  ;;  %v1258_v16 = vld [vmem:[#allocation4 + $0x8c] sm:$0x1]  ;;  %v4085_v29 = vld [vmem:[#allocation4 + $0x18] sm:$0xe] }
 0x13a   : > { %v811_v46 = vsel %vm747_vm10, %v699_v38, %v779_v51  ;;  %v702_v59 = vadd.f32 %v4700_v31, %v701_v56  ;;  %v2740_v60 = vshrl.u32 %v4032_v24, 16  ;;  %v2141_v61 = vrot.slane %v2139_v42, 1  ;;  %v1261_v32 = vld [vmem:[#allocation4 + $0x90] sm:$0xf]  ;;  %v4040_v41 = vld [vmem:[#allocation4 + $0x18] sm:$0xe] }
 0x13b   : > { %v2941_v45 = vsel %vm1890_vm6, %v2939_v37, %v2940_v30  ;;  %v843_v62 = vpack.c.bf16 %v811_v46, %v811_v46  ;;  %v4180_v63 = vor.u32 %v4179_v39, %v4745_v50  ;;  %v2431_v0 = vrot.slane %v4779_v48, 1 }
 0x13c   : > { %v4785_v1 = vpack.c.b16 %v1595_v55, %v1595_v55  ;;  %vm748_vm12 = vcmp.gt.f32.partialorder %v702_v59, 0.0  ;;  %v780_v4 = vmul.f32 0.1, %v702_v59  ;;  %v1034_v5 = vrot.slane %v4757_v9, 4 }
 0x13d   : > { %v2142_v6 = vsel %vm1617_vm5, %v2137_v53, %v2141_v61  ;;  %v1036_v8 = vshrl.u32 %v843_v62, 16  ;;  %v1039_v10 = vshll.u32 %v843_v62, 16  ;;  %v4790_v11 = vor.u32 %v2744_v52, %v2740_v60  ;;  %v4084_v40 = vld [vmem:[#allocation4 + $0x18] sm:$0xf0]  ;;  %v703_v42 = vpop.f32.mrf.mxu3 }
 0x13e   : > { %2979 = vrot.lane.b32.xlu1 %v2941_v45, %s4287_s25  ;;  %2069 = vrot.lane.b32.xlu2 %v4032_v24, %s4284_s16  ;;  %v2430_v50 = vrot.slane %v4074_v57, 1  ;;  %v2749_v12 = vrot.slane %v2747_v58, 1  ;;  %v812_v14 = vsel %vm748_vm12, %v702_v59, %v780_v4  ;;  %v1895_v17 = vrot.slane %v4754_v2, 1  ;;  %v1457_v18 = vld [vmem:[#allocation4 + $0x20] sm:$0x1]  ;;  %v658_v2 = vpop.f32.mrf.mxu0  ;;  %v4812_v56 = vld [vmem:[#allocation4 + $0x18] sm:$0xff]  }
 0x13f   : > { %v1038_v15 = vrot.slane %v1036_v8, 7  ;;  %v844_v9 = vpack.c.bf16 %v812_v14, %v812_v14  ;;  %v657_v19 = vadd.f32 %v4700_v31, %v656_v44  ;;  %v1894_v21 = vrot.slane %v4180_v63, 1  ;;  %v4052_v24 = vld [vmem:[#allocation4 + $0x78] sm:$0xe]  ;;  %v1330_v35 = vld [vmem:[#allocation4 + $0x20] sm:$0x1] }
 0x140   : > { %v2432_v20 = vsel %vm1890_vm6, %v2430_v50, %v2431_v0  ;;  %v1746_v22 = vshll.u32 %v4785_v1, 16  ;;  %v2247_v23 = vshll.u32 %v4779_v48, 16  ;;  %v4053_v27 = vor.u32 %v4052_v24, %v4051_v13  ;;  %v4039_v51 = vld [vmem:[#allocation4 + $0x18] sm:$0xf0] }
 0x141   : > { %2323 = vrot.lane.b32.xlu0 %v2142_v6, %s4288_s26  ;;  %v1041_v25 = vor.u32 %v1039_v10, %v1038_v15  ;;  %v1043_v26 = vrot.slane %v1038_v15, 4  ;;  %v1045_v28 = vshrl.u32 %v844_v9, 16  ;;  %v1048_v30 = vshll.u32 %v844_v9, 16  ;;  %v1393_v10 = vld [vmem:[#allocation4 + $0x20] sm:$0x1] }
 0x142   : > { %v2611_v33 = vunpack.c.l.b16 %v1457_v18  ;;  %vm730_vm13 = vcmp.gt.f32.partialorder %v657_v19, 0.0  ;;  %v762_v34 = vmul.f32 0.1, %v657_v19  ;;  %v2750_v38 = vsel %vm1617_vm5, %v4790_v11, %v2749_v12  ;;  %v1198_v15 = vld [vmem:[#allocation4 + $0x24] sm:$0xf] }
 0x143   : > { %v1042_v36 = vsel %vm4717_vm1, %v1034_v5, %v1041_v25  ;;  %v1259_v37 = vsel %vm4722_vm2, %v1043_v26, %v1258_v16  ;;  %v4805_v39 = vrot.slane %v1045_v28, 7  ;;  %v1896_v43 = vsel %vm1890_vm6, %v1894_v21, %v1895_v17  ;;  %v4060_v21 = vld [vmem:[#allocation4 + $0x18] sm:$0xf0] }
 0x144   : > { %1257 = vst.msk [vmem:[#allocation4 + $0x88] sm:$0xf] %vm1178_vm8, %v1042_v36  ;;  %v1748_v44 = vrot.slane %v1746_v22, 1  ;;  %v2249_v45 = vrot.slane %v2247_v23, 1  ;;  %v794_v48 = vsel %vm730_vm13, %v657_v19, %v762_v34  ;;  %v1922_v52 = vrot.slane %v4785_v1, 1 }
 0x145   : > { %1260 = vst [vmem:[#allocation4 + $0x8c] sm:$0x1] %v1259_v37  ;;  %v1050_v53 = vor.u32 %v1048_v30, %v4805_v39  ;;  %v826_v54 = vpack.c.bf16 %v794_v48, %v794_v48  ;;  %v1587_v55 = vunpack.c.l.b16 %v1330_v35  ;;  %v1921_v57 = vrot.slane %v4053_v27, 1  ;;  %v4061_v22 = vld [vmem:[#allocation4 + $0x18] sm:$0xe] }
 0x146   : > { %2469 = vrot.lane.b32.xlu1 %v2432_v20, %s4285_s17  ;;  %1941 = vrot.lane.b32.xlu2 %v1896_v43, %s4283_s15  ;;  %v4815_v46 = vpack.c.b16 %v2611_v33, %v2611_v33  ;;  %v4086_v58 = vor.u32 %v4085_v29, %v4084_v40  ;;  %v704_v59 = vadd.f32 %v4700_v31, %v703_v42  ;;  %v2646_v1 = vshll.u32 %v4812_v56, 16  ;;  %v661_v12 = vpop.f32.mrf.mxu0  ;;  %v4841_v37 = vld [vmem:[#allocation4 + $0x84] sm:$0xe]  ;;  %v1265_v40 = vld [vmem:[#allocation4 + $0x98] sm:$0x1] }
 0x147   : > { %v1262_v60 = vsel %vm4708_vm11, %v1050_v53, %v1261_v32  ;;  %v892_v61 = vshrl.u32 %v826_v54, 16  ;;  %v895_v62 = vshll.u32 %v826_v54, 16  ;;  %v4041_v63 = vor.u32 %v4040_v41, %v4039_v51 }
 0x148   : > { %v1749_v0 = vsel %vm1617_vm5, %v4790_v11, %v1748_v44  ;;  %1263 = vst [vmem:[#allocation4 + $0x90] sm:$0xf] %v1262_v60  ;;  %vm749_vm14 = vcmp.gt.f32.partialorder %v704_v59, 0.0  ;;  %v781_v4 = vmul.f32 0.1, %v704_v59  ;;  %v1923_v5 = vsel %vm1890_vm6, %v1921_v57, %v1922_v52 }
 0x149   : > { %2851 = vrot.lane.b32.xlu0 %v2750_v38, %s4289_s27  ;;  %v4825_v6 = vrot.slane %v892_v61, 7  ;;  %v1603_v8 = vpack.c.b16 %v1587_v55, %v1587_v55  ;;  %v659_v50 = vadd.f32 %v4700_v31, %v658_v2  ;;  %v2915_v13 = vrot.slane %v4086_v58, 1 }
 0x14a   : > { %v2916_v14 = vrot.slane %v4815_v46, 1  ;;  %v2644_v16 = vshrl.u32 %v4812_v56, 16  ;;  %v813_v17 = vsel %vm749_vm14, %v704_v59, %v781_v4  ;;  %v1897_v18 = vrot.slane %v4041_v63, 1  ;;  %v4182_v59 = vld [vmem:[#allocation4 + $0x84] sm:$0xe] }
 0x14b   : > { %v897_v9 = vor.u32 %v895_v62, %v4825_v6  ;;  %v1898_v19 = vrot.slane %v1603_v8, 1  ;;  %v845_v20 = vpack.c.bf16 %v813_v17, %v813_v17  ;;  %v2648_v23 = vrot.slane %v2646_v1, 1  ;;  %v4847_v51 = vld [vmem:[#allocation4 + $0x84] sm:$0xff]  }
 0x14c   : > { %v2100_v24 = vunpack.c.l.b16 %v1393_v10  ;;  %vm731_vm15 = vcmp.gt.f32.partialorder %v659_v50, 0.0  ;;  %v763_v25 = vmul.f32 0.1, %v659_v50  ;;  %v2250_v26 = vsel %vm1617_vm5, %v4790_v11, %v2249_v45  ;;  %v4252_v52 = vld [vmem:[#allocation4 + $0x84] sm:$0xf0] }
 0x14d   : > { %v1199_v27 = vsel %vm4708_vm11, %v897_v9, %v1198_v15  ;;  %v1053_v28 = vshrl.u32 %v845_v20, 16  ;;  %v1056_v29 = vshll.u32 %v845_v20, 16  ;;  %v1051_v2 = vrot.slane %v4805_v39, 4  ;;  %v1466_v58 = vld [vmem:[#allocation4 + $0x8c] sm:$0x1]  ;;  %v4861_v15 = vld [vmem:[#allocation4 + $0x84] sm:$0xff]  }
 0x14e   : > { %1830 = vrot.lane.b32.xlu1 %v1749_v0, %s4282_s14  ;;  %1959 = vrot.lane.b32.xlu2 %v1923_v5, %s4283_s15  ;;  %v2917_v30 = vsel %vm1890_vm6, %v2915_v13, %v2916_v14  ;;  %1200 = vst [vmem:[#allocation4 + $0x24] sm:$0xf] %v1199_v27  ;;  %v4062_v32 = vor.u32 %v4061_v22, %v4060_v21  ;;  %v2651_v36 = vshll.u32 %v4815_v46, 16  ;;  %v1650_v42 = vshll.u32 %v1603_v8, 16  ;;  %v663_v53 = vpop.f32.mrf.mxu0  ;;  %v1202_v46 = vld [vmem:[#allocation4 + $0x2c] sm:$0x1] }
 0x14f   : > { %v795_v33 = vsel %vm731_vm15, %v659_v50, %v763_v25  ;;  %v1899_v34 = vsel %vm1890_vm6, %v1897_v18, %v1898_v19  ;;  %v1055_v35 = vrot.slane %v1053_v28, 7  ;;  %v4843_v38 = vor.u32 %v2648_v23, %v2644_v16  ;;  %v4854_v0 = vld [vmem:[#allocation4 + $0x84] sm:$0xff]   ;;  %v1402_v4 = vld [vmem:[#allocation4 + $0x8c] sm:$0x1] }
 0x150   : > { %v827_v11 = vpack.c.bf16 %v795_v33, %v795_v33  ;;  %v2116_v41 = vpack.c.b16 %v2100_v24, %v2100_v24  ;;  %v662_v39 = vadd.f32 %v4700_v31, %v661_v12  ;;  %v898_v54 = vrot.slane %v4825_v6, 4  ;;  %v4181_v1 = vld [vmem:[#allocation4 + $0x84] sm:$0xf0]  ;;  %v1339_v25 = vld [vmem:[#allocation4 + $0x8c] sm:$0x1] }
 0x151   : > { %2341 = vrot.lane.b32.xlu0 %v2250_v26, %s4288_s26  ;;  %v1058_v43 = vor.u32 %v1056_v29, %v1055_v35  ;;  %v1060_v44 = vrot.slane %v1055_v35, 4  ;;  %v2406_v55 = vrot.slane %v4062_v32, 1  ;;  %v2653_v63 = vrot.slane %v2651_v36, 1  ;;  %v4863_v16 = vld [vmem:[#allocation4 + $0x84] sm:$0xf0] }
 0x152   : > { %v900_v45 = vshrl.u32 %v827_v11, 16  ;;  %v903_v48 = vshll.u32 %v827_v11, 16  ;;  %v2407_v57 = vrot.slane %v2116_v41, 1  ;;  %v1652_v5 = vrot.slane %v1650_v42, 1 }
 0x153   : > { %v1059_v60 = vsel %vm4717_vm1, %v1051_v2, %v1058_v43  ;;  %v1266_v61 = vsel %vm4722_vm2, %v1060_v44, %v1265_v40  ;;  %v2151_v6 = vshll.u32 %v2116_v41, 16  ;;  %vm732_vm0 = vcmp.gt.f32.partialorder %v662_v39, 0.0 }
 0x154   : > { %v902_v62 = vrot.slane %v900_v45, 7  ;;  %1264 = vst.msk [vmem:[#allocation4 + $0x94] sm:$0xf] %vm1178_vm8, %v1059_v60  ;;  %v2620_v50 = vunpack.c.l.b16 %v1466_v58  ;;  %v764_v12 = vmul.f32 0.1, %v662_v39  ;;  %v2109_v13 = vunpack.c.l.b16 %v1402_v4 }
 0x155   : > { %1267 = vst [vmem:[#allocation4 + $0x98] sm:$0x1] %v1266_v61  ;;  %v664_v14 = vadd.f32 %v4700_v31, %v663_v53  ;;  %v2408_v19 = vsel %vm1890_vm6, %v2406_v55, %v2407_v57  ;;  %v2654_v20 = vsel %vm1617_vm5, %v4843_v38, %v2653_v63  ;;  %v2153_v22 = vrot.slane %v2151_v6, 1  ;;  %v1209_v4 = vld [vmem:[#allocation4 + $0x38] sm:$0x1] }
 0x156   : > { %2963 = vrot.lane.b32.xlu1 %v2917_v30, %s4287_s25  ;;  %2563 = vrot.lane.b32.xlu2 %v4812_v56, %s4286_s19  ;;  %v905_v8 = vor.u32 %v903_v48, %v902_v62  ;;  %v907_v10 = vrot.slane %v902_v62, 4  ;;  %v796_v18 = vsel %vm732_vm0, %v662_v39, %v764_v12  ;;  %v4874_v23 = vpack.c.b16 %v2620_v50, %v2620_v50  ;;  %v666_v26 = vpop.f32.mrf.mxu0 }
 0x157   : > { %v828_v21 = vpack.c.bf16 %v796_v18, %v796_v18  ;;  %v4254_v24 = vor.u32 %v4841_v37, %v4252_v52  ;;  %vm733_vm3 = vcmp.gt.f32.partialorder %v664_v14, 0.0  ;;  %v2125_v29 = vpack.c.b16 %v2109_v13, %v2109_v13  ;;  %v1205_v37 = vld [vmem:[#allocation4 + $0x30] sm:$0xf] }
 0x158   : > { %v906_v17 = vsel %vm4717_vm1, %v898_v54, %v905_v8  ;;  %v1203_v9 = vsel %vm4722_vm2, %v907_v10, %v1202_v46  ;;  %v4183_v2 = vor.u32 %v4182_v59, %v4181_v1  ;;  %v765_v30 = vmul.f32 0.1, %v664_v14 }
 0x159   : > { %1943 = vrot.lane.b32.xlu0 %v1899_v34, %s4283_s15  ;;  %1201 = vst.msk [vmem:[#allocation4 + $0x28] sm:$0xf] %vm1178_vm8, %v906_v17  ;;  %v909_v27 = vshrl.u32 %v828_v21, 16  ;;  %v912_v28 = vshll.u32 %v828_v21, 16  ;;  %v1653_v32 = vsel %vm1617_vm5, %v4843_v38, %v1652_v5  ;;  %v4185_v34 = vld [vmem:[#allocation4 + $0x84] sm:$0xe]  ;;  %v1596_v35 = vunpack.c.l.b16 %v1339_v25 }
 0x15a   : > { %1204 = vst [vmem:[#allocation4 + $0x2c] sm:$0x1] %v1203_v9  ;;  %v2942_v11 = vrot.slane %v4254_v24, 1  ;;  %v2943_v36 = vrot.slane %v4874_v23, 1  ;;  %v797_v40 = vsel %vm733_vm3, %v664_v14, %v765_v30  ;;  %v2154_v41 = vsel %vm1617_vm5, %v4843_v38, %v2153_v22  ;;  %v4256_v24 = vld [vmem:[#allocation4 + $0x24] sm:$0xe] }
 0x15b   : > { %v911_v33 = vrot.slane %v909_v27, 7  ;;  %v2254_v39 = vshll.u32 %v4854_v0, 16  ;;  %v829_v43 = vpack.c.bf16 %v797_v40, %v797_v40  ;;  %v2433_v44 = vrot.slane %v4183_v2, 1  ;;  %v4903_v17 = vld [vmem:[#allocation4 + $0x90] sm:$0xff]   ;;  %v706_v40 = vpop.f32.mrf.mxu3 }
 0x15c   : > { %v2434_v45 = vrot.slane %v2125_v29, 1  ;;  %v2259_v48 = vshll.u32 %v2125_v29, 16  ;;  %v4888_v54 = vpack.c.b16 %v1596_v35, %v1596_v35  ;;  %v2754_v55 = vshll.u32 %v4847_v51, 16 }
 0x15d   : > { %v914_v42 = vor.u32 %v912_v28, %v911_v33  ;;  %v917_v52 = vshrl.u32 %v829_v43, 16  ;;  %v920_v53 = vshll.u32 %v829_v43, 16  ;;  %v2944_v38 = vsel %vm1890_vm6, %v2942_v11, %v2943_v36 }
 0x15e   : > { %2453 = vrot.lane.b32.xlu1 %v2408_v19, %s4285_s17  ;;  %2053 = vrot.lane.b32.xlu2 %v4812_v56, %s4284_s16  ;;  %v1753_v57 = vshll.u32 %v4861_v15, 16  ;;  %v667_v46 = vadd.f32 %v4700_v31, %v666_v26  ;;  %v668_v58 = vpop.f32.mrf.mxu0  ;;  %v915_v59 = vrot.slane %v911_v33, 4  ;;  %v2252_v60 = vshrl.u32 %v4854_v0, 16 }
 0x15f   : > { %v1206_v56 = vsel %vm4708_vm11, %v914_v42, %v1205_v37  ;;  %v2256_v61 = vrot.slane %v2254_v39, 1  ;;  %v919_v62 = vrot.slane %v917_v52, 7  ;;  %v2435_v63 = vsel %vm1890_vm6, %v2433_v44, %v2434_v45  ;;  %v1212_v42 = vld [vmem:[#allocation4 + $0x3c] sm:$0xf] }
 0x160   : > { %1207 = vst [vmem:[#allocation4 + $0x30] sm:$0xf] %v1206_v56  ;;  %v2261_v1 = vrot.slane %v2259_v48, 1  ;;  %v4186_v5 = vor.u32 %v4185_v34, %v4863_v16  ;;  %vm734_vm7 = vcmp.gt.f32.partialorder %v667_v46, 0.0  ;;  %v1925_v10 = vrot.slane %v4888_v54, 1  ;;  %v4906_v18 = vld [vmem:[#allocation4 + $0x24] sm:$0xff]  }
 0x161   : > { %2835 = vrot.lane.b32.xlu0 %v2654_v20, %s4289_s27  ;;  %v922_v6 = vor.u32 %v920_v53, %v919_v62  ;;  %v924_v8 = vrot.slane %v919_v62, 4  ;;  %v766_v50 = vmul.f32 0.1, %v667_v46  ;;  %v1751_v12 = vshrl.u32 %v4861_v15, 16  ;;  %v4908_v16 = vld [vmem:[#allocation4 + $0x24] sm:$0xf0] }
 0x162   : > { %v1755_v13 = vrot.slane %v1753_v57, 1  ;;  %v1758_v14 = vshll.u32 %v4888_v54, 16  ;;  %v2752_v9 = vshrl.u32 %v4847_v51, 16  ;;  %v2756_v22 = vrot.slane %v2754_v55, 1  ;;  %v1331_v28 = vld [vmem:[#allocation4 + $0x2c] sm:$0x1] }
 0x163   : > { %v923_v19 = vsel %vm4717_vm1, %v915_v59, %v922_v6  ;;  %v1210_v20 = vsel %vm4722_vm2, %v924_v8, %v1209_v4  ;;  %v798_v21 = vsel %vm734_vm7, %v667_v46, %v766_v50  ;;  %v2257_v25 = vor.u32 %v2256_v61, %v2252_v60  ;;  %v4919_v2 = vld [vmem:[#allocation4 + $0x24] sm:$0xff]   ;;  %v1394_v48 = vld [vmem:[#allocation4 + $0x2c] sm:$0x1] }
 0x164   : > { %1208 = vst.msk [vmem:[#allocation4 + $0x34] sm:$0xf] %vm1178_vm8, %v923_v19  ;;  %v830_v26 = vpack.c.bf16 %v798_v21, %v798_v21  ;;  %v2759_v27 = vshll.u32 %v4874_v23, 16  ;;  %v2266_v29 = vshll.u32 %v4903_v17, 16  ;;  %v4255_v30 = vld [vmem:[#allocation4 + $0x24] sm:$0xf0]  ;;  %v1756_v11 = vor.u32 %v1755_v13, %v1751_v12 }
 0x165   : > { %1211 = vst [vmem:[#allocation4 + $0x38] sm:$0x1] %v1210_v20  ;;  %v1760_v33 = vrot.slane %v1758_v14, 1  ;;  %v2757_v36 = vor.u32 %v2756_v22, %v2752_v9  ;;  %v1588_v37 = vunpack.c.l.b16 %v1331_v28  ;;  %v2262_v44 = vsel %vm1617_vm5, %v2257_v25, %v2261_v1  ;;  %v4259_v56 = vld [vmem:[#allocation4 + $0x24] sm:$0xe] }
 0x166   : > { %1814 = vrot.lane.b32.xlu1 %v1653_v32, %s4282_s14  ;;  %2581 = vrot.lane.b32.xlu2 %v4847_v51, %s4286_s19  ;;  %v1924_v51 = vrot.slane %v4186_v5, 1  ;;  %v669_v32 = vadd.f32 %v4700_v31, %v668_v58  ;;  %v926_v34 = vshrl.u32 %v830_v26, 16  ;;  %v929_v35 = vshll.u32 %v830_v26, 16  ;;  %v671_v23 = vpop.f32.mrf.mxu0  ;;  %v4934_v59 = vld [vmem:[#allocation4 + $0x24] sm:$0xff]   ;;  %v1458_v8 = vld [vmem:[#allocation4 + $0x2c] sm:$0x1]  ;;  %v708_v26 = vpop.f32.mrf.mxu3 }
 0x167   : > { %v2761_v39 = vrot.slane %v2759_v27, 1  ;;  %v2264_v45 = vshrl.u32 %v4903_v17, 16  ;;  %v4257_v54 = vor.u32 %v4256_v24, %v4255_v30  ;;  %v4930_v57 = vrot.slane %v2266_v29, 1  ;;  %v4258_v60 = vld [vmem:[#allocation4 + $0x24] sm:$0xf0] }
 0x168   : > { %vm735_vm9 = vcmp.gt.f32.partialorder %v669_v32, 0.0  ;;  %v767_v43 = vmul.f32 0.1, %v669_v32  ;;  %v1926_v52 = vsel %vm1890_vm6, %v1924_v51, %v1925_v10  ;;  %v4932_v46 = vpack.c.b16 %v1588_v37, %v1588_v37  ;;  %v3910_v10 = vld [vmem:[#allocation3 + $0x78] sm:$0xff]  ;;  %v4188_v14 = vld [vmem:[#allocation4 + $0x24] sm:$0xe] }
 0x169   : > { %2325 = vrot.lane.b32.xlu0 %v2154_v41, %s4288_s26  ;;  %v928_v41 = vrot.slane %v926_v34, 7  ;;  %v4939_v62 = vsel %vm1617_vm5, %v2757_v36, %v2761_v39  ;;  %v1900_v5 = vrot.slane %v4257_v54, 1  ;;  %v707_v6 = vadd.f32 %v4700_v31, %v706_v40  ;;  %v1216_v19 = vld [vmem:[#allocation4 + $0x44] sm:$0x1]  ;;  %3856 = vmatmul.msk.bf16.gmra.mxu3 %vm588_vm4, %v3910_v10  ;;  %v1467_v34 = vld [vmem:[#allocation4 + $0x98] sm:$0x1] }
 0x16a   : > { %v799_v55 = vsel %vm735_vm9, %v669_v32, %v767_v43  ;;  %v1901_v12 = vrot.slane %v4932_v46, 1  ;;  %v672_v9 = vadd.f32 %v4700_v31, %v671_v23  ;;  %v4260_v21 = vor.u32 %v4259_v56, %v4258_v60  ;;  %v4099_v37 = vld [vmem:[#allocation4 + $0x90] sm:$0xf0]  ;;  %v4959_v40 = vld [vmem:[%s4678_s10] ss:$0 sm:$0xff] }
 0x16b   : > { %v931_v53 = vor.u32 %v929_v35, %v928_v41  ;;  %v831_v58 = vpack.c.bf16 %v799_v55, %v799_v55  ;;  %v932_v50 = vrot.slane %v928_v41, 4  ;;  %vm750_vm10 = vcmp.gt.f32.partialorder %v707_v6, 0.0  ;;  %v1268_v60 = vld [vmem:[#allocation4 + $0x9c] sm:$0xf] }
 0x16c   : > { %v782_v22 = vmul.f32 0.1, %v707_v6  ;;  %v2612_v51 = vunpack.c.l.b16 %v1458_v8  ;;  %vm736_vm12 = vcmp.gt.f32.partialorder %v672_v9, 0.0  ;;  %v768_v29 = vmul.f32 0.1, %v672_v9 }
 0x16d   : > { %v1213_v61 = vsel %vm4708_vm11, %v931_v53, %v1212_v42  ;;  %v934_v1 = vshrl.u32 %v831_v58, 16  ;;  %v937_v4 = vshll.u32 %v831_v58, 16  ;;  %v1902_v31 = vsel %vm1890_vm6, %v1900_v5, %v1901_v12  ;;  %v1219_v8 = vld [vmem:[#allocation4 + $0x48] sm:$0xf] }
 0x16e   : > { %2981 = vrot.lane.b32.xlu1 %v2944_v38, %s4287_s25  ;;  %2471 = vrot.lane.b32.xlu2 %v2435_v63, %s4285_s17  ;;  %v1761_v38 = vsel %vm1617_vm5, %v1756_v11, %v1760_v33  ;;  %v2101_v63 = vunpack.c.l.b16 %v1394_v48  ;;  %1214 = vst [vmem:[#allocation4 + $0x3c] sm:$0xf] %v1213_v61  ;;  %v673_v27 = vpop.f32.mrf.mxu0  ;;  %v814_v28 = vsel %vm750_vm10, %v707_v6, %v782_v22  ;;  %v2409_v35 = vrot.slane %v4260_v21, 1  ;;  %v1403_v21 = vld [vmem:[#allocation4 + $0x98] sm:$0x1] }
 0x16f   : > { %v936_v13 = vrot.slane %v934_v1, 7  ;;  %v846_v33 = vpack.c.bf16 %v814_v28, %v814_v28  ;;  %v800_v36 = vsel %vm736_vm12, %v672_v9, %v768_v29  ;;  %v709_v23 = vadd.f32 %v4959_v40, %v708_v26  ;;  %v1272_v29 = vld [vmem:[#allocation4 + $0xa4] sm:$0x1] }
 0x170   : > { %v4946_v20 = vpack.c.b16 %v2101_v63, %v2101_v63  ;;  %v4962_v39 = vpack.c.b16 %v2612_v51, %v2612_v51  ;;  %v832_v43 = vpack.c.bf16 %v800_v36, %v800_v36  ;;  %v2158_v48 = vshll.u32 %v4934_v59, 16 }
 0x171   : > { %2071 = vrot.lane.b32.xlu0 %v4854_v0, %s4284_s16  ;;  %v2658_v0 = vshll.u32 %v4906_v18, 16  ;;  %v939_v24 = vor.u32 %v937_v4, %v936_v13  ;;  %v941_v25 = vrot.slane %v936_v13, 4  ;;  %v1062_v41 = vshrl.u32 %v846_v33, 16 }
 0x172   : > { %v2410_v11 = vrot.slane %v4946_v20, 1  ;;  %v1065_v42 = vshll.u32 %v846_v33, 16  ;;  %v4189_v56 = vor.u32 %v4188_v14, %v4908_v16  ;;  %vm751_vm13 = vcmp.gt.f32.partialorder %v709_v23, 0.0 }
 0x173   : > { %v940_v30 = vsel %vm4717_vm1, %v932_v50, %v939_v24  ;;  %v1217_v32 = vsel %vm4722_vm2, %v941_v25, %v1216_v19  ;;  %v1064_v53 = vrot.slane %v1062_v41, 7  ;;  %v943_v54 = vshrl.u32 %v832_v43, 16 }
 0x174   : > { %1215 = vst.msk [vmem:[#allocation4 + $0x40] sm:$0xf] %vm1178_vm8, %v940_v30  ;;  %v946_v55 = vshll.u32 %v832_v43, 16  ;;  %v2411_v58 = vsel %vm1890_vm6, %v2409_v35, %v2410_v11  ;;  %v674_v1 = vadd.f32 %v4959_v40, %v673_v27  ;;  %v2919_v5 = vrot.slane %v4962_v39, 1 }
 0x175   : > { %1218 = vst [vmem:[#allocation4 + $0x44] sm:$0x1] %v1217_v32  ;;  %v1067_v4 = vor.u32 %v1065_v42, %v1064_v53  ;;  %v4971_v6 = vrot.slane %v943_v54, 7  ;;  %v2918_v10 = vrot.slane %v4189_v56, 1  ;;  %v1657_v50 = vshll.u32 %v4919_v2, 16 }
 0x176   : > { %2343 = vrot.lane.b32.xlu1 %v2262_v44, %s4288_s26  ;;  %1832 = vrot.lane.b32.xlu2 %v1761_v38, %s4282_s14  ;;  %v4100_v44 = vld [vmem:[#allocation4 + $0x90] sm:$0xe]  ;;  %v2621_v38 = vunpack.c.l.b16 %v1467_v34  ;;  %vm737_vm14 = vcmp.gt.f32.partialorder %v674_v1, 0.0  ;;  %v769_v12 = vmul.f32 0.1, %v674_v1  ;;  %v676_v22 = vpop.f32.mrf.mxu0  ;;  %v1655_v25 = vshrl.u32 %v4919_v2, 16 }
 0x177   : > { %v4101_v61 = vor.u32 %v4100_v44, %v4099_v37  ;;  %v1269_v13 = vsel %vm4708_vm11, %v1067_v4, %v1268_v60  ;;  %v948_v14 = vor.u32 %v946_v55, %v4971_v6  ;;  %v1662_v51 = vshll.u32 %v4932_v46, 16  ;;  %v4076_v4 = vld [vmem:[#allocation4 + $0x90] sm:$0xe] }
 0x178   : > { %v4981_v9 = vpack.c.b16 %v2621_v38, %v2621_v38  ;;  %1270 = vst [vmem:[#allocation4 + $0x9c] sm:$0xf] %v1269_v13  ;;  %v801_v26 = vsel %vm737_vm14, %v674_v1, %v769_v12  ;;  %v1068_v27 = vrot.slane %v1064_v53, 4  ;;  %v1659_v32 = vrot.slane %v1657_v50, 1  ;;  %v1223_v53 = vld [vmem:[#allocation4 + $0x50] sm:$0x1] }
 0x179   : > { %1961 = vrot.lane.b32.xlu0 %v1926_v52, %s4283_s15  ;;  %v783_v52 = vmul.f32 0.1, %v709_v23  ;;  %v833_v30 = vpack.c.bf16 %v801_v26, %v801_v26  ;;  %v2656_v33 = vshrl.u32 %v4906_v18, 16  ;;  %v2660_v34 = vrot.slane %v2658_v0, 1  ;;  %v4043_v26 = vld [vmem:[#allocation4 + $0x30] sm:$0xe] }
 0x17a   : > { %v2110_v35 = vunpack.c.l.b16 %v1403_v21  ;;  %v2945_v41 = vrot.slane %v4101_v61, 1  ;;  %v2946_v42 = vrot.slane %v4981_v9, 1  ;;  %v1664_v43 = vrot.slane %v1662_v51, 1  ;;  %v1332_v21 = vld [vmem:[#allocation4 + $0x38] sm:$0x1] }
 0x17b   : > { %v815_v63 = vsel %vm751_vm13, %v709_v23, %v783_v52  ;;  %v951_v36 = vshrl.u32 %v833_v30, 16  ;;  %v954_v37 = vshll.u32 %v833_v30, 16  ;;  %v711_v23 = vpop.f32.mrf.mxu3  ;;  %v2663_v44 = vshll.u32 %v4962_v39, 16  ;;  %v4042_v51 = vld [vmem:[#allocation4 + $0x30] sm:$0xf0] }
 0x17c   : > { %v847_v16 = vpack.c.bf16 %v815_v63, %v815_v63  ;;  %v1660_v52 = vor.u32 %v1659_v32, %v1655_v25  ;;  %v5000_v54 = vpack.c.b16 %v2110_v35, %v2110_v35  ;;  %v2156_v55 = vshrl.u32 %v4934_v59, 16  ;;  %v4054_v35 = vld [vmem:[#allocation4 + $0x90] sm:$0xf0] }
 0x17d   : > { %v953_v0 = vrot.slane %v951_v36, 7  ;;  %v677_v38 = vadd.f32 %v4959_v40, %v676_v22  ;;  %v2661_v63 = vor.u32 %v2660_v34, %v2656_v33  ;;  %v712_v1 = vadd.f32 %v4959_v40, %v711_v23  ;;  %v1340_v22 = vld [vmem:[#allocation4 + $0x98] sm:$0x1] }
 0x17e   : > { %2073 = vrot.lane.b32.xlu1 %v4903_v17, %s4284_s16  ;;  %2565 = vrot.lane.b32.xlu2 %v4906_v18, %s4286_s19  ;;  %v1070_v19 = vshrl.u32 %v847_v16, 16  ;;  %v1073_v24 = vshll.u32 %v847_v16, 16  ;;  %v2160_v16 = vrot.slane %v2158_v48, 1  ;;  %v2920_v12 = vsel %vm1890_vm6, %v2918_v10, %v2919_v5 }
 0x17f   : > { %v956_v60 = vor.u32 %v954_v37, %v953_v0  ;;  %v958_v61 = vrot.slane %v953_v0, 4  ;;  %vm738_vm15 = vcmp.gt.f32.partialorder %v677_v38, 0.0  ;;  %v770_v50 = vmul.f32 0.1, %v677_v38 }
 0x180   : > { %v1072_v28 = vrot.slane %v1070_v19, 7  ;;  %v2163_v19 = vshll.u32 %v4946_v20, 16  ;;  %vm752_vm0 = vcmp.gt.f32.partialorder %v712_v1, 0.0  ;;  %v784_v48 = vmul.f32 0.1, %v712_v1 }
 0x181   : > { %2853 = vrot.lane.b32.xlu0 %v4939_v62, %s4289_s27  ;;  %v1220_v62 = vsel %vm4708_vm11, %v948_v14, %v1219_v8  ;;  %v2665_v8 = vrot.slane %v2663_v44, 1  ;;  %v1224_v14 = vsel %vm4722_vm2, %v958_v61, %v1223_v53  ;;  %v802_v39 = vsel %vm738_vm15, %v677_v38, %v770_v50  ;;  %v1275_v38 = vld [vmem:[#allocation4 + $0xa8] sm:$0xf] }
 0x182   : > { %1221 = vst [vmem:[#allocation4 + $0x48] sm:$0xf] %v1220_v62  ;;  %v1075_v11 = vor.u32 %v1073_v24, %v1072_v28  ;;  %v1077_v46 = vrot.slane %v1072_v28, 4  ;;  %v678_v24 = vpop.f32.mrf.mxu0  ;;  %v5025_v5 = vor.u32 %v4930_v57, %v2264_v45  ;;  %v2947_v10 = vsel %vm1890_vm6, %v2945_v41, %v2946_v42  ;;  %v4055_v45 = vld [vmem:[#allocation4 + $0x90] sm:$0xe] }
 0x183   : > { %v1665_v20 = vsel %vm1617_vm5, %v1660_v52, %v1664_v43  ;;  %1225 = vst [vmem:[#allocation4 + $0x50] sm:$0x1] %v1224_v14  ;;  %v834_v25 = vpack.c.bf16 %v802_v39, %v802_v39  ;;  %v2161_v62 = vor.u32 %v2160_v16, %v2156_v55  ;;  %v816_v28 = vsel %vm752_vm0, %v712_v1, %v784_v48  ;;  %v713_v57 = vpop.f32.mrf.mxu3 }
 0x184   : > { %v1076_v56 = vsel %vm4717_vm1, %v1068_v27, %v1075_v11  ;;  %v1273_v18 = vsel %vm4722_vm2, %v1077_v46, %v1272_v29  ;;  %v2666_v27 = vsel %vm1617_vm5, %v2661_v63, %v2665_v8  ;;  %v848_v33 = vpack.c.bf16 %v816_v28, %v816_v28  ;;  %v4088_v28 = vld [vmem:[#allocation4 + $0x30] sm:$0xe] }
 0x185   : > { %1271 = vst.msk [vmem:[#allocation4 + $0xa0] sm:$0xf] %vm1178_vm8, %v1076_v56  ;;  %v960_v30 = vshrl.u32 %v834_v25, 16  ;;  %v963_v32 = vshll.u32 %v834_v25, 16  ;;  %v1589_v34 = vunpack.c.l.b16 %v1332_v21  ;;  %v2165_v46 = vrot.slane %v2163_v19, 1 }
 0x186   : > { %1945 = vrot.lane.b32.xlu1 %v1902_v31, %s4283_s15  ;;  %v949_v31 = vrot.slane %v4971_v6, 4  ;;  %2455 = vrot.lane.b32.xlu2 %v2411_v58, %s4285_s17  ;;  %1274 = vst [vmem:[#allocation4 + $0xa4] sm:$0x1] %v1273_v18  ;;  %v4075_v58 = vld [vmem:[#allocation4 + $0x90] sm:$0xf0]  ;;  %v4044_v36 = vor.u32 %v4043_v26, %v4042_v51  ;;  %v1597_v37 = vunpack.c.l.b16 %v1340_v22  ;;  %v1079_v41 = vshrl.u32 %v848_v33, 16 }
 0x187   : > { %v4077_v29 = vor.u32 %v4076_v4, %v4075_v58  ;;  %v5033_v23 = vrot.slane %v960_v30, 7  ;;  %v1082_v42 = vshll.u32 %v848_v33, 16  ;;  %v679_v43 = vadd.f32 %v4959_v40, %v678_v24  ;;  %v1459_v24 = vld [vmem:[#allocation4 + $0x38] sm:$0x1] }
 0x188   : > { %v5007_v6 = vpop.permute.xlu2 %2051  ;;  %v957_v13 = vsel %vm4717_vm1, %v949_v31, %v956_v60  ;;  %v1226_v31 = vld [vmem:[#allocation4 + $0x54] sm:$0xf]  ;;  %v2437_v18 = vrot.slane %v5000_v54, 1  ;;  %v4056_v0 = vor.u32 %v4055_v45, %v4054_v35  ;;  %v714_v52 = vadd.f32 %v4959_v40, %v713_v57  ;;  %v1230_v57 = vld [vmem:[#allocation4 + $0x5c] sm:$0x1] }
 0x189   : > { %2055 = vrot.lane.b32.xlu0 %v4934_v59, %s4284_s16  ;;  %1222 = vst.msk [vmem:[#allocation4 + $0x4c] sm:$0xf] %vm1178_vm8, %v957_v13  ;;  %v2271_v59 = vshll.u32 %v5000_v54, 16  ;;  %v2436_v56 = vrot.slane %v4077_v29, 1  ;;  %v965_v53 = vor.u32 %v963_v32, %v5033_v23  ;;  %v5041_v55 = vrot.slane %v1079_v41, 7 }
 0x18a   : > { %vm739_vm3 = vcmp.gt.f32.partialorder %v679_v43, 0.0  ;;  %v1903_v60 = vrot.slane %v4044_v36, 1  ;;  %v5046_v61 = vpack.c.b16 %v1597_v37, %v1597_v37  ;;  %v771_v63 = vmul.f32 0.1, %v679_v43  ;;  %v681_v8 = vpop.f32.mrf.mxu0 }
 0x18b   : > { %v2273_v11 = vrot.slane %v2271_v59, 1  ;;  %vm753_vm7 = vcmp.gt.f32.partialorder %v714_v52, 0.0  ;;  %v1227_v54 = vsel %vm4708_vm11, %v965_v53, %v1226_v31  ;;  %v1084_v1 = vor.u32 %v1082_v42, %v5041_v55  ;;  %v716_v59 = vpop.f32.mrf.mxu3 }
 0x18c   : > { %v785_v4 = vmul.f32 0.1, %v714_v52  ;;  %v2166_v50 = vsel %vm1617_vm5, %v2161_v62, %v2165_v46  ;;  %1228 = vst [vmem:[#allocation4 + $0x54] sm:$0xf] %v1227_v54  ;;  %v803_v13 = vsel %vm739_vm3, %v679_v43, %v771_v63  ;;  %v5059_v19 = vrot.slane %v4056_v0, 1 }
 0x18d   : > { %v2274_v16 = vsel %vm1617_vm5, %v5025_v5, %v2273_v11  ;;  %v1276_v14 = vsel %vm4708_vm11, %v1084_v1, %v1275_v38  ;;  %v835_v21 = vpack.c.bf16 %v803_v13, %v803_v13  ;;  %v966_v39 = vrot.slane %v5033_v23, 4  ;;  %v4087_v62 = vld [vmem:[#allocation4 + $0x30] sm:$0xf0]  ;;  %v1279_v43 = vld [vmem:[#allocation4 + $0xb0] sm:$0x1] }
 0x18e   : > { %2965 = vrot.lane.b32.xlu1 %v2920_v12, %s4287_s25  ;;  %2983 = vrot.lane.b32.xlu2 %v2947_v10, %s4287_s25  ;;  %v2438_v12 = vsel %vm1890_vm6, %v2436_v56, %v2437_v18  ;;  %v817_v22 = vsel %vm753_vm7, %v714_v52, %v785_v4  ;;  %1277 = vst [vmem:[#allocation4 + $0xa8] sm:$0xf] %v1276_v14  ;;  %v1928_v48 = vrot.slane %v5046_v61, 1  ;;  %v1085_v32 = vrot.slane %v5041_v55, 4  ;;  %v5073_v23 = vld [vmem:[#allocation4 + $0x30] sm:$0xff]   ;;  %v5076_v18 = vpop.permute.xlu1 %1939 }
 0x18f   : > { %v849_v10 = vpack.c.bf16 %v817_v22, %v817_v22  ;;  %v968_v51 = vshrl.u32 %v835_v21, 16  ;;  %v971_v26 = vshll.u32 %v835_v21, 16  ;;  %v682_v29 = vadd.f32 %v4959_v40, %v681_v8  ;;  %v1395_v21 = vld [vmem:[#allocation4 + $0x38] sm:$0x1] }
 0x190   : > { %v5036_v44 = vpop.permute.xlu2 %2579  ;;  %v717_v35 = vadd.f32 %v4959_v40, %v716_v59  ;;  %v2613_v11 = vunpack.c.l.b16 %v1459_v24  ;;  %v4089_v36 = vor.u32 %v4088_v28, %v4087_v62  ;;  %v2771_v31 = vshll.u32 %v4981_v9, 16 }
 0x191   : > { %2583 = vrot.lane.b32.xlu0 %v4903_v17, %s4286_s19  ;;  %v5043_v17 = vpack.c.b16 %v1589_v34, %v1589_v34  ;;  %v1087_v33 = vshrl.u32 %v849_v10, 16  ;;  %v1090_v34 = vshll.u32 %v849_v10, 16  ;;  %v970_v45 = vrot.slane %v968_v51, 7 }
 0x192   : > { %vm740_vm9 = vcmp.gt.f32.partialorder %v682_v29, 0.0  ;;  %vm754_vm10 = vcmp.gt.f32.partialorder %v717_v35, 0.0  ;;  %v786_v37 = vmul.f32 0.1, %v717_v35  ;;  %v2670_v63 = vshll.u32 %v5073_v23, 16  ;;  %v683_v54 = vpop.f32.mrf.mxu0 }
 0x193   : > { %v1904_v58 = vrot.slane %v5043_v17, 1  ;;  %v1089_v46 = vrot.slane %v1087_v33, 7  ;;  %v973_v41 = vor.u32 %v971_v26, %v970_v45  ;;  %v975_v42 = vrot.slane %v970_v45, 4  ;;  %v718_v14 = vpop.f32.mrf.mxu3 }
 0x194   : > { %v818_v55 = vsel %vm754_vm10, %v717_v35, %v786_v37  ;;  %v5090_v8 = vpack.c.b16 %v2613_v11, %v2613_v11  ;;  %v1929_v24 = vsel %vm1890_vm6, %v5059_v19, %v1928_v48  ;;  %v2773_v51 = vrot.slane %v2771_v31, 1  ;;  %v1282_v48 = vld [vmem:[#allocation4 + $0xb4] sm:$0xf] }
 0x195   : > { %v1905_v25 = vsel %vm1890_vm6, %v1903_v60, %v1904_v58  ;;  %v1092_v0 = vor.u32 %v1090_v34, %v1089_v46  ;;  %v1094_v52 = vrot.slane %v1089_v46, 4  ;;  %v974_v38 = vsel %vm4717_vm1, %v966_v39, %v973_v41 }
 0x196   : > { %1816 = vrot.lane.b32.xlu1 %v1665_v20, %s4282_s14  ;;  %2345 = vrot.lane.b32.xlu2 %v2274_v16, %s4288_s26  ;;  %v1770_v20 = vshll.u32 %v5046_v61, 16  ;;  %v1231_v60 = vsel %vm4722_vm2, %v975_v42, %v1230_v57  ;;  %v850_v61 = vpack.c.bf16 %v818_v55, %v818_v55  ;;  %1229 = vst.msk [vmem:[#allocation4 + $0x58] sm:$0xf] %vm1178_vm8, %v974_v38  ;;  %v1233_v16 = vld [vmem:[#allocation4 + $0x60] sm:$0xf]  ;;  %v2921_v39 = vrot.slane %v4089_v36, 1 }
 0x197   : > { %v1093_v9 = vsel %vm4717_vm1, %v1085_v32, %v1092_v0  ;;  %v1280_v1 = vsel %vm4722_vm2, %v1094_v52, %v1279_v43  ;;  %1232 = vst [vmem:[#allocation4 + $0x5c] sm:$0x1] %v1231_v60  ;;  %v684_v62 = vadd.f32 %v4959_v40, %v683_v54  ;;  %v2672_v28 = vrot.slane %v2670_v63, 1  ;;  %v4063_v52 = vld [vmem:[#allocation4 + $0x30] sm:$0xf0] }
 0x198   : > { %v5068_v30 = vpop.permute.xlu2 %2069  ;;  %v1099_v13 = vshll.u32 %v850_v61, 16  ;;  %1278 = vst.msk [vmem:[#allocation4 + $0xac] sm:$0xf] %vm1178_vm8, %v1093_v9  ;;  %v1772_v59 = vrot.slane %v1770_v20, 1  ;;  %v2668_v20 = vshrl.u32 %v5073_v23, 16  ;;  %v1674_v33 = vshll.u32 %v5043_v17, 16 }
 0x199   : > { %2837 = vrot.lane.b32.xlu0 %v2666_v27, %s4289_s27  ;;  %v772_v27 = vmul.f32 0.1, %v682_v29  ;;  %1281 = vst [vmem:[#allocation4 + $0xb0] sm:$0x1] %v1280_v1  ;;  %vm741_vm12 = vcmp.gt.f32.partialorder %v684_v62, 0.0  ;;  %v2102_v34 = vunpack.c.l.b16 %v1395_v21  ;;  %vm2995_vm14 = vcmask 64512  }
 0x19a   : > { %v773_v57 = vmul.f32 0.1, %v684_v62  ;;  %v686_v36 = vpop.f32.mrf.mxu0  ;;  %v2774_v43 = vsel %vm1617_vm5, %v5025_v5, %v2773_v51  ;;  %v5125_v31 = vor.u32 %v2672_v28, %v2668_v20  ;;  %v1676_v38 = vrot.slane %v1674_v33, 1  ;;  %v1468_v20 = vld [vmem:[#allocation4 + $0xa4] sm:$0x1] }
 0x19b   : > { %v804_v56 = vsel %vm740_vm9, %v682_v29, %v772_v27  ;;  %v719_v29 = vadd.f32 %v4959_v40, %v718_v14  ;;  %v1773_v27 = vsel %vm1617_vm5, %v5025_v5, %v1772_v59  ;;  %v687_v42 = vadd.f32 %v4959_v40, %v686_v36  ;;  %v5141_v59 = vld [vmem:[#allocation4 + $0x9c] sm:$0xff]  }
 0x19c   : > { %v836_v53 = vpack.c.bf16 %v804_v56, %v804_v56  ;;  %v805_v37 = vsel %vm741_vm12, %v684_v62, %v773_v57  ;;  %v5130_v60 = vpack.c.b16 %v2102_v34, %v2102_v34  ;;  %v1484_v28 = vld [vmem:[#allocation4 + $0x9c] sm:$0xe]  ;;  %v2538_v34 = vunpack.c.h.b16 %v5141_v59  ;;  %v3269_v57 = vld [vmem:[%s5146_s7 + $0x20] sm:$0xf] }
 0x19d   : > { %vm755_vm13 = vcmp.gt.f32.partialorder %v719_v29, 0.0  ;;  %v787_v11 = vmul.f32 0.1, %v719_v29  ;;  %v837_v56 = vpack.c.bf16 %v805_v37, %v805_v37  ;;  %vm742_vm15 = vcmp.gt.f32.partialorder %v687_v42, 0.0 }
 0x19e   : > { %2327 = vrot.lane.b32.xlu1 %v2166_v50, %s4288_s26  ;;  %1947 = vrot.lane.b32.xlu2 %v1905_v25, %s4283_s15  ;;  %v977_v58 = vshrl.u32 %v836_v53, 16  ;;  %v980_v4 = vshll.u32 %v836_v53, 16  ;;  %v1096_v50 = vshrl.u32 %v850_v61, 16  ;;  %v2922_v25 = vrot.slane %v5090_v8, 1  ;;  %v4064_v53 = vld [vmem:[#allocation4 + $0x30] sm:$0xe] }
 0x19f   : > { %v819_v41 = vsel %vm755_vm13, %v719_v29, %v787_v11  ;;  %v774_v61 = vmul.f32 0.1, %v687_v42  ;;  %v985_v54 = vshrl.u32 %v837_v56, 16  ;;  %v988_v9 = vshll.u32 %v837_v56, 16  ;;  %v1240_v56 = vld [vmem:[#allocation4 + $0x6c] sm:$0xf] }
 0x1a0   : > { %v5092_v22 = vpop.permute.xlu2 %1941  ;;  %v5097_v10 = vrot.slane %v977_v58, 7  ;;  %v5102_v26 = vrot.slane %v1096_v50, 7  ;;  %v2923_v46 = vsel %vm1890_vm6, %v2921_v39, %v2922_v25  ;;  %v851_v0 = vpack.c.bf16 %v819_v41, %v819_v41  ;;  %v1286_v25 = vld [vmem:[#allocation4 + $0xbc] sm:$0x1]  ;;  %v4078_v7 = vld [vmem:[#allocation4 + $0xa8] sm:$0xf0] }
 0x1a1   : > { %2473 = vrot.lane.b32.xlu0 %v2438_v12, %s4285_s17  ;;  %v5099_v12 = vpop.permute.xlu0 %1810  ;;  %v4065_v50 = vor.u32 %v4064_v53, %v4063_v52  ;;  %v1677_v39 = vsel %vm1617_vm5, %v5125_v31, %v1676_v38  ;;  %v2175_v51 = vshll.u32 %v5130_v60, 16  ;;  %v2675_v29 = vshll.u32 %v5090_v8, 16 }
 0x1a2   : > { %v982_v19 = vor.u32 %v980_v4, %v5097_v10  ;;  %v1101_v32 = vor.u32 %v1099_v13, %v5102_v26  ;;  %v1104_v1 = vshrl.u32 %v851_v0, 16  ;;  %v1107_v58 = vshll.u32 %v851_v0, 16 }
 0x1a3   : > { %v983_v4 = vrot.slane %v5097_v10, 4  ;;  %v987_v13 = vrot.slane %v985_v54, 7  ;;  %v1237_v10 = vld [vmem:[#allocation4 + $0x68] sm:$0x1]  ;;  %v2412_v8 = vrot.slane %v4065_v50, 1  ;;  %v2413_v37 = vrot.slane %v5130_v60, 1 }
 0x1a4   : > { %v1234_v45 = vsel %vm4708_vm11, %v982_v19, %v1233_v16  ;;  %v1283_v17 = vsel %vm4708_vm11, %v1101_v32, %v1282_v48  ;;  %v1102_v16 = vrot.slane %v5102_v26, 4  ;;  %v1106_v14 = vrot.slane %v1104_v1, 7 }
 0x1a5   : > { %1235 = vst [vmem:[#allocation4 + $0x60] sm:$0xf] %v1234_v45  ;;  %v990_v26 = vor.u32 %v988_v9, %v987_v13  ;;  %v992_v62 = vrot.slane %v987_v13, 4  ;;  %v5156_v45 = vld [vmem:[#allocation4 + $0x9c] sm:$0xff]   ;;  %v2177_v41 = vrot.slane %v2175_v51, 1  ;;  %v2622_v0 = vunpack.c.l.b16 %v1468_v20 }
 0x1a6   : > { %1963 = vrot.lane.b32.xlu1 %v1929_v24, %s4283_s15  ;;  %2967 = vrot.lane.b32.xlu2 %v2923_v46, %s4287_s25  ;;  %1284 = vst [vmem:[#allocation4 + $0xb4] sm:$0xf] %v1283_v17  ;;  %v806_v24 = vsel %vm742_vm15, %v687_v42, %v774_v61  ;;  %v1109_v19 = vor.u32 %v1107_v58, %v1106_v14  ;;  %v1111_v48 = vrot.slane %v1106_v14, 4  ;;  %v2894_v52 = vunpack.c.l.b16 %v1484_v28  ;;  %v688_v61 = vpop.f32.mrf.mxu0  ;;  %v1404_v58 = vld [vmem:[#allocation4 + $0xa4] sm:$0x1]  ;;  %v3917_v51 = vld [vmem:[%s5146_s7 + $0x18] sm:$0xff] }
 0x1a7   : > { %v991_v11 = vsel %vm4717_vm1, %v983_v4, %v990_v26  ;;  %v3292_v53 = vunpack.c.l.b16 %v3269_v57  ;;  %v2537_v38 = vunpack.c.l.b16 %v5156_v45  ;;  %v2028_v54 = vunpack.c.h.b16 %v5156_v45  ;;  %v1420_v57 = vld [vmem:[#allocation4 + $0x9c] sm:$0xe]  ;;  %v1460_v45 = vld [vmem:[#allocation4 + $0x44] sm:$0x1] }
 0x1a8   : > { %v5111_v35 = vpop.permute.xlu1 %2451  ;;  %v5128_v55 = vpop.permute.xlu2 %1959  ;;  %v1110_v46 = vsel %vm4717_vm1, %v1102_v16, %v1109_v19  ;;  %1236 = vst.msk [vmem:[#allocation4 + $0x64] sm:$0xf] %vm1178_vm8, %v991_v11  ;;  %v1287_v36 = vsel %vm4722_vm2, %v1111_v48, %v1286_v25  ;;  %vm3335_vm0 = vcmask 1043456   ;;  %v2414_v4 = vsel %vm1890_vm6, %v2412_v8, %v2413_v37  ;;  %v1333_v8 = vld [vmem:[#allocation4 + $0x44] sm:$0x1] }
 0x1a9   : > { %1834 = vrot.lane.b32.xlu0 %v1773_v27, %s4282_s14  ;;  %v1238_v27 = vsel %vm4722_vm2, %v992_v62, %v1237_v10  ;;  %1285 = vst.msk [vmem:[#allocation4 + $0xb8] sm:$0xf] %vm1178_vm8, %v1110_v46  ;;  %v3297_v9 = vpack.c.b16 %v3292_v53, %v3292_v53  ;;  %v5184_v1 = vpack.c.b16 %v2538_v34, %v2537_v38  ;;  %v5196_v10 = vld [vmem:[#allocation4 + $0x3c] sm:$0xf0]  ;;  %v3916_v46 = vld [vmem:[%s5146_s7 + $0x10] sm:$0xff]  ;;  %vm3060_vm7 = vcmask 195584  }
 0x1aa   : > { %1239 = vst [vmem:[#allocation4 + $0x68] sm:$0x1] %v1238_v27  ;;  %v689_v50 = vadd.f32 %v4959_v40, %v688_v61  ;;  %v2178_v13 = vsel %vm1617_vm5, %v5125_v31, %v2177_v41  ;;  %v2638_v14 = vpack.c.b16 %v2622_v0, %v2622_v0  ;;  %v4166_v62 = vld [vmem:[#allocation4] sm:$0xff]   ;;  %vm3093_vm9 = vcmask 261120   ;;  %v1244_v61 = vld [vmem:[#allocation4 + $0x74] sm:$0x1] }
 0x1ab   : > { %v1813_v63 = vpop.permute.xlu0 %1812  ;;  %1288 = vst [vmem:[#allocation4 + $0xbc] sm:$0x1] %v1287_v36  ;;  %v2778_v26 = vshll.u32 %v5184_v1, 16  ;;  %v2997_v19 = vsel %vm2995_vm14, %v4166_v62, %v5099_v12  ;;  %v2776_v12 = vshrl.u32 %v5184_v1, 16  ;;  %vm3126_vm10 = vcmask 326656  }
 0x1ac   : > { %v2999_v5 = vsel %vm2995_vm14, %v4743_v49, %v1813_v63  ;;  %v2027_v63 = vunpack.c.l.b16 %v5141_v59  ;;  %v3337_v59 = vsel %vm3335_vm0, %v3297_v9, 0  ;;  %vm743_vm3 = vcmp.gt.f32.partialorder %v689_v50, 0.0  ;;  %v5225_v9 = vld [vmem:[#allocation4 + $0x9c] sm:$0xf0] }
 0x1ad   : > { %v5139_v21 = vsel %vm588_vm4, %v2999_v5, %v5092_v22  ;;  %v838_v22 = vpack.c.bf16 %v806_v24, %v806_v24  ;;  %v2910_v24 = vpack.c.b16 %v2538_v34, %v2894_v52  ;;  %3342 = vmatpush.bf16.msra.mxu1 %v3337_v59  ;;  %v775_v40 = vmul.f32 0.1, %v689_v50  ;;  %4109 = vmatpush.bf16.msra.mxu2 %v3337_v59  ;;  %v4191_v59 = vld [vmem:[#allocation4 + $0x3c] sm:$0xe] }
 0x1ae   : > { %2855 = vrot.lane.b32.xlu1 %v2774_v43, %s4289_s27  ;;  %1818 = vrot.lane.b32.xlu2 %v1677_v39, %s4282_s14  ;;  %v5194_v39 = vld [vmem:[#allocation4 + $0x3c] sm:$0xff]   ;;  %v5201_v25 = vpack.c.b16 %v2028_v54, %v2027_v63  ;;  %v2780_v41 = vrot.slane %v2778_v26, 1  ;;  %v2383_v52 = vunpack.c.l.b16 %v1420_v57  ;;  %vm3159_vm12 = vcmask 392192  }
 0x1af   : > { %v994_v32 = vshrl.u32 %v838_v22, 16  ;;  %v997_v33 = vshll.u32 %v838_v22, 16  ;;  %v2111_v22 = vunpack.c.l.b16 %v1404_v58  ;;  %v807_v20 = vsel %vm743_vm3, %v689_v50, %v775_v40  ;;  %v5223_v63 = vld [vmem:[#allocation4 + $0x9c] sm:$0xff]  }
 0x1b0   : > { %v5148_v49 = vpop.permute.xlu1 %2979  ;;  %v5167_v17 = vpop.permute.xlu2 %2563  ;;  %v839_v34 = vpack.c.bf16 %v807_v20, %v807_v20  ;;  %v2278_v11 = vshll.u32 %v5201_v25, 16  ;;  %6231 = vst [vmem:[#allocation5_spill] sm:$0xff] %v5223_v63  ;;  %v1681_v40 = vshll.u32 %v5194_v39, 16  ;;  %v5241_v26 = vld [vmem:[#allocation4 + $0x3c] sm:$0xf0]  ;;  %vm3192_vm13 = vcmask 457728  }
 0x1b1   : > { %2567 = vrot.lane.b32.xlu0 %v5073_v23, %s4286_s19  ;;  %v5173_v42 = vrot.slane %v994_v32, 7  ;;  %v2948_v32 = vrot.slane %v2910_v24, 1  ;;  %3343 = vmatpush.bf16.msra.mxu1 %v3917_v51  ;;  %v5216_v27 = vpack.c.b16 %v2111_v22, %v2111_v22  ;;  %v5239_v22 = vld [vmem:[#allocation4 + $0x3c] sm:$0xff]   ;;  %vm3225_vm15 = vcmask 523264  }
 0x1b2   : > { %v1002_v36 = vshrl.u32 %v839_v34, 16  ;;  %v1005_v37 = vshll.u32 %v839_v34, 16  ;;  %4110 = vmatpush.bf16.msra.mxu2 %v3917_v51  ;;  %v3914_v34 = vld [vmem:[%s5146_s7] sm:$0xff]  ;;  %vm3302_vm0 = vcmask 588800  }
 0x1b3   : > { %v5175_v43 = vpop.permute.xlu0 %2323  ;;  %v999_v60 = vor.u32 %v997_v33, %v5173_v42  ;;  %v2949_v33 = vrot.slane %v2638_v14, 1  ;;  %v1000_v53 = vrot.slane %v5173_v42, 4  ;;  %v1341_v42 = vld [vmem:[#allocation4 + $0xa4] sm:$0x1] }
 0x1b4   : > { %v1004_v38 = vrot.slane %v1002_v36, 7  ;;  %v1683_v36 = vrot.slane %v1681_v40, 1 }
 0x1b5   : > { %v1241_v16 = vsel %vm4708_vm11, %v999_v60, %v1240_v56  ;;  %v2783_v56 = vshll.u32 %v2638_v14, 16  ;;  %v1590_v60 = vunpack.c.l.b16 %v1333_v8  ;;  %v2950_v58 = vsel %vm1890_vm6, %v2948_v32, %v2949_v33  ;;  %3344 = vmatpush.bf16.msra.mxu1 %v3916_v46 }
 0x1b6   : > { %2057 = vrot.lane.b32.xlu1 %v5073_v23, %s4284_s16  ;;  %v2677_v23 = vrot.slane %v2675_v29, 1  ;;  %1242 = vst [vmem:[#allocation4 + $0x6c] sm:$0xf] %v1241_v16  ;;  %2329 = vrot.lane.b32.xlu2 %v2178_v13, %s4288_s26  ;;  %v3915_v16 = vld [vmem:[%s5146_s7 + $0x8] sm:$0xff]  ;;  %v1007_v50 = vor.u32 %v1005_v37, %v1004_v38  ;;  %v1009_v13 = vrot.slane %v1004_v38, 4  ;;  %v2781_v14 = vor.u32 %v2780_v41, %v2776_v12 }
 0x1b7   : > { %v2785_v24 = vrot.slane %v2783_v56, 1  ;;  %4111 = vmatpush.bf16.msra.mxu2 %v3916_v46  ;;  %v1598_v32 = vunpack.c.l.b16 %v1341_v42  ;;  %v1679_v8 = vshrl.u32 %v5194_v39, 16  ;;  %v2614_v37 = vunpack.c.l.b16 %v1460_v45 }
 0x1b8   : > { %v5186_v5 = vpop.permute.xlu1 %2469  ;;  %v5208_v48 = vpop.permute.xlu2 %2053  ;;  %v2678_v29 = vsel %vm1617_vm5, %v5125_v31, %v2677_v23  ;;  %v3029_v31 = vsel %vm588_vm4, %v2997_v19, %v5076_v18  ;;  %v2276_v18 = vshrl.u32 %v5201_v25, 16  ;;  %v2283_v23 = vshll.u32 %v5216_v27, 16 }
 0x1b9   : > { %2457 = vrot.lane.b32.xlu0 %v2414_v4, %s4285_s17  ;;  %v2280_v4 = vrot.slane %v2278_v11, 1  ;;  %v1008_v19 = vsel %vm4717_vm1, %v1000_v53, %v1007_v50  ;;  %v1245_v20 = vsel %vm4722_vm2, %v1009_v13, %v1244_v61  ;;  %3345 = vmatpush.bf16.msra.mxu1 %v3915_v16  ;;  %v2786_v57 = vsel %vm1617_vm5, %v2781_v14, %v2785_v24  ;;  %v4167_v61 = vld [vmem:[#allocation4 + $0x78] sm:$0xff]   ;;  %v1342_v50 = vld [vmem:[#allocation4 + $0xb0] sm:$0x1] }
 0x1ba   : > { %1243 = vst.msk [vmem:[#allocation4 + $0x70] sm:$0xf] %vm1178_vm8, %v1008_v19  ;;  %v2285_v33 = vrot.slane %v2283_v23, 1  ;;  %v2440_v11 = vrot.slane %v5216_v27, 1  ;;  %v5261_v41 = vpack.c.b16 %v1598_v32, %v1598_v32  ;;  %v1777_v56 = vshll.u32 %v5223_v63, 16 }
 0x1bb   : > { %v5210_v28 = vpop.permute.xlu0 %2851  ;;  %1246 = vst [vmem:[#allocation4 + $0x74] sm:$0x1] %v1245_v20  ;;  %4112 = vmatpush.bf16.msra.mxu2 %v3915_v16  ;;  %v4192_v27 = vor.u32 %v4191_v59, %v5196_v10  ;;  %v2682_v10 = vshll.u32 %v5239_v22, 16  ;;  %v1775_v16 = vshrl.u32 %v5223_v63, 16  ;;  %v1334_v24 = vld [vmem:[#allocation4 + $0x50] sm:$0x1]  ;;  %v1599_v32 = vunpack.c.l.b16 %v1342_v50 }
 0x1bc   : > { %v1779_v42 = vrot.slane %v1777_v56, 1 }
 0x1bd   : > { %3346 = vmatpush.bf16.msra.mxu1 %v3914_v34  ;;  %v1906_v13 = vrot.slane %v4192_v27, 1  ;;  %v2684_v19 = vrot.slane %v2682_v10, 1  ;;  %v5319_v56 = vpack.c.b16 %v1599_v32, %v1599_v32  ;;  %v4196_v10 = vld [vmem:[#allocation4 + $0x54] sm:$0xf0] }
 0x1be   : > { %2839 = vrot.lane.b32.xlu1 %v2678_v29, %s4289_s27  ;;  %2075 = vrot.lane.b32.xlu2 %v5201_v25, %s4284_s16  ;;  %v2399_v25 = vpack.c.b16 %v2028_v54, %v2383_v52  ;;  %v5249_v29 = vpack.c.b16 %v1590_v60, %v1590_v60  ;;  %v2281_v54 = vor.u32 %v2280_v4, %v2276_v18 }
 0x1bf   : > { %v3062_v52 = vsel %vm3060_vm7, %v3029_v31, %v5007_v6  ;;  %4113 = vmatpush.bf16.msra.mxu2 %v3914_v34  ;;  %v1684_v31 = vor.u32 %v1683_v36, %v1679_v8  ;;  %v5276_v4 = vpack.c.b16 %v2614_v37, %v2614_v37  ;;  %v5296_v34 = vld [vmem:[#allocation4 + $0x48] sm:$0xff]   ;;  %v5306_v8 = vld [vmem:[#allocation4 + $0xb4] sm:$0xff]  }
 0x1c0   : > { %v1831_v0 = vpop.permute.xlu1 %1830  ;;  %v5234_v51 = vpop.permute.xlu2 %2581  ;;  %v2439_v46 = vrot.slane %v2399_v25, 1  ;;  %v2286_v53 = vsel %vm1617_vm5, %v2281_v54, %v2285_v33  ;;  %v3095_v38 = vsel %vm3093_vm9, %v3062_v52, %v5175_v43  ;;  %v1907_v14 = vrot.slane %v5249_v29, 1  ;;  %6232 = vst [vmem:[#allocation6_spill] sm:$0xff] %v5306_v8  ;;  %v5308_v36 = vld [vmem:[#allocation4 + $0xb4] sm:$0xf0] }
 0x1c1   : > { %2985 = vrot.lane.b32.xlu0 %v2950_v58, %s4287_s25  ;;  %v3017_v60 = vsel %vm2995_vm14, %v4167_v61, %v1831_v0  ;;  %v4194_v58 = vld [vmem:[#allocation4 + $0x3c] sm:$0xe]  ;;  %v1782_v0 = vshll.u32 %v5261_v41, 16  ;;  %v3128_v59 = vsel %vm3126_vm10, %v3095_v38, %v5111_v35  ;;  %v2680_v25 = vshrl.u32 %v5239_v22, 16 }
 0x1c2   : > { %v2441_v6 = vsel %vm1890_vm6, %v2439_v46, %v2440_v11  ;;  %v2687_v20 = vshll.u32 %v5276_v4, 16  ;;  %v5293_v45 = vsel %vm588_vm4, %v3017_v60, %v5128_v55  ;;  %v1591_v35 = vunpack.c.l.b16 %v1334_v24  ;;  %v5301_v46 = vld [vmem:[#allocation4 + $0xa8] sm:$0xff]  }
 0x1c3   : > { %v5243_v62 = vpop.permute.xlu0 %2341  ;;  %v1784_v33 = vrot.slane %v1782_v0, 1  ;;  %v4195_v11 = vor.u32 %v4194_v58, %v5241_v26  ;;  %v3161_v55 = vsel %vm3159_vm12, %v3128_v59, %v5167_v17  ;;  %v2685_v37 = vor.u32 %v2684_v19, %v2680_v25  ;;  %v1335_v25 = vld [vmem:[#allocation4 + $0x5c] sm:$0x1]  ;;  %v4197_v19 = vld [vmem:[#allocation4 + $0x54] sm:$0xe] }
 0x1c4   : > { %v1693_v17 = vshll.u32 %v5296_v34, 16  ;;  %v2925_v27 = vrot.slane %v5276_v4, 1  ;;  %v5323_v38 = vpack.c.b16 %v1591_v35, %v1591_v35  ;;  %v1789_v61 = vshll.u32 %v5301_v46, 16  ;;  %v1336_v35 = vld [vmem:[#allocation4 + $0x68] sm:$0x1] }
 0x1c5   : > { %v2924_v58 = vrot.slane %v4195_v11, 1  ;;  %v1691_v0 = vshrl.u32 %v5296_v34, 16  ;;  %v1787_v50 = vshrl.u32 %v5301_v46, 16 }
 0x1c6   : > { %2585 = vrot.lane.b32.xlu1 %v5184_v1, %s4286_s19  ;;  %v1686_v1 = vshll.u32 %v5249_v29, 16  ;;  %2857 = vrot.lane.b32.xlu2 %v2786_v57, %s4289_s27  ;;  %v1780_v29 = vor.u32 %v1779_v42, %v1775_v16  ;;  %v1908_v57 = vsel %vm1890_vm6, %v1906_v13, %v1907_v14  ;;  %v4045_v16 = vld [vmem:[#allocation4 + $0x48] sm:$0xf0]  ;;  %v1794_v13 = vshll.u32 %v5319_v56, 16  ;;  %v4046_v14 = vld [vmem:[#allocation4 + $0x48] sm:$0xe] }
 0x1c7   : > { %v1791_v24 = vrot.slane %v1789_v61, 1  ;;  %v1698_v32 = vshll.u32 %v5323_v38, 16  ;;  %v1593_v61 = vunpack.c.l.b16 %v1336_v35 }
 0x1c8   : > { %v5257_v12 = vpop.permute.xlu1 %2963  ;;  %v5273_v18 = vpop.permute.xlu2 %2471  ;;  %v1688_v43 = vrot.slane %v1686_v1, 1  ;;  %v2689_v1 = vrot.slane %v2687_v20, 1  ;;  %v2926_v20 = vsel %vm1890_vm6, %v2924_v58, %v2925_v27  ;;  %v1801_v27 = vshll.u32 %v5306_v8, 16 }
 0x1c9   : > { %2347 = vrot.lane.b32.xlu0 %v2286_v53, %s4288_s26  ;;  %v1785_v53 = vsel %vm1617_vm5, %v1780_v29, %v1784_v33  ;;  %v4047_v29 = vor.u32 %v4046_v14, %v4045_v16  ;;  %v1592_v33 = vunpack.c.l.b16 %v1335_v25  ;;  %v5345_v11 = vor.u32 %v1791_v24, %v1787_v50  ;;  %v4199_v25 = vld [vmem:[#allocation4 + $0x6c] sm:$0xf0] }
 0x1ca   : > { %v1689_v54 = vsel %vm1617_vm5, %v1684_v31, %v1688_v43  ;;  %v5328_v31 = vld [vmem:[#allocation4 + $0x54] sm:$0xff]   ;;  %v2690_v42 = vsel %vm1617_vm5, %v2685_v37, %v2689_v1  ;;  %v4198_v16 = vor.u32 %v4197_v19, %v4196_v10  ;;  %v1803_v10 = vrot.slane %v1801_v27, 1 }
 0x1cb   : > { %v5279_v23 = vpop.permute.xlu0 %1943  ;;  %6233 = vst [vmem:[#allocation7_spill] sm:$0xff] %v5328_v31  ;;  %v4168_v1 = vld [vmem:[#allocation4 + $0x18] sm:$0xff]   ;;  %v1909_v58 = vrot.slane %v4047_v29, 1  ;;  %v1609_v14 = vpack.c.b16 %v1593_v61, %v1593_v61  ;;  %v4049_v29 = vld [vmem:[#allocation4 + $0x60] sm:$0xe] }
 0x1ce   : > { %2475 = vrot.lane.b32.xlu1 %v2441_v6, %s4285_s17  ;;  %1820 = vrot.lane.b32.xlu2 %v1689_v54, %s4282_s14  ;;  %v1343_v6 = vld [vmem:[#allocation4 + $0xbc] sm:$0x1] }
 0x1cf   : > { %v1600_v59 = vunpack.c.l.b16 %v1343_v6  ;;  %v1910_v6 = vrot.slane %v5323_v38, 1  ;;  %v1799_v38 = vshrl.u32 %v5306_v8, 16 }
 0x1d0   : > { %v5288_v40 = vpop.permute.xlu1 %2453  ;;  %v5316_v26 = vpop.permute.xlu2 %1832 }
 0x1d1   : > { %1949 = vrot.lane.b32.xlu0 %v1908_v57, %s4283_s15  ;;  %v5347_v37 = vpack.c.b16 %v1600_v59, %v1600_v59  ;;  %v5374_v59 = vld [vmem:[#allocation4 + $0x6c] sm:$0xff]   ;;  %v1804_v61 = vor.u32 %v1803_v10, %v1799_v38  ;;  %v4203_v10 = vld [vmem:[#allocation4 + $0x9c] sm:$0xe] }
 0x1d3   : > { %v2836_v52 = vpop.permute.xlu0 %2835 }
 0x1d4   : > { %v3194_v60 = vsel %vm3192_vm13, %v3161_v55, %v2836_v52  ;;  %v1796_v55 = vrot.slane %v1794_v13, 1 }
 0x1d5   : > { %v3227_v43 = vsel %vm3225_vm15, %v3194_v60, %v5257_v12  ;;  %v1695_v12 = vrot.slane %v1693_v17, 1 }
 0x1d6   : > { %1836 = vrot.lane.b32.xlu1 %v1785_v53, %s4282_s14  ;;  %3874 = vmatmul.msk.bf16.vlgmr.msra.gmra.mxu1 %vm3302_vm0, %v3227_v43  ;;  %v1700_v53 = vrot.slane %v1698_v32, 1  ;;  %v1608_v43 = vpack.c.b16 %v1592_v33, %v1592_v33  ;;  %v4048_v32 = vld [vmem:[#allocation4 + $0x60] sm:$0xf0] }
 0x1d7   : > { %2841 = vrot.lane.b32.xlu2 %v2690_v42, %s4289_s27  ;;  %v5352_v17 = vor.u32 %v1695_v12, %v1691_v0  ;;  %v5358_v42 = vld [vmem:[#allocation4 + $0x60] sm:$0xff]   ;;  %v1705_v0 = vshll.u32 %v5328_v31, 16 }
 0x1d8   : > { %v1815_v4 = vpop.permute.xlu1 %1814  ;;  %v5341_v54 = vpop.permute.xlu2 %2565  ;;  %v1717_v24 = vshll.u32 %v5358_v42, 16  ;;  %v1913_v12 = vrot.slane %v1608_v43, 1 }
 0x1d9   : > { %2969 = vrot.lane.b32.xlu0 %v2926_v20, %s4287_s25  ;;  %v3001_v52 = vsel %vm2995_vm14, %v4168_v1, %v1815_v4  ;;  %v1797_v4 = vsel %vm1617_vm5, %v5345_v11, %v1796_v55  ;;  %v1701_v13 = vsel %vm1617_vm5, %v5352_v17, %v1700_v53  ;;  %v1912_v20 = vrot.slane %v4198_v16, 1  ;;  %v1337_v53 = vld [vmem:[#allocation4 + $0x74] sm:$0x1] }
 0x1da   : > { %v5366_v50 = vsel %vm588_vm4, %v3001_v52, %v5279_v23  ;;  %v1911_v23 = vsel %vm1890_vm6, %v1909_v58, %v1910_v6  ;;  %v1703_v55 = vshrl.u32 %v5328_v31, 16  ;;  %v1707_v1 = vrot.slane %v1705_v0, 1  ;;  %v5386_v31 = vld [vmem:[#allocation4 + $0x6c] sm:$0xff]  }
 0x1db   : > { %v5343_v57 = vpop.permute.xlu0 %2325  ;;  %v1710_v52 = vshll.u32 %v1608_v43, 16  ;;  %v1715_v58 = vshrl.u32 %v5358_v42, 16  ;;  %v1719_v6 = vrot.slane %v1717_v24, 1  ;;  %v1722_v16 = vshll.u32 %v1609_v14, 16 }
 0x1dc   : > { %v1594_v63 = vunpack.c.l.b16 %v1337_v53  ;;  %v1708_v43 = vor.u32 %v1707_v1, %v1703_v55  ;;  %v1400_v1 = vld [vmem:[#allocation4 + $0x74] sm:$0x1]  ;;  %v4206_v53 = vld [vmem:[#allocation4 + $0x6c] sm:$0xe] }
 0x1de   : > { %2569 = vrot.lane.b32.xlu1 %v5239_v22, %s4286_s19  ;;  %v1806_v22 = vshll.u32 %v5347_v37, 16 }
 0x1df   : > { %1838 = vrot.lane.b32.xlu2 %v1797_v4, %s4282_s14  ;;  %v4200_v4 = vld [vmem:[#allocation4 + $0x6c] sm:$0xe] }
 0x1e0   : > { %v5355_v60 = vpop.permute.xlu1 %2981  ;;  %v5376_v19 = vpop.permute.xlu2 %2455  ;;  %v1808_v35 = vrot.slane %v1806_v22, 1  ;;  %v1914_v22 = vsel %vm1890_vm6, %v1912_v20, %v1913_v12  ;;  %v1916_v20 = vrot.slane %v1609_v14, 1  ;;  %v5395_v12 = vor.u32 %v1719_v6, %v1715_v58 }
 0x1e1   : > { %6234 = vst [vmem:[#allocation8_spill] sm:$0xff] %v5355_v60  ;;  %1822 = vrot.lane.b32.xlu0 %v1701_v13, %s4282_s14  ;;  %v4050_v13 = vor.u32 %v4049_v29, %v4048_v32  ;;  %v1712_v60 = vrot.slane %v1710_v52, 1  ;;  %v1610_v29 = vpack.c.b16 %v1594_v63, %v1594_v63  ;;  %v1729_v14 = vshll.u32 %v5374_v59, 16 }
 0x1e2   : > { %v1727_v58 = vshrl.u32 %v5374_v59, 16 }
 0x1e3   : > { %v2072_v33 = vpop.permute.xlu0 %2071  ;;  %v1915_v24 = vrot.slane %v4050_v13, 1  ;;  %v1713_v55 = vsel %vm1617_vm5, %v1708_v43, %v1712_v60  ;;  %v1919_v13 = vrot.slane %v1610_v29, 1  ;;  %v1731_v6 = vrot.slane %v1729_v14, 1 }
 0x1e4   : > { %v3082_v27 = vsel %vm3060_vm7, %v5293_v45, %v2072_v33  ;;  %v4205_v45 = vld [vmem:[#allocation4 + $0x6c] sm:$0xf0]  ;;  %v3019_v33 = vsel %vm2995_vm14, %v4861_v15, %v5316_v26  ;;  %v2107_v15 = vunpack.c.l.b16 %v1400_v1  ;;  %v4204_v26 = vor.u32 %v4203_v10, %v5225_v9 }
 0x1e5   : > { %v2230_v43 = vshll.u32 %v5386_v31, 16 }
 0x1e6   : > { %1951 = vrot.lane.b32.xlu1 %v1911_v23, %s4283_s15  ;;  %v1809_v23 = vsel %vm1617_vm5, %v1804_v61, %v1808_v35 }
 0x1e7   : > { %1953 = vrot.lane.b32.xlu2 %v1914_v22, %s4283_s15  ;;  %v1930_v22 = vrot.slane %v4204_v26, 1  ;;  %v2232_v14 = vrot.slane %v2230_v43, 1  ;;  %v1396_v43 = vld [vmem:[#allocation4 + $0x44] sm:$0x1] }
 0x1e8   : > { %v2344_v8 = vpop.permute.xlu1 %2343  ;;  %v5397_v32 = vpop.permute.xlu2 %2983 }
 0x1e9   : > { %v3115_v0 = vsel %vm3093_vm9, %v3082_v27, %v2344_v8  ;;  %1840 = vrot.lane.b32.xlu0 %v1809_v23, %s4282_s14  ;;  %v1724_v8 = vrot.slane %v1722_v16, 1  ;;  %v1917_v27 = vsel %vm1890_vm6, %v1915_v24, %v1916_v20  ;;  %v1734_v16 = vshll.u32 %v1610_v29, 16 }
 0x1ea   : > { %v5392_v38 = vsel %vm3126_vm10, %v3115_v0, %v5273_v18  ;;  %v4201_v18 = vor.u32 %v4200_v4, %v4199_v25  ;;  %v1931_v4 = vrot.slane %v5261_v41, 1  ;;  %v2123_v24 = vpack.c.b16 %v2107_v15, %v2107_v15 }
 0x1eb   : > { %v1962_v35 = vpop.permute.xlu0 %1961  ;;  %v1725_v63 = vsel %vm1617_vm5, %v5395_v12, %v1724_v8  ;;  %v4207_v20 = vor.u32 %v4206_v53, %v4205_v45  ;;  %v1469_v8 = vld [vmem:[#allocation4 + $0xb0] sm:$0x1]  ;;  %v1732_v29 = vor.u32 %v1731_v6, %v1727_v58  ;;  %v4102_v53 = vld [vmem:[#allocation4 + $0xa8] sm:$0xf0] }
 0x1ec   : > { %v3051_v52 = vsel %vm588_vm4, %v3019_v33, %v1962_v35  ;;  %v1918_v25 = vrot.slane %v4201_v18, 1  ;;  %v5417_v23 = vsel %vm1890_vm6, %v1930_v22, %v1931_v4  ;;  %v1736_v33 = vrot.slane %v1734_v16, 1  ;;  %v721_v15 = vpop.f32.mrf.mxu3  ;;  %v4209_v22 = vld [vmem:[#allocation4 + $0x3c] sm:$0xe] }
 0x1ed   : > { %v2427_v18 = vrot.slane %v4207_v20, 1  ;;  %v2428_v1 = vrot.slane %v2123_v24, 1  ;;  %v2235_v45 = vshll.u32 %v2123_v24, 16 }
 0x1ee   : > { %1824 = vrot.lane.b32.xlu1 %v1713_v55, %s4282_s14  ;;  %v1920_v41 = vsel %vm1890_vm6, %v1918_v25, %v1919_v13  ;;  %v2623_v55 = vunpack.c.l.b16 %v1469_v8  ;;  %v4208_v13 = vld [vmem:[#allocation4 + $0x3c] sm:$0xf0] }
 0x1ef   : > { %1826 = vrot.lane.b32.xlu2 %v1725_v63, %s4282_s14  ;;  %v4103_v63 = vld [vmem:[#allocation4 + $0xa8] sm:$0xe]  ;;  %v4169_v25 = vld [vmem:[%s4678_s10] ss:$0 sm:$0xff]  ;;  %v2429_v6 = vsel %vm1890_vm6, %v2427_v18, %v2428_v1  ;;  %v3064_v18 = vsel %vm3060_vm7, %v5139_v21, %v5208_v48 }
 0x1f0   : > { %v2074_v61 = vpop.permute.xlu1 %2073  ;;  %v2346_v0 = vpop.permute.xlu2 %2345  ;;  %v722_v4 = vadd.f32 %v4169_v25, %v721_v15 }
 0x1f1   : > { %v3084_v60 = vsel %vm3060_vm7, %v3051_v52, %v2074_v61  ;;  %1955 = vrot.lane.b32.xlu0 %v1917_v27, %s4283_s15  ;;  %v2228_v52 = vshrl.u32 %v5386_v31, 16  ;;  %v1737_v27 = vsel %vm1617_vm5, %v1732_v29, %v1736_v33  ;;  %v5432_v61 = vld [vmem:[#allocation4 + $0x3c] sm:$0xff]  }
 0x1f2   : > { %v5422_v10 = vsel %vm3093_vm9, %v3084_v60, %v2346_v0  ;;  %v2639_v60 = vpack.c.b16 %v2623_v55, %v2623_v55  ;;  %v2237_v0 = vrot.slane %v2235_v45, 1  ;;  %vm756_vm3 = vcmp.gt.f32.partialorder %v722_v4, 0.0 }
 0x1f3   : > { %v5419_v9 = vpop.permute.xlu0 %2853  ;;  %v2233_v16 = vor.u32 %v2232_v14, %v2228_v52  ;;  %v2103_v55 = vunpack.c.l.b16 %v1396_v43  ;;  %v3097_v45 = vsel %vm3093_vm9, %v3064_v18, %v5343_v57  ;;  %v2182_v48 = vshll.u32 %v5432_v61, 16  ;;  %v1289_v57 = vld [vmem:[#allocation4 + $0xc0] sm:$0xf] }
 0x1f4   : > { %v2795_v20 = vshll.u32 %v2639_v60, 16  ;;  %v2952_v33 = vrot.slane %v2639_v60, 1  ;;  %v723_v14 = vpop.f32.mrf.mxu3  ;;  %v4210_v60 = vor.u32 %v4209_v22, %v4208_v13  ;;  %v3130_v13 = vsel %vm3126_vm10, %v3097_v45, %v5288_v40 }
 0x1f5   : > { %v2238_v15 = vsel %vm1617_vm5, %v2233_v16, %v2237_v0  ;;  %v1461_v0 = vld [vmem:[#allocation4 + $0x50] sm:$0x1]  ;;  %v2180_v40 = vshrl.u32 %v5432_v61, 16 }
 0x1f6   : > { %1957 = vrot.lane.b32.xlu1 %v1920_v41, %s4283_s15  ;;  %v788_v41 = vmul.f32 0.1, %v722_v4 }
 0x1f7   : > { %2067 = vrot.lane.b32.xlu2 %v5386_v31, %s4284_s16  ;;  %v4104_v31 = vor.u32 %v4103_v63, %v4102_v53  ;;  %v2797_v63 = vrot.slane %v2795_v20, 1 }
 0x1f8   : > { %v5426_v35 = vpop.permute.xlu1 %1945  ;;  %v5435_v26 = vpop.permute.xlu2 %1947  ;;  %v820_v8 = vsel %vm756_vm3, %v722_v4, %v788_v41  ;;  %v724_v4 = vadd.f32 %v4169_v25, %v723_v14 }
 0x1f9   : > { %1828 = vrot.lane.b32.xlu0 %v1737_v27, %s4282_s14  ;;  %v2951_v29 = vrot.slane %v4104_v31, 1  ;;  %v852_v27 = vpack.c.bf16 %v820_v8, %v820_v8  ;;  %v2119_v31 = vpack.c.b16 %v2103_v55, %v2103_v55  ;;  %v2798_v20 = vsel %vm1617_vm5, %v5345_v11, %v2797_v63 }
 0x1fa   : > { %vm757_vm3 = vcmp.gt.f32.partialorder %v724_v4, 0.0  ;;  %v789_v41 = vmul.f32 0.1, %v724_v4  ;;  %v2415_v8 = vrot.slane %v4210_v60, 1 }
 0x1fb   : > { %v5438_v58 = vpop.permute.xlu0 %2055  ;;  %v1113_v1 = vshrl.u32 %v852_v27, 16  ;;  %v1116_v52 = vshll.u32 %v852_v27, 16  ;;  %v2953_v16 = vsel %vm1890_vm6, %v2951_v29, %v2952_v33  ;;  %v4090_v29 = vld [vmem:[#allocation4 + $0x48] sm:$0xf0]  ;;  %v2615_v33 = vunpack.c.l.b16 %v1461_v0 }
 0x1fc   : > { %v2416_v27 = vrot.slane %v2119_v31, 1  ;;  %v2187_v45 = vshll.u32 %v2119_v31, 16 }
 0x1fd   : > { %v1115_v43 = vrot.slane %v1113_v1, 7  ;;  %v1405_v1 = vld [vmem:[#allocation4 + $0xb0] sm:$0x1] }
 0x1fe   : > { %2467 = vrot.lane.b32.xlu1 %v2429_v6, %s4285_s17 }
 0x1ff   : > { %2587 = vrot.lane.b32.xlu2 %v5301_v46, %s4286_s19  ;;  %v1118_v25 = vor.u32 %v1116_v52, %v1115_v43  ;;  %v2184_v52 = vrot.slane %v2182_v48, 1  ;;  %v1119_v31 = vrot.slane %v1115_v43, 4 }
 0x200   : > { %v5442_v24 = vpop.permute.xlu1 %2965  ;;  %v5453_v53 = vpop.permute.xlu2 %2967 }
 0x201   : > { %2339 = vrot.lane.b32.xlu0 %v2238_v15, %s4288_s26  ;;  %v4091_v15 = vld [vmem:[#allocation4 + $0x48] sm:$0xe]  ;;  %v1290_v18 = vsel %vm4708_vm11, %v1118_v25, %v1289_v57  ;;  %v2631_v25 = vpack.c.b16 %v2615_v33, %v2615_v33  ;;  %vm3620_vm11 = vcmask 125952  }
 0x202   : > { %1291 = vst [vmem:[#allocation4 + $0xc0] sm:$0xf] %v1290_v18 }
 0x203   : > { %v2584_v6 = vpop.permute.xlu0 %2583 }
 0x204   : > { %v5458_v21 = vsel %vm3159_vm12, %v5392_v38, %v2584_v6  ;;  %v821_v38 = vsel %vm757_vm3, %v724_v4, %v789_v41  ;;  %v4092_v4 = vor.u32 %v4091_v15, %v4090_v29  ;;  %v2112_v6 = vunpack.c.l.b16 %v1405_v1  ;;  %v5487_v29 = vld [vmem:[#allocation4 + $0xb4] sm:$0xf0]  ;;  %v1470_v1 = vld [vmem:[#allocation4 + $0xbc] sm:$0x1] }
 0x205   : > { %v853_v14 = vpack.c.bf16 %v821_v38, %v821_v38  ;;  %v2189_v41 = vrot.slane %v2187_v45, 1  ;;  %v4079_v45 = vld [vmem:[#allocation4 + $0xa8] sm:$0xe] }
 0x206   : > { %2987 = vrot.lane.b32.xlu1 %v2953_v16, %s4287_s25  ;;  %v3163_v16 = vsel %vm3159_vm12, %v3130_v13, %v5341_v54 }
 0x207   : > { %2059 = vrot.lane.b32.xlu2 %v5432_v61, %s4284_s16  ;;  %v1124_v60 = vshll.u32 %v853_v14, 16  ;;  %v2417_v61 = vsel %vm1890_vm6, %v2415_v8, %v2416_v27  ;;  %v2927_v8 = vrot.slane %v4092_v4, 1  ;;  %v2128_v27 = vpack.c.b16 %v2112_v6, %v2112_v6 }
 0x208   : > { %v1817_v22 = vpop.permute.xlu1 %1816  ;;  %v5478_v47 = vpop.permute.xlu2 %1818 }
 0x209   : > { %v3003_v55 = vsel %vm2995_vm14, %v4919_v2, %v1817_v22  ;;  %2859 = vrot.lane.b32.xlu0 %v2798_v20, %s4289_s27  ;;  %v1121_v2 = vshrl.u32 %v853_v14, 16  ;;  %v1293_v22 = vld [vmem:[#allocation4 + $0xc8] sm:$0x1]  ;;  %v5485_v20 = vld [vmem:[#allocation4 + $0xb4] sm:$0xff]  }
 0x20a   : > { %v5475_v63 = vsel %vm588_vm4, %v3003_v55, %v5426_v35  ;;  %v2185_v35 = vor.u32 %v2184_v52, %v2180_v40  ;;  %v2928_v55 = vrot.slane %v2631_v25, 1  ;;  %v2295_v40 = vshll.u32 %v2128_v27, 16 }
 0x20b   : > { %v2838_v0 = vpop.permute.xlu0 %2837  ;;  %v1123_v48 = vrot.slane %v1121_v2, 7  ;;  %v2624_v2 = vunpack.c.l.b16 %v1470_v1 }
 0x20c   : > { %v3196_v57 = vsel %vm3192_vm13, %v3163_v16, %v2838_v0  ;;  %v2190_v18 = vsel %vm1617_vm5, %v2185_v35, %v2189_v41  ;;  %v2929_v52 = vsel %vm1890_vm6, %v2927_v8, %v2928_v55  ;;  %v2297_v16 = vrot.slane %v2295_v40, 1  ;;  %v4212_v35 = vld [vmem:[#allocation4 + $0xb4] sm:$0xe] }
 0x20d   : > { %v3229_v54 = vsel %vm3225_vm15, %v3196_v57, %v5442_v24  ;;  %v1126_v13 = vor.u32 %v1124_v60, %v1123_v48  ;;  %v1128_v38 = vrot.slane %v1123_v48, 4  ;;  %v2699_v24 = vshll.u32 %v2631_v25, 16  ;;  %v1397_v48 = vld [vmem:[#allocation4 + $0x50] sm:$0x1] }
 0x20e   : > { %2459 = vrot.lane.b32.xlu1 %v2417_v61, %s4285_s17  ;;  %3875 = vmatmul.msk.bf16.gmra.mxu1 %vm3302_vm0, %v3229_v54  ;;  %v4080_v0 = vor.u32 %v4079_v45, %v4078_v7  ;;  %v2640_v61 = vpack.c.b16 %v2624_v2, %v2624_v2  ;;  %v2298_v41 = vsel %vm1617_vm5, %v5345_v11, %v2297_v16  ;;  %v2104_v54 = vunpack.c.l.b16 %v1397_v48  ;;  %v1462_v2 = vld [vmem:[#allocation4 + $0x5c] sm:$0x1]  ;;  %v4066_v16 = vld [vmem:[#allocation4 + $0x48] sm:$0xf0] }
 0x20f   : > { %v1127_v33 = vsel %vm4717_vm1, %v1119_v31, %v1126_v13  ;;  %v1294_v15 = vsel %vm4722_vm2, %v1128_v38, %v1293_v22  ;;  %2571 = vrot.lane.b32.xlu2 %v5296_v34, %s4286_s19  ;;  %v2701_v4 = vrot.slane %v2699_v24, 1  ;;  %v2802_v31 = vshll.u32 %v5485_v20, 16  ;;  %v5519_v13 = vld [vmem:[#allocation4 + $0x54] sm:$0xff]  }
 0x210   : > { %v5492_v43 = vpop.permute.xlu1 %2327  ;;  %1292 = vst.msk [vmem:[#allocation4 + $0xc4] sm:$0xf] %vm1178_vm8, %v1127_v33  ;;  %v5503_v14 = vpop.permute.xlu2 %2329  ;;  %v2442_v25 = vrot.slane %v4080_v0, 1  ;;  %v2443_v22 = vrot.slane %v2128_v27, 1  ;;  %v5521_v38 = vld [vmem:[#allocation4 + $0x54] sm:$0xf0]  ;;  %v2120_v40 = vpack.c.b16 %v2104_v54, %v2104_v54  ;;  %v4213_v45 = vor.u32 %v4212_v35, %v5487_v29 }
 0x211   : > { %2331 = vrot.lane.b32.xlu0 %v2190_v18, %s4288_s26  ;;  %1295 = vst [vmem:[#allocation4 + $0xc8] sm:$0x1] %v1294_v15  ;;  %v2702_v57 = vsel %vm1617_vm5, %v5352_v17, %v2701_v4  ;;  %v2800_v55 = vshrl.u32 %v5485_v20, 16  ;;  %v2804_v33 = vrot.slane %v2802_v31, 1  ;;  %v2807_v15 = vshll.u32 %v2640_v61, 16 }
 0x212   : > { %v2444_v1 = vsel %vm1890_vm6, %v2442_v25, %v2443_v22  ;;  %v4067_v0 = vld [vmem:[#allocation4 + $0x48] sm:$0xe]  ;;  %v2616_v31 = vunpack.c.l.b16 %v1462_v2  ;;  %v2706_v54 = vshll.u32 %v5519_v13, 16 }
 0x213   : > { %v2474_v3 = vpop.permute.xlu0 %2473  ;;  %v2809_v7 = vrot.slane %v2807_v15, 1  ;;  %v4068_v29 = vor.u32 %v4067_v0, %v4066_v16 }
 0x214   : > { %v5508_v60 = vsel %vm3126_vm10, %v5422_v10, %v2474_v3  ;;  %v2632_v22 = vpack.c.b16 %v2616_v31, %v2616_v31 }
 0x216   : > { %2971 = vrot.lane.b32.xlu1 %v2929_v52, %s4287_s25  ;;  %v2805_v52 = vor.u32 %v2804_v33, %v2800_v55  ;;  %v5549_v55 = vld [vmem:[#allocation4 + $0xb4] sm:$0xf0]  ;;  %v2418_v33 = vrot.slane %v4068_v29, 1  ;;  %v2931_v29 = vrot.slane %v2632_v22, 1 }
 0x217   : > { %1965 = vrot.lane.b32.xlu2 %v5417_v23, %s4283_s15  ;;  %v4170_v23 = vld [vmem:[#allocation4 + $0x90] sm:$0xff]  }
 0x218   : > { %v1964_v6 = vpop.permute.xlu1 %1963  ;;  %v2076_v10 = vpop.permute.xlu2 %2075 }
 0x219   : > { %2843 = vrot.lane.b32.xlu0 %v2702_v57, %s4289_s27  ;;  %v2954_v57 = vrot.slane %v4213_v45, 1 }
 0x21b   : > { %v1835_v8 = vpop.permute.xlu0 %1834 }
 0x21c   : > { %v3021_v18 = vsel %vm2995_vm14, %v4170_v23, %v1835_v8  ;;  %v5547_v8 = vld [vmem:[#allocation4 + $0xb4] sm:$0xff]  }
 0x21d   : > { %v3053_v24 = vsel %vm588_vm4, %v3021_v18, %v1964_v6  ;;  %v2199_v6 = vshll.u32 %v2120_v40, 16  ;;  %v2419_v18 = vrot.slane %v2120_v40, 1 }
 0x21e   : > { %2349 = vrot.lane.b32.xlu1 %v2298_v41, %s4288_s26  ;;  %v5528_v11 = vsel %vm3060_vm7, %v3053_v24, %v2076_v10  ;;  %v2955_v10 = vrot.slane %v2640_v61, 1  ;;  %v4215_v41 = vld [vmem:[#allocation4 + $0x54] sm:$0xe]  ;;  %v3066_v61 = vsel %vm3060_vm7, %v5366_v50, %v5438_v58  ;;  %v1406_v50 = vld [vmem:[#allocation4 + $0xbc] sm:$0x1] }
 0x21f   : > { %2477 = vrot.lane.b32.xlu2 %v2444_v1, %s4285_s17  ;;  %v3099_v15 = vsel %vm3093_vm9, %v3066_v61, %v5492_v43  ;;  %v2704_v1 = vshrl.u32 %v5519_v13, 16  ;;  %v4216_v40 = vor.u32 %v4215_v41, %v5521_v38  ;;  %v2113_v45 = vunpack.c.l.b16 %v1406_v50  ;;  %v1471_v41 = vld [vmem:[#allocation4 + $0xc8] sm:$0x1]  ;;  %v5604_v50 = vld [vmem:[#allocation4 + $0xc0] sm:$0xff]  }
 0x220   : > { %v2856_v27 = vpop.permute.xlu1 %2855  ;;  %v5539_v4 = vpop.permute.xlu2 %2857  ;;  %v2956_v25 = vsel %vm1890_vm6, %v2954_v57, %v2955_v10  ;;  %v3132_v58 = vsel %vm3126_vm10, %v3099_v15, %v5376_v19  ;;  %v2302_v38 = vshll.u32 %v5547_v8, 16  ;;  %v2300_v61 = vshrl.u32 %v5547_v8, 16 }
 0x221   : > { %v5533_v3 = vsel %vm3192_vm13, %v5458_v21, %v2856_v27  ;;  %2077 = vrot.lane.b32.xlu0 %v5301_v46, %s4284_s16  ;;  %v2810_v21 = vsel %vm1617_vm5, %v2805_v52, %v2809_v7  ;;  %v2201_v46 = vrot.slane %v2199_v6, 1  ;;  %v2708_v52 = vrot.slane %v2706_v54, 1 }
 0x222   : > { %v2711_v7 = vshll.u32 %v2632_v22, 16  ;;  %v5582_v31 = vpack.c.b16 %v2113_v45, %v2113_v45 }
 0x223   : > { %v2568_v48 = vpop.permute.xlu0 %2567  ;;  %v2202_v27 = vsel %vm1617_vm5, %v5352_v17, %v2201_v46  ;;  %v2420_v17 = vsel %vm1890_vm6, %v2418_v33, %v2419_v18  ;;  %v2709_v6 = vor.u32 %v2708_v52, %v2704_v1  ;;  %v4058_v46 = vld [vmem:[#allocation4 + $0xa8] sm:$0xe]  ;;  %v2304_v33 = vrot.slane %v2302_v38, 1  ;;  %v1372_v1 = vld [vmem:[#allocation4 + $0x54] sm:$0xff]  }
 0x224   : > { %v2713_v16 = vrot.slane %v2711_v7, 1  ;;  %v2307_v15 = vshll.u32 %v5582_v31, 16  ;;  %v5601_v52 = vld [vmem:[#allocation4 + $0x54] sm:$0xf0] }
 0x226   : > { %2861 = vrot.lane.b32.xlu1 %v2810_v21, %s4289_s27  ;;  %v2714_v10 = vsel %vm1617_vm5, %v2709_v6, %v2713_v16  ;;  %v1934_v16 = vrot.slane %v5319_v56, 1 }
 0x227   : > { %2989 = vrot.lane.b32.xlu2 %v2956_v25, %s4287_s25  ;;  %v4057_v25 = vld [vmem:[#allocation4 + $0xa8] sm:$0xf0] }
 0x228   : > { %v5543_v35 = vpop.permute.xlu1 %2057  ;;  %v5559_v23 = vpop.permute.xlu2 %1820  ;;  %v4059_v7 = vor.u32 %v4058_v46, %v4057_v25 }
 0x229   : > { %2589 = vrot.lane.b32.xlu0 %v5485_v20, %s4286_s19  ;;  %v3165_v20 = vsel %vm3159_vm12, %v3132_v58, %v2568_v48  ;;  %v4171_v48 = vld [vmem:[#allocation4 + $0x30] sm:$0xff]  }
 0x22a   : > { %v3005_v21 = vsel %vm2995_vm14, %v4171_v48, %v5478_v47  ;;  %v1933_v6 = vrot.slane %v4059_v7, 1  ;;  %v4106_v7 = vld [vmem:[#allocation4 + $0xc0] sm:$0xe] }
 0x22b   : > { %v5561_v24 = vpop.permute.xlu0 %2457  ;;  %v5594_v47 = vsel %vm588_vm4, %v3005_v21, %v5435_v26  ;;  %v4218_v26 = vld [vmem:[#allocation4 + $0xb4] sm:$0xe]  ;;  %v2812_v21 = vshrl.u32 %v5604_v50, 16 }
 0x22e   : > { %2333 = vrot.lane.b32.xlu1 %v2202_v27, %s4288_s26  ;;  %v2625_v27 = vunpack.c.l.b16 %v1471_v41  ;;  %v3007_v41 = vsel %vm2995_vm14, %v5194_v39, %v5559_v23 }
 0x22f   : > { %2461 = vrot.lane.b32.xlu2 %v2420_v17, %s4285_s17 }
 0x230   : > { %v2840_v43 = vpop.permute.xlu1 %2839  ;;  %v2641_v45 = vpack.c.b16 %v2625_v27, %v2625_v27  ;;  %v4105_v27 = vld [vmem:[#allocation4 + $0xc0] sm:$0xf0] }
 0x231   : > { %v3198_v2 = vsel %vm3192_vm13, %v3165_v20, %v2840_v43  ;;  %2061 = vrot.lane.b32.xlu0 %v5296_v34, %s4284_s16  ;;  %v5579_v19 = vpop.permute.xlu2 %2841  ;;  %v2305_v20 = vor.u32 %v2304_v33, %v2300_v61  ;;  %v1463_v33 = vld [vmem:[#allocation4 + $0x68] sm:$0x1] }
 0x232   : > { %v3231_v0 = vsel %vm3225_vm15, %v3198_v2, %v5453_v53  ;;  %v2930_v53 = vrot.slane %v4216_v40, 1  ;;  %v2814_v40 = vshll.u32 %v5604_v50, 16  ;;  %v1398_v2 = vld [vmem:[#allocation4 + $0x5c] sm:$0x1]  ;;  %v2617_v39 = vunpack.c.l.b16 %v1463_v33 }
 0x233   : > { %3876 = vmatmul.msk.bf16.gmra.mxu1 %vm3302_vm0, %v3231_v0  ;;  %v5586_v57 = vpop.permute.xlu0 %2985  ;;  %v2105_v38 = vunpack.c.l.b16 %v1398_v2  ;;  %v4107_v2 = vor.u32 %v4106_v7, %v4105_v27 }
 0x234   : > { %v2932_v22 = vsel %vm1890_vm6, %v2930_v53, %v2931_v29  ;;  %v2819_v53 = vshll.u32 %v2641_v45, 16  ;;  %v1935_v29 = vsel %vm1890_vm6, %v1933_v6, %v1934_v16 }
 0x235   : > { %v5632_v61 = vpack.c.b16 %v2105_v38, %v2105_v38  ;;  %v5653_v38 = vpack.c.b16 %v2617_v39, %v2617_v39  ;;  %v4093_v39 = vld [vmem:[#allocation4 + $0x60] sm:$0xf0] }
 0x236   : > { %2845 = vrot.lane.b32.xlu1 %v2714_v10, %s4289_s27  ;;  %v2816_v10 = vrot.slane %v2814_v40, 1 }
 0x237   : > { %2973 = vrot.lane.b32.xlu2 %v2932_v22, %s4287_s25  ;;  %v2446_v22 = vrot.slane %v5582_v31, 1  ;;  %v4221_v31 = vld [vmem:[#allocation4 + $0x54] sm:$0xe] }
 0x238   : > { %v2586_v54 = vpop.permute.xlu1 %2585  ;;  %v5630_v46 = vor.u32 %v2816_v10, %v2812_v21  ;;  %v2957_v21 = vrot.slane %v4107_v2, 1  ;;  %v2958_v10 = vrot.slane %v2641_v45, 1 }
 0x239   : > { %v5598_v18 = vsel %vm3159_vm12, %v5508_v60, %v2586_v54  ;;  %2573 = vrot.lane.b32.xlu0 %v5519_v13, %s4286_s19  ;;  %v5608_v58 = vpop.permute.xlu2 %1838  ;;  %v2309_v60 = vrot.slane %v2307_v15, 1  ;;  %v2821_v54 = vrot.slane %v2819_v53, 1  ;;  %v4224_v53 = vld [vmem:[#allocation4 + $0xb4] sm:$0xe] }
 0x23a   : > { %v4225_v27 = vor.u32 %v4224_v53, %v5308_v36 }
 0x23b   : > { %v2348_v43 = vpop.permute.xlu0 %2347  ;;  %v2310_v0 = vsel %vm1617_vm5, %v2305_v20, %v2309_v60  ;;  %v2822_v23 = vsel %vm1617_vm5, %v5630_v46, %v2821_v54  ;;  %v2204_v20 = vshrl.u32 %v1372_v1, 16 }
 0x23c   : > { %v3119_v17 = vsel %vm3093_vm9, %v5528_v11, %v2348_v43  ;;  %v4219_v11 = vor.u32 %v4218_v26, %v5549_v55  ;;  %v2211_v43 = vshll.u32 %v5632_v61, 16 }
 0x23e   : > { %2079 = vrot.lane.b32.xlu1 %v5547_v8, %s4284_s16  ;;  %v2206_v8 = vshll.u32 %v1372_v1, 16  ;;  %v2445_v55 = vrot.slane %v4219_v11, 1 }
 0x23f   : > { %2351 = vrot.lane.b32.xlu2 %v2310_v0, %s4288_s26  ;;  %v2213_v0 = vrot.slane %v2211_v43, 1 }
 0x240   : > { %v2476_v13 = vpop.permute.xlu1 %2475  ;;  %v2208_v60 = vrot.slane %v2206_v8, 1  ;;  %v2447_v40 = vsel %vm1890_vm6, %v2445_v55, %v2446_v22 }
 0x241   : > { %v5618_v48 = vsel %vm3126_vm10, %v3119_v17, %v2476_v13  ;;  %1967 = vrot.lane.b32.xlu0 %v1935_v29, %s4283_s15  ;;  %v5625_v56 = vpop.permute.xlu2 %1953  ;;  %v3068_v17 = vsel %vm3060_vm7, %v5475_v63, %v5543_v35 }
 0x242   : > { %v2209_v13 = vor.u32 %v2208_v60, %v2204_v20  ;;  %v3101_v29 = vsel %vm3093_vm9, %v3068_v17, %v5503_v14  ;;  %v4222_v14 = vor.u32 %v4221_v31, %v5601_v52  ;;  %v2422_v52 = vrot.slane %v5632_v61, 1  ;;  %v1407_v20 = vld [vmem:[#allocation4 + $0xc8] sm:$0x1]  ;;  %v428_v60 = vld [vmem:[#allocation2] sm:$0xff]  ;;  %v5689_v61 = vld [vmem:[#allocation4 + $0xcc] sm:$0xff]  }
 0x243   : > { %v1950_v25 = vpop.permute.xlu0 %1949  ;;  %v3134_v11 = vsel %vm3126_vm10, %v3101_v29, %v5561_v24  ;;  %v1937_v17 = vrot.slane %v5347_v37, 1  ;;  %v2114_v53 = vunpack.c.l.b16 %v1407_v20  ;;  %v4227_v37 = vld [vmem:[#allocation4 + $0xcc] sm:$0xe] }
 0x244   : > { %v5635_v15 = vsel %vm588_vm4, %v3007_v41, %v1950_v25  ;;  %v2214_v8 = vsel %vm1617_vm5, %v2209_v13, %v2213_v0  ;;  %v2723_v41 = vshll.u32 %v5653_v38, 16  ;;  %v2959_v25 = vsel %vm1890_vm6, %v2957_v21, %v2958_v10  ;;  %v4082_v10 = vld [vmem:[#allocation4 + $0xc0] sm:$0xe] }
 0x246   : > { %2591 = vrot.lane.b32.xlu1 %v5604_v50, %s4286_s19  ;;  %v2725_v22 = vrot.slane %v2723_v41, 1 }
 0x247   : > { %2863 = vrot.lane.b32.xlu2 %v2822_v23, %s4289_s27  ;;  %v4094_v23 = vld [vmem:[#allocation4 + $0x60] sm:$0xe] }
 0x248   : > { %v5640_v26 = vpop.permute.xlu1 %1836  ;;  %v2726_v31 = vsel %vm1617_vm5, %v5395_v12, %v2725_v22  ;;  %v4095_v21 = vor.u32 %v4094_v23, %v4093_v39 }
 0x249   : > { %2479 = vrot.lane.b32.xlu0 %v2447_v40, %s4285_s17  ;;  %v5651_v6 = vpop.permute.xlu2 %1826 }
 0x24b   : > { %v2970_v16 = vpop.permute.xlu0 %2969 }
 0x24e   : > { %2063 = vrot.lane.b32.xlu1 %v1372_v1, %s4284_s16  ;;  %v5666_v1 = vld [vmem:[%s5314_s11] ss:$0 sm:$0xff] }
 0x24f   : > { %2335 = vrot.lane.b32.xlu2 %v2214_v8, %s4288_s26 }
 0x250   : > { %v2570_v63 = vpop.permute.xlu1 %2569 }
 0x251   : > { %v3167_v35 = vsel %vm3159_vm12, %v3134_v11, %v2570_v63  ;;  %2991 = vrot.lane.b32.xlu0 %v2959_v25, %s4287_s25  ;;  %v5674_v54 = vpop.permute.xlu2 %2067  ;;  %v1472_v11 = vld [vmem:[#allocation4 + $0xd4] sm:$0x1] }
 0x252   : > { %v3200_v45 = vsel %vm3192_vm13, %v3167_v35, %v5579_v19  ;;  %v2421_v19 = vrot.slane %v4222_v14, 1  ;;  %v2626_v22 = vunpack.c.l.b16 %v1472_v11  ;;  %v4070_v11 = vld [vmem:[#allocation4 + $0x60] sm:$0xe] }
 0x253   : > { %v3233_v24 = vsel %vm3225_vm15, %v3200_v45, %v2970_v16  ;;  %v3348_v33 = vpop.f32.mrf.mxu1  ;;  %v1823_v55 = vpop.permute.xlu0 %1822  ;;  %v4226_v16 = vld [vmem:[#allocation4 + $0xcc] sm:$0xf0] }
 0x254   : > { %3877 = vmatmul.msk.bf16.gmra.mxu1 %vm3302_vm0, %v3233_v24  ;;  %v3349_v7 = vadd.f32 %v5666_v1, %v3348_v33  ;;  %v3009_v40 = vsel %vm2995_vm14, %v5296_v34, %v1823_v55  ;;  %v2423_v0 = vsel %vm1890_vm6, %v2421_v19, %v2422_v52  ;;  %v4081_v34 = vld [vmem:[#allocation4 + $0xc0] sm:$0xf0]  ;;  %v2933_v24 = vrot.slane %v4095_v21, 1 }
 0x255   : > { %v4083_v45 = vor.u32 %v4082_v10, %v4081_v34  ;;  %v2934_v33 = vrot.slane %v5653_v38, 1  ;;  %v2130_v55 = vpack.c.b16 %v2114_v53, %v2114_v53  ;;  %v2642_v38 = vpack.c.b16 %v2626_v22, %v2626_v22  ;;  %v1464_v22 = vld [vmem:[#allocation4 + $0x74] sm:$0x1] }
 0x256   : > { %2575 = vrot.lane.b32.xlu1 %v5358_v42, %s4286_s19  ;;  %vm3428_vm8 = vcmp.gt.f32.partialorder %v3349_v7, 0.0  ;;  %v3460_v43 = vmul.f32 0.1, %v3349_v7  ;;  %v1936_v42 = vrot.slane %v4225_v27, 1  ;;  %v429_v27 = vld [vmem:[#allocation2 + $0x8] sm:$0xff]  ;;  %v2824_v21 = vshrl.u32 %v5689_v61, 16 }
 0x257   : > { %2847 = vrot.lane.b32.xlu2 %v2726_v31, %s4289_s27  ;;  %v2449_v52 = vrot.slane %v2130_v55, 1  ;;  %v2935_v23 = vsel %vm1890_vm6, %v2933_v24, %v2934_v33  ;;  %v2319_v20 = vshll.u32 %v2130_v55, 16  ;;  %v2831_v10 = vshll.u32 %v2642_v38, 16 }
 0x258   : > { %v1952_v2 = vpop.permute.xlu1 %1951  ;;  %v3492_v13 = vsel %vm3428_vm8, %v3349_v7, %v3460_v43  ;;  %v1938_v25 = vsel %vm1890_vm6, %v1936_v42, %v1937_v17  ;;  %v4228_v43 = vor.u32 %v4227_v37, %v4226_v16 }
 0x259   : > { %v5684_v36 = vsel %vm588_vm4, %v3009_v40, %v1952_v2  ;;  %v5693_v29 = vadd.f32 %v3492_v13, %v428_v60  ;;  %2463 = vrot.lane.b32.xlu0 %v2423_v0, %s4285_s17  ;;  %v2588_v12 = vpop.permute.xlu2 %2587  ;;  %v3216_v40 = vsel %vm3192_vm13, %v5598_v18, %v5539_v4  ;;  %v2826_v2 = vshll.u32 %v5689_v61, 16 }
 0x25a   : > { %v5704_v41 = vsel %vm3159_vm12, %v5618_v48, %v2588_v12  ;;  %v2448_v48 = vrot.slane %v4083_v45, 1  ;;  %v5725_v31 = vsel %vm3225_vm15, %v3216_v40, %v5586_v57  ;;  %v2321_v16 = vrot.slane %v2319_v20, 1  ;;  %v1399_v57 = vld [vmem:[#allocation4 + $0x68] sm:$0x1]  ;;  %v4069_v12 = vld [vmem:[#allocation4 + $0x60] sm:$0xf0] }
 0x25b   : > { %3556 = vst.msk [vmem:[#allocation2] sm:$0xff] %vm588_vm4, %v5693_v29  ;;  %v3588_v63 = vpack.c.bf16 %v5693_v29, %v5693_v29  ;;  %v3350_v35 = vpop.f32.mrf.mxu1  ;;  %v5700_v8 = vpop.permute.xlu0 %1840  ;;  %v2960_v18 = vrot.slane %v4228_v43, 1  ;;  %v2961_v13 = vrot.slane %v2642_v38, 1  ;;  %v2828_v34 = vrot.slane %v2826_v2, 1  ;;  %v4229_v45 = vld [vmem:[#allocation4 + $0x6c] sm:$0xf0] }
 0x25c   : > { %v3351_v14 = vadd.f32 %v5666_v1, %v3350_v35  ;;  %v2450_v17 = vsel %vm1890_vm6, %v2448_v48, %v2449_v52  ;;  %v2322_v53 = vsel %vm1617_vm5, %v5630_v46, %v2321_v16  ;;  %v2106_v37 = vunpack.c.l.b16 %v1399_v57  ;;  %v4024_v35 = vld [vmem:[#allocation4 + $0x60] sm:$0xff]  }
 0x25d   : > { %3621 = vst.msk [vmem:[#allocation3] sm:$0xf] %vm3620_vm11, %v3588_v63  ;;  %v2962_v63 = vsel %vm1890_vm6, %v2960_v18, %v2961_v13  ;;  %v2833_v24 = vrot.slane %v2831_v10, 1  ;;  %v4071_v55 = vor.u32 %v4070_v11, %v4069_v12  ;;  %v2218_v46 = vshll.u32 %v4024_v35, 16 }
 0x25e   : > { %1969 = vrot.lane.b32.xlu1 %v1938_v25, %s4283_s15  ;;  %vm3429_vm1 = vcmp.gt.f32.partialorder %v3351_v14, 0.0  ;;  %v3461_v7 = vmul.f32 0.1, %v3351_v14  ;;  %v1439_v25 = vld [vmem:[#allocation4 + $0x6c] sm:$0xff]   ;;  %v2216_v52 = vshrl.u32 %v4024_v35, 16 }
 0x25f   : > { %2081 = vrot.lane.b32.xlu2 %v5604_v50, %s4284_s16  ;;  %v2424_v43 = vrot.slane %v4071_v55, 1 }
 0x260   : > { %v5711_v19 = vpop.permute.xlu1 %1824  ;;  %v3493_v39 = vsel %vm3429_vm1, %v3351_v14, %v3461_v7  ;;  %v2829_v14 = vor.u32 %v2828_v34, %v2824_v21 }
 0x261   : > { %v5716_v60 = vadd.f32 %v3493_v39, %v429_v27  ;;  %2975 = vrot.lane.b32.xlu0 %v2935_v23, %s4287_s25  ;;  %v5734_v4 = vpop.permute.xlu2 %2059  ;;  %v2122_v27 = vpack.c.b16 %v2106_v37, %v2106_v37  ;;  %v2618_v39 = vunpack.c.l.b16 %v1464_v22  ;;  %v4172_v23 = vld [vmem:[#allocation4 + $0x60] sm:$0xff]  }
 0x262   : > { %v2834_v48 = vsel %vm1617_vm5, %v2829_v14, %v2833_v24  ;;  %v3013_v20 = vsel %vm2995_vm14, %v4172_v23, %v5651_v6 }
 0x263   : > { %3557 = vst.msk [vmem:[#allocation2 + $0x8] sm:$0xff] %vm588_vm4, %v5716_v60  ;;  %v3589_v50 = vpack.c.bf16 %v5716_v60, %v5716_v60  ;;  %v1956_v42 = vpop.permute.xlu0 %1955  ;;  %v2425_v40 = vrot.slane %v2122_v27, 1  ;;  %v2634_v16 = vpack.c.b16 %v2618_v39, %v2618_v39 }
 0x264   : > { %v3045_v2 = vsel %vm588_vm4, %v3013_v20, %v1956_v42 }
 0x265   : > { %3622 = vst.msk [vmem:[#allocation3 + $0x4] sm:$0xf] %vm3620_vm11, %v3589_v50  ;;  %v2220_v50 = vrot.slane %v2218_v46, 1  ;;  %v3078_v13 = vsel %vm3060_vm7, %v3045_v2, %v5674_v54  ;;  %v2426_v6 = vsel %vm1890_vm6, %v2424_v43, %v2425_v40 }
 0x266   : > { %2481 = vrot.lane.b32.xlu1 %v2450_v17, %s4285_s17  ;;  %v2223_v17 = vshll.u32 %v2122_v27, 16 }
 0x267   : > { %2593 = vrot.lane.b32.xlu2 %v5689_v61, %s4286_s19  ;;  %v4230_v61 = vld [vmem:[#allocation4 + $0x6c] sm:$0xe]  ;;  %v2221_v34 = vor.u32 %v2220_v50, %v2216_v52 }
 0x268   : > { %v1958_v0 = vpop.permute.xlu1 %1957  ;;  %v4231_v21 = vor.u32 %v4230_v61, %v4229_v45  ;;  %v2225_v10 = vrot.slane %v2223_v17, 1  ;;  %v2728_v45 = vshrl.u32 %v1439_v25, 16 }
 0x269   : > { %2353 = vrot.lane.b32.xlu0 %v2322_v53, %s4288_s26  ;;  %v2572_v38 = vpop.permute.xlu2 %2571  ;;  %v2730_v53 = vshll.u32 %v1439_v25, 16 }
 0x26a   : > { %v2226_v14 = vsel %vm1617_vm5, %v2221_v34, %v2225_v10 }
 0x26b   : > { %v1829_v33 = vpop.permute.xlu0 %1828 }
 0x26c   : > { %v3015_v18 = vsel %vm2995_vm14, %v5374_v59, %v1829_v33  ;;  %v2732_v33 = vrot.slane %v2730_v53, 1  ;;  %v431_v53 = vld [vmem:[#allocation2 + $0x18] sm:$0xff] }
 0x26d   : > { %v3047_v11 = vsel %vm588_vm4, %v3015_v18, %v1958_v0  ;;  %v2735_v0 = vshll.u32 %v2634_v16, 16 }
 0x26e   : > { %2993 = vrot.lane.b32.xlu1 %v2962_v63, %s4287_s25  ;;  %v2936_v63 = vrot.slane %v4231_v21, 1  ;;  %v3080_v55 = vsel %vm3060_vm7, %v3047_v11, %v5068_v30 }
 0x26f   : > { %2065 = vrot.lane.b32.xlu2 %v4024_v35, %s4284_s16  ;;  %v2937_v35 = vrot.slane %v2634_v16, 1  ;;  %v2737_v46 = vrot.slane %v2735_v0, 1 }
 0x270   : > { %v2468_v7 = vpop.permute.xlu1 %2467 }
 0x271   : > { %2865 = vrot.lane.b32.xlu0 %v2834_v48, %s4289_s27  ;;  %v5771_v22 = vpop.permute.xlu2 %1965 }
 0x273   : > { %v2340_v57 = vpop.permute.xlu0 %2339 }
 0x274   : > { %v3111_v42 = vsel %vm3093_vm9, %v3078_v13, %v2340_v57  ;;  %v430_v13 = vld [vmem:[#allocation2 + $0x10] sm:$0xff] }
 0x275   : > { %v3144_v12 = vsel %vm3126_vm10, %v3111_v42, %v2468_v7 }
 0x276   : > { %2465 = vrot.lane.b32.xlu1 %v2426_v6, %s4285_s17  ;;  %v3177_v59 = vsel %vm3159_vm12, %v3144_v12, %v5036_v44 }
 0x277   : > { %v3210_v54 = vsel %vm3192_vm13, %v3177_v59, %v5210_v28  ;;  %2577 = vrot.lane.b32.xlu2 %v1439_v25, %s4286_s19  ;;  %v2938_v28 = vsel %vm1890_vm6, %v2936_v63, %v2937_v35  ;;  %v2733_v25 = vor.u32 %v2732_v33, %v2728_v45  ;;  %v3247_v63 = vsel %vm3225_vm15, %v5533_v3, %v5397_v32 }
 0x278   : > { %v5759_v37 = vpop.permute.xlu1 %2987  ;;  %v3243_v24 = vsel %vm3225_vm15, %v3210_v54, %v5148_v49  ;;  %v3113_v49 = vsel %vm3093_vm9, %v3080_v55, %v5243_v62  ;;  %v3070_v62 = vsel %vm3060_vm7, %v5594_v47, %v5734_v4 }
 0x279   : > { %2337 = vrot.lane.b32.xlu0 %v2226_v14, %s4288_s26  ;;  %3882 = vmatmul.msk.bf16.vlgmr.msra.gmra.mxu2 %vm3302_vm0, %v3243_v24  ;;  %v3146_v30 = vsel %vm3126_vm10, %v3113_v49, %v5186_v5  ;;  %v2738_v61 = vsel %vm1617_vm5, %v2733_v25, %v2737_v46  ;;  %v5787_v48 = vpop.permute.xlu2 %2477  ;;  %v6235_v5 = vld [vmem:[#allocation7_spill] sm:$0xff] }
 0x27a   : > { %v3179_v7 = vsel %vm3159_vm12, %v3146_v30, %v5234_v51  ;;  %v3011_v20 = vsel %vm2995_vm14, %v6235_v5, %v5711_v19  ;;  %v6236_v51 = vld [vmem:[#allocation8_spill] sm:$0xff] }
 0x27b   : > { %v5775_v44 = vpop.permute.xlu0 %2859  ;;  %v3212_v23 = vsel %vm3192_vm13, %v3179_v7, %v5419_v9  ;;  %v5804_v47 = vsel %vm588_vm4, %v3011_v20, %v5625_v56 }
 0x27c   : > { %v3245_v2 = vsel %vm3225_vm15, %v3212_v23, %v6236_v51  ;;  %v3218_v5 = vsel %vm3192_vm13, %v5704_v41, %v5775_v44  ;;  %v433_v44 = vld [vmem:[#allocation2 + $0x28] sm:$0xff] }
 0x27e   : > { %2977 = vrot.lane.b32.xlu1 %v2938_v28, %s4287_s25 }
 0x280   : > { %v2460_v27 = vpop.permute.xlu1 %2459 }
 0x281   : > { %2849 = vrot.lane.b32.xlu0 %v2738_v61, %s4289_s27  ;;  %v5809_v16 = vpop.permute.xlu2 %2989 }
 0x283   : > { %v2332_v52 = vpop.permute.xlu0 %2331 }
 0x284   : > { %v3103_v39 = vsel %vm3093_vm9, %v3070_v62, %v2332_v52  ;;  %v432_v52 = vld [vmem:[#allocation2 + $0x20] sm:$0xff] }
 0x285   : > { %v3136_v40 = vsel %vm3126_vm10, %v3103_v39, %v2460_v27 }
 0x286   : > { %v3169_v50 = vsel %vm3159_vm12, %v3136_v40, %v2572_v38 }
 0x288   : > { %v2972_v43 = vpop.permute.xlu1 %2971 }
 0x289   : > { %3883 = vmatmul.msk.bf16.gmra.mxu2 %vm3302_vm0, %v3245_v2  ;;  %v2462_v59 = vpop.permute.xlu2 %2461 }
 0x28b   : > { %v3353_v4 = vpop.f32.mrf.mxu1  ;;  %v2844_v9 = vpop.permute.xlu0 %2843 }
 0x28c   : > { %v3354_v17 = vadd.f32 %v5666_v1, %v3353_v4  ;;  %v3202_v19 = vsel %vm3192_vm13, %v3169_v50, %v2844_v9  ;;  %v3251_v4 = vsel %vm3225_vm15, %v3218_v5, %v5759_v37  ;;  %v6237_v50 = vld [vmem:[#allocation5_spill] sm:$0xff]  ;;  %v6238_v5 = vld [vmem:[#allocation6_spill] sm:$0xff] }
 0x28d   : > { %v3235_v18 = vsel %vm3225_vm15, %v3202_v19, %v2972_v43  ;;  %v3023_v41 = vsel %vm2995_vm14, %v6237_v50, %v5640_v26 }
 0x28e   : > { %vm3430_vm5 = vcmp.gt.f32.partialorder %v3354_v17, 0.0  ;;  %v3462_v57 = vmul.f32 0.1, %v3354_v17  ;;  %3878 = vmatmul.msk.bf16.gmra.mxu1 %vm3302_vm0, %v3235_v18 }
 0x290   : > { %v5813_v6 = vpop.permute.xlu1 %2349  ;;  %v3494_v56 = vsel %vm3430_vm5, %v3354_v17, %v3462_v57  ;;  %v3055_v17 = vsel %vm588_vm4, %v3023_v41, %v5771_v22 }
 0x291   : > { %v5815_v21 = vadd.f32 %v3494_v56, %v430_v13  ;;  %v2974_v33 = vpop.permute.xlu2 %2973 }
 0x293   : > { %3558 = vst.msk [vmem:[#allocation2 + $0x10] sm:$0xff] %vm588_vm4, %v5815_v21  ;;  %v3590_v38 = vpack.c.bf16 %v5815_v21, %v5815_v21  ;;  %v3355_v34 = vpop.f32.mrf.mxu1  ;;  %v2078_v42 = vpop.permute.xlu0 %2077 }
 0x294   : > { %v3356_v10 = vadd.f32 %v5666_v1, %v3355_v34  ;;  %v3088_v19 = vsel %vm3060_vm7, %v3055_v17, %v2078_v42 }
 0x295   : > { %3623 = vst.msk [vmem:[#allocation3 + $0x8] sm:$0xf] %vm3620_vm11, %v3590_v38  ;;  %v3121_v37 = vsel %vm3093_vm9, %v3088_v19, %v5813_v6 }
 0x296   : > { %vm3431_vm6 = vcmp.gt.f32.partialorder %v3356_v10, 0.0  ;;  %v3463_v12 = vmul.f32 0.1, %v3356_v10  ;;  %v3154_v22 = vsel %vm3126_vm10, %v3121_v37, %v5787_v48 }
 0x298   : > { %v2862_v11 = vpop.permute.xlu1 %2861  ;;  %v3495_v54 = vsel %vm3431_vm6, %v3356_v10, %v3463_v12  ;;  %v4173_v12 = vld [vmem:[#allocation4 + $0xa8] sm:$0xff]  }
 0x299   : > { %v5826_v35 = vadd.f32 %v3495_v54, %v431_v53  ;;  %3884 = vmatmul.msk.bf16.gmra.mxu2 %vm3302_vm0, %v3247_v63  ;;  %v2352_v28 = vpop.permute.xlu2 %2351 }
 0x29b   : > { %3559 = vst.msk [vmem:[#allocation2 + $0x18] sm:$0xff] %vm588_vm4, %v5826_v35  ;;  %v3591_v45 = vpack.c.bf16 %v5826_v35, %v5826_v35  ;;  %v2590_v14 = vpop.permute.xlu0 %2589 }
 0x29c   : > { %v3187_v34 = vsel %vm3159_vm12, %v3154_v22, %v2590_v14 }
 0x29d   : > { %3624 = vst.msk [vmem:[#allocation3 + $0xc] sm:$0xf] %vm3620_vm11, %v3591_v45  ;;  %v3220_v10 = vsel %vm3192_vm13, %v3187_v34, %v2862_v11 }
 0x29e   : > { %v3253_v6 = vsel %vm3225_vm15, %v3220_v10, %v5809_v16 }
 0x2a0   : > { %v2334_v24 = vpop.permute.xlu1 %2333 }
 0x2a1   : > { %v2864_v20 = vpop.permute.xlu2 %2863 }
 0x2a3   : > { %v2062_v0 = vpop.permute.xlu0 %2061 }
 0x2a4   : > { %v3072_v55 = vsel %vm3060_vm7, %v5635_v15, %v2062_v0 }
 0x2a5   : > { %v3105_v3 = vsel %vm3093_vm9, %v3072_v55, %v2334_v24 }
 0x2a6   : > { %v3138_v49 = vsel %vm3126_vm10, %v3105_v3, %v2462_v59  ;;  %v3025_v59 = vsel %vm2995_vm14, %v4173_v12, %v5608_v58 }
 0x2a8   : > { %v2846_v32 = vpop.permute.xlu1 %2845 }
 0x2a9   : > { %3885 = vmatmul.msk.bf16.gmra.mxu2 %vm3302_vm0, %v5725_v31  ;;  %v2336_v38 = vpop.permute.xlu2 %2335 }
 0x2ab   : > { %v2574_v25 = vpop.permute.xlu0 %2573 }
 0x2ac   : > { %v3171_v46 = vsel %vm3159_vm12, %v3138_v49, %v2574_v25 }
 0x2ad   : > { %v3204_v27 = vsel %vm3192_vm13, %v3171_v46, %v2846_v32  ;;  %v434_v32 = vld [vmem:[#allocation2 + $0x30] sm:$0xff] }
 0x2ae   : > { %v3237_v7 = vsel %vm3225_vm15, %v3204_v27, %v2974_v33 }
 0x2af   : > { %3879 = vmatmul.msk.bf16.gmra.mxu1 %vm3302_vm0, %v3237_v7 }
 0x2b0   : > { %v2080_v30 = vpop.permute.xlu1 %2079  ;;  %v3358_v61 = vpop.f32.mrf.mxu1 }
 0x2b1   : > { %v3359_v15 = vadd.f32 %v5666_v1, %v3358_v61  ;;  %v2848_v63 = vpop.permute.xlu2 %2847 }
 0x2b3   : > { %vm3432_vm2 = vcmp.gt.f32.partialorder %v3359_v15, 0.0  ;;  %v3464_v62 = vmul.f32 0.1, %v3359_v15  ;;  %v1968_v39 = vpop.permute.xlu0 %1967 }
 0x2b4   : > { %v3057_v48 = vsel %vm588_vm4, %v3025_v59, %v1968_v39 }
 0x2b5   : > { %v3496_v31 = vsel %vm3432_vm2, %v3359_v15, %v3464_v62  ;;  %v3090_v11 = vsel %vm3060_vm7, %v3057_v48, %v2080_v30 }
 0x2b6   : > { %v5845_v23 = vadd.f32 %v3496_v31, %v432_v52  ;;  %v3123_v0 = vsel %vm3093_vm9, %v3090_v11, %v2352_v28 }
 0x2b8   : > { %3560 = vst.msk [vmem:[#allocation2 + $0x20] sm:$0xff] %vm588_vm4, %v5845_v23  ;;  %v3592_v43 = vpack.c.bf16 %v5845_v23, %v5845_v23  ;;  %v2592_v40 = vpop.permute.xlu1 %2591  ;;  %v3360_v51 = vpop.f32.mrf.mxu1 }
 0x2b9   : > { %v3361_v2 = vadd.f32 %v5666_v1, %v3360_v51  ;;  %3886 = vmatmul.msk.bf16.gmra.mxu2 %vm3302_vm0, %v3251_v4  ;;  %v2082_v27 = vpop.permute.xlu2 %2081  ;;  %v435_v51 = vld [vmem:[#allocation2 + $0x38] sm:$0xff] }
 0x2ba   : > { %3625 = vst.msk [vmem:[#allocation3 + $0x10] sm:$0xf] %vm3620_vm11, %v3592_v43  ;;  %v3027_v43 = vsel %vm2995_vm14, %v6238_v5, %v5700_v8 }
 0x2bb   : > { %vm3433_vm3 = vcmp.gt.f32.partialorder %v3361_v2, 0.0  ;;  %v3465_v9 = vmul.f32 0.1, %v3361_v2  ;;  %v2480_v13 = vpop.permute.xlu0 %2479 }
 0x2bc   : > { %v3156_v55 = vsel %vm3126_vm10, %v3123_v0, %v2480_v13 }
 0x2bd   : > { %v3497_v18 = vsel %vm3433_vm3, %v3361_v2, %v3465_v9  ;;  %v3189_v46 = vsel %vm3159_vm12, %v3156_v55, %v2592_v40 }
 0x2be   : > { %v5865_v57 = vadd.f32 %v3497_v18, %v433_v44  ;;  %v3222_v62 = vsel %vm3192_vm13, %v3189_v46, %v2864_v20 }
 0x2c0   : > { %3561 = vst.msk [vmem:[#allocation2 + $0x28] sm:$0xff] %vm588_vm4, %v5865_v57  ;;  %v3593_v26 = vpack.c.bf16 %v5865_v57, %v5865_v57  ;;  %v2064_v56 = vpop.permute.xlu1 %2063 }
 0x2c1   : > { %v3074_v54 = vsel %vm3060_vm7, %v5684_v36, %v2064_v56  ;;  %v2594_v44 = vpop.permute.xlu2 %2593 }
 0x2c2   : > { %3626 = vst.msk [vmem:[#allocation3 + $0x14] sm:$0xf] %vm3620_vm11, %v3593_v26  ;;  %v3107_v14 = vsel %vm3093_vm9, %v3074_v54, %v2336_v38 }
 0x2c3   : > { %v2992_v42 = vpop.permute.xlu0 %2991 }
 0x2c4   : > { %v3255_v39 = vsel %vm3225_vm15, %v3222_v62, %v2992_v42 }
 0x2c8   : > { %v2576_v53 = vpop.permute.xlu1 %2575 }
 0x2c9   : > { %3887 = vmatmul.msk.bf16.gmra.mxu2 %vm3302_vm0, %v3253_v6  ;;  %v2066_v26 = vpop.permute.xlu2 %2065 }
 0x2ca   : > { %v3076_v34 = vsel %vm3060_vm7, %v5804_v47, %v2066_v26 }
 0x2cb   : > { %v2464_v45 = vpop.permute.xlu0 %2463 }
 0x2cc   : > { %v3140_v24 = vsel %vm3126_vm10, %v3107_v14, %v2464_v45  ;;  %v444_v14 = vld [vmem:[#allocation2 + $0x80] sm:$0xff] }
 0x2cd   : > { %v3173_v58 = vsel %vm3159_vm12, %v3140_v24, %v2576_v53 }
 0x2ce   : > { %v3206_v25 = vsel %vm3192_vm13, %v3173_v58, %v2848_v63  ;;  %v445_v58 = vld [vmem:[#allocation2 + $0x88] sm:$0xff] }
 0x2d0   : > { %v1970_v16 = vpop.permute.xlu1 %1969 }
 0x2d1   : > { %v3363_v33 = vpop.f32.mrf.mxu1  ;;  %v3059_v40 = vsel %vm588_vm4, %v3027_v43, %v1970_v16  ;;  %v2578_v53 = vpop.permute.xlu2 %2577 }
 0x2d2   : > { %v3364_v36 = vadd.f32 %v5666_v1, %v3363_v33  ;;  %v3092_v41 = vsel %vm3060_vm7, %v3059_v40, %v2082_v27 }
 0x2d3   : > { %v2976_v49 = vpop.permute.xlu0 %2975 }
 0x2d4   : > { %vm3434_vm8 = vcmp.gt.f32.partialorder %v3364_v36, 0.0  ;;  %v3466_v3 = vmul.f32 0.1, %v3364_v36  ;;  %v3239_v61 = vsel %vm3225_vm15, %v3206_v25, %v2976_v49 }
 0x2d5   : > { %3880 = vmatmul.msk.bf16.gmra.mxu1 %vm3302_vm0, %v3239_v61 }
 0x2d6   : > { %v3498_v30 = vsel %vm3434_vm8, %v3364_v36, %v3466_v3 }
 0x2d7   : > { %v5896_v7 = vadd.f32 %v3498_v30, %v434_v32  ;;  %v436_v30 = vld [vmem:[#allocation2 + $0x40] sm:$0xff] }
 0x2d8   : > { %v2482_v28 = vpop.permute.xlu1 %2481 }
 0x2d9   : > { %3562 = vst.msk [vmem:[#allocation2 + $0x30] sm:$0xff] %vm588_vm4, %v5896_v7  ;;  %v3594_v15 = vpack.c.bf16 %v5896_v7, %v5896_v7  ;;  %v3365_v52 = vpop.f32.mrf.mxu1  ;;  %3888 = vmatmul.msk.bf16.gmra.mxu2 %vm3302_vm0, %v3255_v39 }
 0x2da   : > { %v3366_v31 = vadd.f32 %v5666_v1, %v3365_v52 }
 0x2db   : > { %3627 = vst.msk [vmem:[#allocation3 + $0x18] sm:$0xf] %vm3620_vm11, %v3594_v15  ;;  %v2354_v4 = vpop.permute.xlu0 %2353 }
 0x2dc   : > { %vm3435_vm1 = vcmp.gt.f32.partialorder %v3366_v31, 0.0  ;;  %v3467_v2 = vmul.f32 0.1, %v3366_v31  ;;  %v3125_v9 = vsel %vm3093_vm9, %v3092_v41, %v2354_v4 }
 0x2dd   : > { %v3158_v19 = vsel %vm3126_vm10, %v3125_v9, %v2482_v28  ;;  %v446_v28 = vld [vmem:[#allocation2 + $0x90] sm:$0xff] }
 0x2de   : > { %v3499_v50 = vsel %vm3435_vm1, %v3366_v31, %v3467_v2  ;;  %v3191_v13 = vsel %vm3159_vm12, %v3158_v19, %v2594_v44  ;;  %v447_v44 = vld [vmem:[#allocation2 + $0x98] sm:$0xff] }
 0x2df   : > { %v5912_v20 = vadd.f32 %v3499_v50, %v435_v51  ;;  %v437_v50 = vld [vmem:[#allocation2 + $0x48] sm:$0xff] }
 0x2e0   : > { %v2994_v17 = vpop.permute.xlu1 %2993 }
 0x2e1   : > { %3563 = vst.msk [vmem:[#allocation2 + $0x38] sm:$0xff] %vm588_vm4, %v5912_v20  ;;  %v3595_v8 = vpack.c.bf16 %v5912_v20, %v5912_v20 }
 0x2e3   : > { %3628 = vst.msk [vmem:[#allocation3 + $0x1c] sm:$0xf] %vm3620_vm11, %v3595_v8  ;;  %v2866_v18 = vpop.permute.xlu0 %2865 }
 0x2e4   : > { %v3224_v37 = vsel %vm3192_vm13, %v3191_v13, %v2866_v18 }
 0x2e5   : > { %v3257_v56 = vsel %vm3225_vm15, %v3224_v37, %v2994_v17 }
 0x2e8   : > { %v2466_v38 = vpop.permute.xlu1 %2465 }
 0x2e9   : > { %3889 = vmatmul.msk.bf16.gmra.mxu2 %vm3302_vm0, %v3257_v56 }
 0x2eb   : > { %v2338_v22 = vpop.permute.xlu0 %2337 }
 0x2ec   : > { %v3109_v42 = vsel %vm3093_vm9, %v3076_v34, %v2338_v22 }
 0x2ed   : > { %v3142_v10 = vsel %vm3126_vm10, %v3109_v42, %v2466_v38  ;;  %v448_v38 = vld [vmem:[#allocation2 + $0xa0] sm:$0xff] }
 0x2ee   : > { %v3175_v6 = vsel %vm3159_vm12, %v3142_v10, %v2578_v53 }
 0x2f0   : > { %v2978_v59 = vpop.permute.xlu1 %2977 }
 0x2f3   : > { %v2850_v12 = vpop.permute.xlu0 %2849 }
 0x2f4   : > { %v3208_v54 = vsel %vm3192_vm13, %v3175_v6, %v2850_v12  ;;  %v449_v12 = vld [vmem:[#allocation2 + $0xa8] sm:$0xff] }
 0x2f5   : > { %v3241_v48 = vsel %vm3225_vm15, %v3208_v54, %v2978_v59 }
 0x2f6   : > { %3881 = vmatmul.msk.bf16.gmra.mxu1 %vm3302_vm0, %v3241_v48 }
 0x2fc   : > { %v3388_v63 = vpop.f32.mrf.mxu2 }
 0x2fd   : > { %v3389_v45 = vadd.f32 %v5666_v1, %v3388_v63 }
 0x2ff   : > { %vm3444_vm14 = vcmp.gt.f32.partialorder %v3389_v45, 0.0  ;;  %v3476_v47 = vmul.f32 0.1, %v3389_v45 }
 0x301   : > { %v3508_v11 = vsel %vm3444_vm14, %v3389_v45, %v3476_v47 }
 0x302   : > { %v5935_v24 = vadd.f32 %v3508_v11, %v444_v14 }
 0x304   : > { %3572 = vst.msk [vmem:[#allocation2 + $0x80] sm:$0xff] %vm588_vm4, %v5935_v24  ;;  %v3604_v16 = vpack.c.bf16 %v5935_v24, %v5935_v24  ;;  %v3390_v33 = vpop.f32.mrf.mxu2 }
 0x305   : > { %v3391_v0 = vadd.f32 %v5666_v1, %v3390_v33  ;;  %v450_v33 = vld [vmem:[#allocation2 + $0xb0] sm:$0xff] }
 0x306   : > { %3637 = vst.msk [vmem:[#allocation3 + $0x40] sm:$0xf] %vm3620_vm11, %v3604_v16  ;;  %v438_v16 = vld [vmem:[#allocation2 + $0x50] sm:$0xff] }
 0x307   : > { %vm3445_vm7 = vcmp.gt.f32.partialorder %v3391_v0, 0.0  ;;  %v3477_v36 = vmul.f32 0.1, %v3391_v0 }
 0x309   : > { %v3509_v55 = vsel %vm3445_vm7, %v3391_v0, %v3477_v36 }
 0x30a   : > { %v5943_v32 = vadd.f32 %v3509_v55, %v445_v58 }
 0x30b   : > { %v3368_v3 = vpop.f32.mrf.mxu1 }
 0x30c   : > { %3573 = vst.msk [vmem:[#allocation2 + $0x88] sm:$0xff] %vm588_vm4, %v5943_v32  ;;  %v3605_v49 = vpack.c.bf16 %v5943_v32, %v5943_v32  ;;  %v3369_v25 = vadd.f32 %v5666_v1, %v3368_v3  ;;  %v3393_v46 = vpop.f32.mrf.mxu2 }
 0x30d   : > { %v3394_v27 = vadd.f32 %v5666_v1, %v3393_v46 }
 0x30e   : > { %3638 = vst.msk [vmem:[#allocation3 + $0x44] sm:$0xf] %vm3620_vm11, %v3605_v49  ;;  %vm3436_vm9 = vcmp.gt.f32.partialorder %v3369_v25, 0.0  ;;  %v3468_v61 = vmul.f32 0.1, %v3369_v25 }
 0x30f   : > { %vm3446_vm10 = vcmp.gt.f32.partialorder %v3394_v27, 0.0  ;;  %v3478_v15 = vmul.f32 0.1, %v3394_v27 }
 0x310   : > { %v3500_v52 = vsel %vm3436_vm9, %v3369_v25, %v3468_v61 }
 0x311   : > { %v5952_v62 = vadd.f32 %v3500_v52, %v436_v30  ;;  %v3510_v31 = vsel %vm3446_vm10, %v3394_v27, %v3478_v15  ;;  %v439_v15 = vld [vmem:[#allocation2 + $0x58] sm:$0xff] }
 0x312   : > { %v5954_v39 = vadd.f32 %v3510_v31, %v446_v28  ;;  %v451_v31 = vld [vmem:[#allocation2 + $0xb8] sm:$0xff] }
 0x313   : > { %3564 = vst.msk [vmem:[#allocation2 + $0x40] sm:$0xff] %vm588_vm4, %v5952_v62  ;;  %v3596_v5 = vpack.c.bf16 %v5952_v62, %v5952_v62  ;;  %v3370_v43 = vpop.f32.mrf.mxu1 }
 0x314   : > { %3574 = vst.msk [vmem:[#allocation2 + $0x90] sm:$0xff] %vm588_vm4, %v5954_v39  ;;  %v3606_v40 = vpack.c.bf16 %v5954_v39, %v5954_v39  ;;  %v3371_v51 = vadd.f32 %v5666_v1, %v3370_v43  ;;  %v3395_v2 = vpop.f32.mrf.mxu2 }
 0x315   : > { %3629 = vst.msk [vmem:[#allocation3 + $0x20] sm:$0xf] %vm3620_vm11, %v3596_v5  ;;  %v3396_v4 = vadd.f32 %v5666_v1, %v3395_v2 }
 0x316   : > { %3639 = vst.msk [vmem:[#allocation3 + $0x48] sm:$0xf] %vm3620_vm11, %v3606_v40  ;;  %vm3437_vm12 = vcmp.gt.f32.partialorder %v3371_v51, 0.0  ;;  %v3469_v41 = vmul.f32 0.1, %v3371_v51 }
 0x317   : > { %vm3447_vm13 = vcmp.gt.f32.partialorder %v3396_v4, 0.0  ;;  %v3479_v9 = vmul.f32 0.1, %v3396_v4 }
 0x318   : > { %v3501_v8 = vsel %vm3437_vm12, %v3371_v51, %v3469_v41 }
 0x319   : > { %v5968_v17 = vadd.f32 %v3501_v8, %v437_v50  ;;  %v3511_v19 = vsel %vm3447_vm13, %v3396_v4, %v3479_v9  ;;  %v452_v9 = vld [vmem:[#allocation2 + $0xc0] sm:$0xff] }
 0x31a   : > { %v5970_v18 = vadd.f32 %v3511_v19, %v447_v44 }
 0x31b   : > { %3565 = vst.msk [vmem:[#allocation2 + $0x48] sm:$0xff] %vm588_vm4, %v5968_v17  ;;  %v3597_v13 = vpack.c.bf16 %v5968_v17, %v5968_v17 }
 0x31c   : > { %3575 = vst.msk [vmem:[#allocation2 + $0x98] sm:$0xff] %vm588_vm4, %v5970_v18  ;;  %v3607_v37 = vpack.c.bf16 %v5970_v18, %v5970_v18  ;;  %v3398_v26 = vpop.f32.mrf.mxu2 }
 0x31d   : > { %3630 = vst.msk [vmem:[#allocation3 + $0x24] sm:$0xf] %vm3620_vm11, %v3597_v13  ;;  %v3399_v56 = vadd.f32 %v5666_v1, %v3398_v26 }
 0x31e   : > { %3640 = vst.msk [vmem:[#allocation3 + $0x4c] sm:$0xf] %vm3620_vm11, %v3607_v37 }
 0x31f   : > { %vm3448_vm15 = vcmp.gt.f32.partialorder %v3399_v56, 0.0  ;;  %v3480_v22 = vmul.f32 0.1, %v3399_v56 }
 0x321   : > { %v3512_v34 = vsel %vm3448_vm15, %v3399_v56, %v3480_v22 }
 0x322   : > { %v5983_v42 = vadd.f32 %v3512_v34, %v448_v38  ;;  %v453_v38 = vld [vmem:[#allocation2 + $0xc8] sm:$0xff] }
 0x324   : > { %3576 = vst.msk [vmem:[#allocation2 + $0xa0] sm:$0xff] %vm588_vm4, %v5983_v42  ;;  %v3608_v10 = vpack.c.bf16 %v5983_v42, %v5983_v42  ;;  %v3400_v53 = vpop.f32.mrf.mxu2 }
 0x325   : > { %v3401_v6 = vadd.f32 %v5666_v1, %v3400_v53 }
 0x326   : > { %3641 = vst.msk [vmem:[#allocation3 + $0x50] sm:$0xf] %vm3620_vm11, %v3608_v10 }
 0x327   : > { %vm3449_vm0 = vcmp.gt.f32.partialorder %v3401_v6, 0.0  ;;  %v3481_v59 = vmul.f32 0.1, %v3401_v6 }
 0x329   : > { %v3513_v54 = vsel %vm3449_vm0, %v3401_v6, %v3481_v59  ;;  %v454_v59 = vld [vmem:[#allocation2 + $0xd0] sm:$0xff] }
 0x32a   : > { %v5991_v48 = vadd.f32 %v3513_v54, %v449_v12 }
 0x32c   : > { %3577 = vst.msk [vmem:[#allocation2 + $0xa8] sm:$0xff] %vm588_vm4, %v5991_v48  ;;  %v3609_v63 = vpack.c.bf16 %v5991_v48, %v5991_v48  ;;  %v3373_v45 = vpop.f32.mrf.mxu1  ;;  %v3403_v14 = vpop.f32.mrf.mxu2 }
 0x32d   : > { %v3374_v47 = vadd.f32 %v5666_v1, %v3373_v45  ;;  %v3404_v11 = vadd.f32 %v5666_v1, %v3403_v14 }
 0x32e   : > { %3642 = vst.msk [vmem:[#allocation3 + $0x54] sm:$0xf] %vm3620_vm11, %v3609_v63 }
 0x32f   : > { %vm3438_vm5 = vcmp.gt.f32.partialorder %v3374_v47, 0.0  ;;  %v3470_v0 = vmul.f32 0.1, %v3374_v47  ;;  %vm3450_vm6 = vcmp.gt.f32.partialorder %v3404_v11, 0.0  ;;  %v3482_v58 = vmul.f32 0.1, %v3404_v11 }
 0x331   : > { %v3502_v36 = vsel %vm3438_vm5, %v3374_v47, %v3470_v0  ;;  %v3514_v55 = vsel %vm3450_vm6, %v3404_v11, %v3482_v58 }
 0x332   : > { %v6000_v3 = vadd.f32 %v3502_v36, %v438_v16  ;;  %v6002_v49 = vadd.f32 %v3514_v55, %v450_v33  ;;  %v440_v33 = vld [vmem:[#allocation2 + $0x60] sm:$0xff]  ;;  %v455_v55 = vld [vmem:[#allocation2 + $0xd8] sm:$0xff] }
 0x334   : > { %3566 = vst.msk [vmem:[#allocation2 + $0x50] sm:$0xff] %vm588_vm4, %v6000_v3  ;;  %v3598_v25 = vpack.c.bf16 %v6000_v3, %v6000_v3  ;;  %v3610_v46 = vpack.c.bf16 %v6002_v49, %v6002_v49  ;;  %v3375_v27 = vpop.f32.mrf.mxu1  ;;  %v3405_v30 = vpop.f32.mrf.mxu2 }
 0x335   : > { %3578 = vst.msk [vmem:[#allocation2 + $0xb0] sm:$0xff] %vm588_vm4, %v6002_v49  ;;  %v3376_v61 = vadd.f32 %v5666_v1, %v3375_v27  ;;  %v3406_v28 = vadd.f32 %v5666_v1, %v3405_v30 }
 0x336   : > { %3631 = vst.msk [vmem:[#allocation3 + $0x28] sm:$0xf] %vm3620_vm11, %v3598_v25 }
 0x337   : > { %3643 = vst.msk [vmem:[#allocation3 + $0x58] sm:$0xf] %vm3620_vm11, %v3610_v46  ;;  %vm3439_vm2 = vcmp.gt.f32.partialorder %v3376_v61, 0.0  ;;  %v3471_v52 = vmul.f32 0.1, %v3376_v61  ;;  %vm3451_vm3 = vcmp.gt.f32.partialorder %v3406_v28, 0.0 }
 0x338   : > { %v3483_v5 = vmul.f32 0.1, %v3406_v28 }
 0x339   : > { %v3503_v43 = vsel %vm3439_vm2, %v3376_v61, %v3471_v52 }
 0x33a   : > { %v6016_v40 = vadd.f32 %v3503_v43, %v439_v15  ;;  %v3515_v51 = vsel %vm3451_vm3, %v3406_v28, %v3483_v5  ;;  %v441_v5 = vld [vmem:[#allocation2 + $0x68] sm:$0xff] }
 0x33b   : > { %v6018_v2 = vadd.f32 %v3515_v51, %v451_v31 }
 0x33c   : > { %3567 = vst.msk [vmem:[#allocation2 + $0x58] sm:$0xff] %vm588_vm4, %v6016_v40  ;;  %v3599_v4 = vpack.c.bf16 %v6016_v40, %v6016_v40  ;;  %v3408_v50 = vpop.f32.mrf.mxu2 }
 0x33d   : > { %3579 = vst.msk [vmem:[#allocation2 + $0xb8] sm:$0xff] %vm588_vm4, %v6018_v2  ;;  %v3611_v41 = vpack.c.bf16 %v6018_v2, %v6018_v2  ;;  %v3409_v44 = vadd.f32 %v5666_v1, %v3408_v50  ;;  %v456_v50 = vld [vmem:[#allocation2 + $0xe0] sm:$0xff] }
 0x33e   : > { %3632 = vst.msk [vmem:[#allocation3 + $0x2c] sm:$0xf] %vm3620_vm11, %v3599_v4 }
 0x33f   : > { %3644 = vst.msk [vmem:[#allocation3 + $0x5c] sm:$0xf] %vm3620_vm11, %v3611_v41  ;;  %vm3452_vm8 = vcmp.gt.f32.partialorder %v3409_v44, 0.0  ;;  %v3484_v8 = vmul.f32 0.1, %v3409_v44 }
 0x341   : > { %v3516_v19 = vsel %vm3452_vm8, %v3409_v44, %v3484_v8 }
 0x342   : > { %v6031_v13 = vadd.f32 %v3516_v19, %v452_v9 }
 0x344   : > { %3580 = vst.msk [vmem:[#allocation2 + $0xc0] sm:$0xff] %vm588_vm4, %v6031_v13  ;;  %v3612_v37 = vpack.c.bf16 %v6031_v13, %v6031_v13  ;;  %v3410_v26 = vpop.f32.mrf.mxu2 }
 0x345   : > { %v3411_v56 = vadd.f32 %v5666_v1, %v3410_v26  ;;  %v4174_v26 = vld [vmem:[%s5314_s11] ss:$0 sm:$0xff] }
 0x346   : > { %3645 = vst.msk [vmem:[#allocation3 + $0x60] sm:$0xf] %vm3620_vm11, %v3612_v37 }
 0x347   : > { %vm3453_vm1 = vcmp.gt.f32.partialorder %v3411_v56, 0.0  ;;  %v3485_v22 = vmul.f32 0.1, %v3411_v56 }
 0x349   : > { %v3517_v34 = vsel %vm3453_vm1, %v3411_v56, %v3485_v22 }
 0x34a   : > { %v6039_v10 = vadd.f32 %v3517_v34, %v453_v38  ;;  %v457_v38 = vld [vmem:[#allocation2 + $0xe8] sm:$0xff] }
 0x34c   : > { %3581 = vst.msk [vmem:[#allocation2 + $0xc8] sm:$0xff] %vm588_vm4, %v6039_v10  ;;  %v3613_v53 = vpack.c.bf16 %v6039_v10, %v6039_v10  ;;  %v3413_v6 = vpop.f32.mrf.mxu2 }
 0x34d   : > { %v3414_v12 = vadd.f32 %v5666_v1, %v3413_v6 }
 0x34e   : > { %3646 = vst.msk [vmem:[#allocation3 + $0x64] sm:$0xf] %vm3620_vm11, %v3613_v53 }
 0x34f   : > { %vm3454_vm14 = vcmp.gt.f32.partialorder %v3414_v12, 0.0  ;;  %v3486_v54 = vmul.f32 0.1, %v3414_v12 }
 0x351   : > { %v3518_v63 = vsel %vm3454_vm14, %v3414_v12, %v3486_v54  ;;  %v458_v54 = vld [vmem:[#allocation2 + $0xf0] sm:$0xff] }
 0x352   : > { %v6047_v45 = vadd.f32 %v3518_v63, %v454_v59  ;;  %v3378_v14 = vpop.f32.mrf.mxu1 }
 0x353   : > { %v3379_v47 = vadd.f32 %v5666_v1, %v3378_v14 }
 0x354   : > { %3582 = vst.msk [vmem:[#allocation2 + $0xd0] sm:$0xff] %vm588_vm4, %v6047_v45  ;;  %v3614_v11 = vpack.c.bf16 %v6047_v45, %v6047_v45  ;;  %v3415_v16 = vpop.f32.mrf.mxu2 }
 0x355   : > { %vm3440_vm7 = vcmp.gt.f32.partialorder %v3379_v47, 0.0  ;;  %v3472_v0 = vmul.f32 0.1, %v3379_v47  ;;  %v3416_v58 = vadd.f32 %v5666_v1, %v3415_v16 }
 0x356   : > { %3647 = vst.msk [vmem:[#allocation3 + $0x68] sm:$0xf] %vm3620_vm11, %v3614_v11 }
 0x357   : > { %v3504_v36 = vsel %vm3440_vm7, %v3379_v47, %v3472_v0  ;;  %vm3455_vm9 = vcmp.gt.f32.partialorder %v3416_v58, 0.0  ;;  %v3487_v25 = vmul.f32 0.1, %v3416_v58 }
 0x358   : > { %v6056_v46 = vadd.f32 %v3504_v36, %v440_v33  ;;  %v442_v36 = vld [vmem:[#allocation2 + $0x70] sm:$0xff] }
 0x359   : > { %v3519_v27 = vsel %vm3455_vm9, %v3416_v58, %v3487_v25  ;;  %v459_v25 = vld [vmem:[#allocation2 + $0xf8] sm:$0xff] }
 0x35a   : > { %3568 = vst.msk [vmem:[#allocation2 + $0x60] sm:$0xff] %vm588_vm4, %v6056_v46  ;;  %v3600_v30 = vpack.c.bf16 %v6056_v46, %v6056_v46  ;;  %v6062_v61 = vadd.f32 %v3519_v27, %v455_v55  ;;  %v3380_v28 = vpop.f32.mrf.mxu1 }
 0x35b   : > { %v3381_v15 = vadd.f32 %v5666_v1, %v3380_v28 }
 0x35c   : > { %3633 = vst.msk [vmem:[#allocation3 + $0x30] sm:$0xf] %vm3620_vm11, %v3600_v30  ;;  %v3615_v52 = vpack.c.bf16 %v6062_v61, %v6062_v61  ;;  %v3418_v31 = vpop.f32.mrf.mxu2 }
 0x35d   : > { %3583 = vst.msk [vmem:[#allocation2 + $0xd8] sm:$0xff] %vm588_vm4, %v6062_v61  ;;  %vm3441_vm10 = vcmp.gt.f32.partialorder %v3381_v15, 0.0  ;;  %v3473_v43 = vmul.f32 0.1, %v3381_v15  ;;  %v3419_v51 = vadd.f32 %v5666_v1, %v3418_v31 }
 0x35e   : > { %3648 = vst.msk [vmem:[#allocation3 + $0x6c] sm:$0xf] %vm3620_vm11, %v3615_v52 }
 0x35f   : > { %v3505_v4 = vsel %vm3441_vm10, %v3381_v15, %v3473_v43  ;;  %vm3456_vm12 = vcmp.gt.f32.partialorder %v3419_v51, 0.0  ;;  %v3488_v41 = vmul.f32 0.1, %v3419_v51 }
 0x360   : > { %v6072_v44 = vadd.f32 %v3505_v4, %v441_v5  ;;  %v443_v4 = vld [vmem:[#allocation2 + $0x78] sm:$0xff] }
 0x361   : > { %v3520_v9 = vsel %vm3456_vm12, %v3419_v51, %v3488_v41 }
 0x362   : > { %3569 = vst.msk [vmem:[#allocation2 + $0x68] sm:$0xff] %vm588_vm4, %v6072_v44  ;;  %v3601_v8 = vpack.c.bf16 %v6072_v44, %v6072_v44  ;;  %v6078_v19 = vadd.f32 %v3520_v9, %v456_v50 }
 0x364   : > { %3634 = vst.msk [vmem:[#allocation3 + $0x34] sm:$0xf] %vm3620_vm11, %v3601_v8  ;;  %v3616_v1 = vpack.c.bf16 %v6078_v19, %v6078_v19  ;;  %v3420_v37 = vpop.f32.mrf.mxu2 }
 0x365   : > { %3584 = vst.msk [vmem:[#allocation2 + $0xe0] sm:$0xff] %vm588_vm4, %v6078_v19  ;;  %v3421_v56 = vadd.f32 %v4174_v26, %v3420_v37 }
 0x366   : > { %3649 = vst.msk [vmem:[#allocation3 + $0x70] sm:$0xf] %vm3620_vm11, %v3616_v1 }
 0x367   : > { %vm3457_vm13 = vcmp.gt.f32.partialorder %v3421_v56, 0.0  ;;  %v3489_v22 = vmul.f32 0.1, %v3421_v56 }
 0x369   : > { %v3521_v34 = vsel %vm3457_vm13, %v3421_v56, %v3489_v22 }
 0x36a   : > { %v6087_v53 = vadd.f32 %v3521_v34, %v457_v38 }
 0x36c   : > { %3585 = vst.msk [vmem:[#allocation2 + $0xe8] sm:$0xff] %vm588_vm4, %v6087_v53  ;;  %v3617_v6 = vpack.c.bf16 %v6087_v53, %v6087_v53  ;;  %v3423_v12 = vpop.f32.mrf.mxu2 }
 0x36d   : > { %v3424_v59 = vadd.f32 %v4174_v26, %v3423_v12 }
 0x36e   : > { %3650 = vst.msk [vmem:[#allocation3 + $0x74] sm:$0xf] %vm3620_vm11, %v3617_v6 }
 0x36f   : > { %vm3458_vm15 = vcmp.gt.f32.partialorder %v3424_v59, 0.0  ;;  %v3490_v63 = vmul.f32 0.1, %v3424_v59 }
 0x371   : > { %v3522_v14 = vsel %vm3458_vm15, %v3424_v59, %v3490_v63 }
 0x372   : > { %v6094_v47 = vadd.f32 %v3522_v14, %v458_v54 }
 0x373   : > { %v3383_v11 = vpop.f32.mrf.mxu1 }
 0x374   : > { %3586 = vst.msk [vmem:[#allocation2 + $0xf0] sm:$0xff] %vm588_vm4, %v6094_v47  ;;  %v3618_v16 = vpack.c.bf16 %v6094_v47, %v6094_v47  ;;  %v3384_v33 = vadd.f32 %v4174_v26, %v3383_v11  ;;  %v3425_v0 = vpop.f32.mrf.mxu2 }
 0x375   : > { %v3426_v58 = vadd.f32 %v4174_v26, %v3425_v0 }
 0x376   : > { %3651 = vst.msk [vmem:[#allocation3 + $0x78] sm:$0xf] %vm3620_vm11, %v3618_v16  ;;  %vm3442_vm0 = vcmp.gt.f32.partialorder %v3384_v33, 0.0  ;;  %v3474_v55 = vmul.f32 0.1, %v3384_v33 }
 0x377   : > { %vm3459_vm5 = vcmp.gt.f32.partialorder %v3426_v58, 0.0  ;;  %v3491_v27 = vmul.f32 0.1, %v3426_v58 }
 0x378   : > { %v3506_v30 = vsel %vm3442_vm0, %v3384_v33, %v3474_v55 }
 0x379   : > { %v3538_v28 = vadd.f32 %v3506_v30, %v442_v36  ;;  %v3523_v15 = vsel %vm3459_vm5, %v3426_v58, %v3491_v27 }
 0x37a   : > { %v3555_v52 = vadd.f32 %v3523_v15, %v459_v25 }
 0x37b   : > { %3570 = vst.msk [vmem:[#allocation2 + $0x70] sm:$0xff] %vm588_vm4, %v3538_v28  ;;  %v3602_v31 = vpack.c.bf16 %v3538_v28, %v3538_v28  ;;  %v3385_v5 = vpop.f32.mrf.mxu1 }
 0x37c   : > { %3587 = vst.msk [vmem:[#allocation2 + $0xf8] sm:$0xff] %vm588_vm4, %v3555_v52  ;;  %v3619_v43 = vpack.c.bf16 %v3555_v52, %v3555_v52  ;;  %v3386_v51 = vadd.f32 %v4174_v26, %v3385_v5 }
 0x37d   : > { %3635 = vst.msk [vmem:[#allocation3 + $0x38] sm:$0xf] %vm3620_vm11, %v3602_v31 }
 0x37e   : > { %3652 = vst.msk [vmem:[#allocation3 + $0x7c] sm:$0xf] %vm3620_vm11, %v3619_v43  ;;  %vm3443_vm6 = vcmp.gt.f32.partialorder %v3386_v51, 0.0  ;;  %v3475_v50 = vmul.f32 0.1, %v3386_v51 }
 0x380   : > { %v3507_v41 = vsel %vm3443_vm6, %v3386_v51, %v3475_v50 }
 0x381   : > { %v3539_v9 = vadd.f32 %v3507_v41, %v443_v4  ;;  %3656 = sbr.rel (%p3890_p7) target bundleno = 934 (0x3a6), region = 48 }
 0x383   : > { %3571 = vst.msk [vmem:[#allocation2 + $0x78] sm:$0xff] %vm588_vm4, %v3539_v9  ;;  %v3603_v8 = vpack.c.bf16 %v3539_v9, %v3539_v9 }
 0x385   : > { %3636 = vst.msk [vmem:[#allocation3 + $0x3c] sm:$0xf] %vm3620_vm11, %v3603_v8 }
 0x386   : > { %3657 = vst.msk [vmem:[%s4360_s6] sm:$0xff] %vm588_vm4, %v5693_v29 }
 0x387   : > { %3658 = vst.msk [vmem:[%s4360_s6 + $0x8] sm:$0xff] %vm588_vm4, %v5716_v60 }
 0x388   : > { %3659 = vst.msk [vmem:[%s4360_s6 + $0x10] sm:$0xff] %vm588_vm4, %v5815_v21 }
 0x389   : > { %3660 = vst.msk [vmem:[%s4360_s6 + $0x18] sm:$0xff] %vm588_vm4, %v5826_v35 }
 0x38a   : > { %3661 = vst.msk [vmem:[%s4360_s6 + $0x20] sm:$0xff] %vm588_vm4, %v5845_v23 }
 0x38b   : > { %3662 = vst.msk [vmem:[%s4360_s6 + $0x28] sm:$0xff] %vm588_vm4, %v5865_v57 }
 0x38c   : > { %3663 = vst.msk [vmem:[%s4360_s6 + $0x30] sm:$0xff] %vm588_vm4, %v5896_v7 }
 0x38d   : > { %3664 = vst.msk [vmem:[%s4360_s6 + $0x38] sm:$0xff] %vm588_vm4, %v5912_v20 }
 0x38e   : > { %3665 = vst.msk [vmem:[%s4360_s6 + $0x40] sm:$0xff] %vm588_vm4, %v5952_v62 }
 0x38f   : > { %3666 = vst.msk [vmem:[%s4360_s6 + $0x48] sm:$0xff] %vm588_vm4, %v5968_v17 }
 0x390   : > { %3667 = vst.msk [vmem:[%s4360_s6 + $0x50] sm:$0xff] %vm588_vm4, %v6000_v3 }
 0x391   : > { %3668 = vst.msk [vmem:[%s4360_s6 + $0x58] sm:$0xff] %vm588_vm4, %v6016_v40 }
 0x392   : > { %3669 = vst.msk [vmem:[%s4360_s6 + $0x60] sm:$0xff] %vm588_vm4, %v6056_v46 }
 0x393   : > { %3670 = vst.msk [vmem:[%s4360_s6 + $0x68] sm:$0xff] %vm588_vm4, %v6072_v44 }
 0x394   : > { %3671 = vst.msk [vmem:[%s4360_s6 + $0x70] sm:$0xff] %vm588_vm4, %v3538_v28 }
 0x395   : > { %3672 = vst.msk [vmem:[%s4360_s6 + $0x78] sm:$0xff] %vm588_vm4, %v3539_v9 }
 0x396   : > { %3673 = vst.msk [vmem:[%s4360_s6 + $0x80] sm:$0xff] %vm588_vm4, %v5935_v24 }
 0x397   : > { %3674 = vst.msk [vmem:[%s4360_s6 + $0x88] sm:$0xff] %vm588_vm4, %v5943_v32 }
 0x398   : > { %3675 = vst.msk [vmem:[%s4360_s6 + $0x90] sm:$0xff] %vm588_vm4, %v5954_v39 }
 0x399   : > { %3676 = vst.msk [vmem:[%s4360_s6 + $0x98] sm:$0xff] %vm588_vm4, %v5970_v18 }
 0x39a   : > { %3677 = vst.msk [vmem:[%s4360_s6 + $0xa0] sm:$0xff] %vm588_vm4, %v5983_v42 }
 0x39b   : > { %3678 = vst.msk [vmem:[%s4360_s6 + $0xa8] sm:$0xff] %vm588_vm4, %v5991_v48 }
 0x39c   : > { %3679 = vst.msk [vmem:[%s4360_s6 + $0xb0] sm:$0xff] %vm588_vm4, %v6002_v49 }
 0x39d   : > { %3680 = vst.msk [vmem:[%s4360_s6 + $0xb8] sm:$0xff] %vm588_vm4, %v6018_v2 }
 0x39e   : > { %3681 = vst.msk [vmem:[%s4360_s6 + $0xc0] sm:$0xff] %vm588_vm4, %v6031_v13 }
 0x39f   : > { %3682 = vst.msk [vmem:[%s4360_s6 + $0xc8] sm:$0xff] %vm588_vm4, %v6039_v10 }
 0x3a0   : > { %3683 = vst.msk [vmem:[%s4360_s6 + $0xd0] sm:$0xff] %vm588_vm4, %v6047_v45 }
 0x3a1   : > { %3684 = vst.msk [vmem:[%s4360_s6 + $0xd8] sm:$0xff] %vm588_vm4, %v6062_v61 }
 0x3a2   : > { %3685 = vst.msk [vmem:[%s4360_s6 + $0xe0] sm:$0xff] %vm588_vm4, %v6078_v19 }
 0x3a3   : > { %3686 = vst.msk [vmem:[%s4360_s6 + $0xe8] sm:$0xff] %vm588_vm4, %v6087_v53 }
 0x3a4   : > { %3687 = vst.msk [vmem:[%s4360_s6 + $0xf0] sm:$0xff] %vm588_vm4, %v6094_v47 }
 0x3a5   : > { %3688 = vst.msk [vmem:[%s4360_s6 + $0xf8] sm:$0xff] %vm588_vm4, %v3555_v52 }
 0x3a6 PF: > { %s15_s22 = sadd.s32 1, %s4279_s22   ;;  %s6239_s18 = smov %s4271_s20 }
 0x3a7   : > { %p12_p8 = scmp.ge.s32.totalorder %s15_s22, 6   ;;  %s6240_s19 = smov %s4275_s21 }
 0x3a8   : > { %s6241_s20 = smov %s6244_s23  ;;  %s6242_s21 = smov %s6248_s24 }
 0x3a9   :  { %14 = sbr.rel (!%p12_p8) target bundleno = 3 (0x3), region = 84 }

</bundles_post_ra>
